<compile_context>
chip_gen: v7x
topology: tpu7x:2x2x1
jax: 0.10.0
libtpu: 0.0.40
codegen_flags: <defaults>
</compile_context>

<pallas_src>
import jax
import jax.numpy as jnp
from jax.experimental import pallas as pl
from jax.experimental.pallas import tpu as pltpu

# Layer dimensions fixed by MediumLinear.__init__
LAYER_DIMS = [(784, 500), (500, 500), (500, 500), (500, 500),
              (500, 500), (500, 500), (500, 100)]
N_LAYERS = len(LAYER_DIMS)
THRESHOLD = 1.0


def _round_up(n, m):
    return ((n + m - 1) // m) * m


PADDED_LAYER_DIMS = [(_round_up(i, 128), _round_up(o, 128)) for (i, o) in LAYER_DIMS]
D_IN_PAD = PADDED_LAYER_DIMS[0][0]    # 896
D_OUT_PAD = PADDED_LAYER_DIMS[-1][1]  # 128


def _stdp_mlp_kernel(x_ref, *refs):
    """Chains all 7 STDPLinear layers (matmul -> bias -> spike) fully in VMEM."""
    w_refs = refs[:N_LAYERS]
    b_refs = refs[N_LAYERS:2 * N_LAYERS]
    out_ref = refs[2 * N_LAYERS]

    act = x_ref[...]  # bf16 (TILE_B, 896), values in {0, 1}
    for i in range(N_LAYERS):
        # MXU matmul in bf16 with f32 accumulation; bias add + threshold in f32.
        mem = jnp.dot(act, w_refs[i][...],
                      preferred_element_type=jnp.float32) + b_refs[i][...]
        # LIF-style fire: heaviside(mem - threshold) fires at mem >= threshold.
        fired = mem >= THRESHOLD
        if i == N_LAYERS - 1:
            out_ref[...] = fired.astype(jnp.float32)   # exact 0/1, lane-dense store
        else:
            act = fired.astype(jnp.bfloat16)           # exact 0/1 feed to next MXU
        # TODO(synk): STDP trace updates / apply_reward (plasticity_reward,
        # plasticity_punish) are stateful training-time weight mutations with no
        # stateless Pallas equivalent; forward spikes are unaffected.


def _pick_tile_b(batch):
    """Biggest useful batch tile: sublane-aligned, capped at 512 rows."""
    return min(512, _round_up(batch, 8))


def medium_linear_forward(x, weights, biases, labels=None, train=True, tile_b=None):
    """Forward pass of MediumLinear.

    `labels`/`train` accepted for API parity (labels are unused by the reference
    forward; train only gates STDP side effects, which do not change the output).

    Args:
      x:        (batch, 784) float input spikes (0/1).
      weights:  list of 7 arrays, shapes (fan_in, fan_out) per LAYER_DIMS.
      biases:   list of 7 arrays, shapes (1, fan_out).
    Returns:
      (batch, 100) float32 output spikes.
    """
    del labels, train
    batch = x.shape[0]
    if tile_b is None:
        tile_b = _pick_tile_b(batch)

    # --- pad batch + feature dims and cast for the MXU ----------------------
    batch_p = _round_up(batch, tile_b)
    x_p = jnp.pad(x.astype(jnp.bfloat16),
                  ((0, batch_p - batch), (0, D_IN_PAD - x.shape[1])))

    w_p, b_p = [], []
    for (w, b, (pi, po)) in zip(weights, biases, PADDED_LAYER_DIMS):
        w_p.append(jnp.pad(w.astype(jnp.bfloat16),
                           ((0, pi - w.shape[0]), (0, po - w.shape[1]))))
        b_p.append(jnp.pad(b.astype(jnp.float32),
                           ((0, 0), (0, po - b.shape[1]))))

    grid = (pl.cdiv(batch_p, tile_b),)

    # x / out are tiled over the batch grid axis; weights & biases use a constant
    # index_map so they are DMA'd once and stay resident across all batch tiles.
    x_spec = pl.BlockSpec((tile_b, D_IN_PAD), lambda i: (i, 0))
    w_specs = [pl.BlockSpec((pi, po), lambda i: (0, 0))
               for (pi, po) in PADDED_LAYER_DIMS]
    b_specs = [pl.BlockSpec((1, po), lambda i: (0, 0))
               for (_, po) in PADDED_LAYER_DIMS]
    out_spec = pl.BlockSpec((tile_b, D_OUT_PAD), lambda i: (i, 0))

    out_padded = pl.pallas_call(
        _stdp_mlp_kernel,
        out_shape=jax.ShapeDtypeStruct((batch_p, D_OUT_PAD), jnp.float32),
        grid=grid,
        in_specs=[x_spec] + w_specs + b_specs,
        out_specs=out_spec,
        compiler_params=pltpu.CompilerParams(
            dimension_semantics=("parallel",),
            vmem_limit_bytes=48 << 20,
        ),
    )(x_p, *w_p, *b_p)

    # Slice padding away: padded rows are junk, padded cols are inert zeros.
    return out_padded[:batch, :LAYER_DIMS[-1][1]]


def init_params(key):
    """Deterministic nn.Linear-style init: U(-1/sqrt(fan_in), 1/sqrt(fan_in))."""
    weights, biases = [], []
    for (fan_in, fan_out) in LAYER_DIMS:
        key, kw, kb = jax.random.split(key, 3)
        bound = 1.0 / jnp.sqrt(jnp.float32(fan_in))
        w = jax.random.uniform(kw, (fan_in, fan_out), jnp.float32,
                               minval=-bound, maxval=bound)
        b = jax.random.uniform(kb, (1, fan_out), jnp.float32,
                               minval=-bound, maxval=bound)
        weights.append(w)
        biases.append(b)
    return weights, biases


if __name__ == "__main__":
    key = jax.random.PRNGKey(0)
    key, kx, kl, kp = jax.random.split(key, 4)

    batch = 16  # small demo batch; feature dims are fixed by the architecture
    # Binary input spikes, MNIST-flattened shape (batch, 784)
    x = (jax.random.uniform(kx, (batch, 784), jnp.float32) > 0.5).astype(jnp.float32)
    labels = jax.random.randint(kl, (batch,), 0, 10)  # unused by forward (parity only)

    weights, biases = init_params(kp)

    out = medium_linear_forward(x, weights, biases, labels=labels, train=True)
    out = jax.block_until_ready(out)

    assert out.shape == (batch, 100), out.shape
    assert out.dtype == jnp.float32
    # Spikes must be exactly binary.
    assert bool(jnp.all((out == 0.0) | (out == 1.0)))

    print("KERNEL_OK")
</pallas_src>

<mosaic_0001>
module attributes {stable_mosaic.version = 11 : i64} {
  func.func @_stdp_mlp_kernel(%arg0: i32, %arg1: memref<16x896xbf16, #tpu.memory_space<vmem>>, %arg2: memref<896x512xbf16, #tpu.memory_space<vmem>>, %arg3: memref<512x512xbf16, #tpu.memory_space<vmem>>, %arg4: memref<512x512xbf16, #tpu.memory_space<vmem>>, %arg5: memref<512x512xbf16, #tpu.memory_space<vmem>>, %arg6: memref<512x512xbf16, #tpu.memory_space<vmem>>, %arg7: memref<512x512xbf16, #tpu.memory_space<vmem>>, %arg8: memref<512x128xbf16, #tpu.memory_space<vmem>>, %arg9: memref<1x512xf32, #tpu.memory_space<vmem>>, %arg10: memref<1x512xf32, #tpu.memory_space<vmem>>, %arg11: memref<1x512xf32, #tpu.memory_space<vmem>>, %arg12: memref<1x512xf32, #tpu.memory_space<vmem>>, %arg13: memref<1x512xf32, #tpu.memory_space<vmem>>, %arg14: memref<1x512xf32, #tpu.memory_space<vmem>>, %arg15: memref<1x128xf32, #tpu.memory_space<vmem>>, %arg16: memref<16x128xf32, #tpu.memory_space<vmem>>) attributes {dimension_semantics = [#tpu.dimension_semantics<parallel>], iteration_bounds = array<i64: 1>, scalar_prefetch = 0 : i64, scratch_operands = 0 : i64, tpu.core_type = #tpu.core_type<tc>, window_params = [{transform_indices = @transform_0, window_bounds = array<i64: 16, 896>}, {pipeline_mode = #tpu.pipeline_mode<synchronous>, transform_indices = @transform_1, window_bounds = array<i64: 896, 512>}, {pipeline_mode = #tpu.pipeline_mode<synchronous>, transform_indices = @transform_2, window_bounds = array<i64: 512, 512>}, {pipeline_mode = #tpu.pipeline_mode<synchronous>, transform_indices = @transform_3, window_bounds = array<i64: 512, 512>}, {pipeline_mode = #tpu.pipeline_mode<synchronous>, transform_indices = @transform_4, window_bounds = array<i64: 512, 512>}, {pipeline_mode = #tpu.pipeline_mode<synchronous>, transform_indices = @transform_5, window_bounds = array<i64: 512, 512>}, {pipeline_mode = #tpu.pipeline_mode<synchronous>, transform_indices = @transform_6, window_bounds = array<i64: 512, 512>}, {pipeline_mode = #tpu.pipeline_mode<synchronous>, transform_indices = @transform_7, window_bounds = array<i64: 512, 128>}, {pipeline_mode = #tpu.pipeline_mode<synchronous>, transform_indices = @transform_8, window_bounds = array<i64: 1, 512>}, {pipeline_mode = #tpu.pipeline_mode<synchronous>, transform_indices = @transform_9, window_bounds = array<i64: 1, 512>}, {pipeline_mode = #tpu.pipeline_mode<synchronous>, transform_indices = @transform_10, window_bounds = array<i64: 1, 512>}, {pipeline_mode = #tpu.pipeline_mode<synchronous>, transform_indices = @transform_11, window_bounds = array<i64: 1, 512>}, {pipeline_mode = #tpu.pipeline_mode<synchronous>, transform_indices = @transform_12, window_bounds = array<i64: 1, 512>}, {pipeline_mode = #tpu.pipeline_mode<synchronous>, transform_indices = @transform_13, window_bounds = array<i64: 1, 512>}, {pipeline_mode = #tpu.pipeline_mode<synchronous>, transform_indices = @transform_14, window_bounds = array<i64: 1, 128>}, {transform_indices = @transform_15, window_bounds = array<i64: 16, 128>}]} {
    %c0 = arith.constant 0 : index
    %c0_0 = arith.constant 0 : index
    %0 = vector.load %arg1[%c0, %c0_0] : memref<16x896xbf16, #tpu.memory_space<vmem>>, vector<16x896xbf16>
    %c0_1 = arith.constant 0 : index
    %c0_2 = arith.constant 0 : index
    %1 = vector.load %arg2[%c0_1, %c0_2] : memref<896x512xbf16, #tpu.memory_space<vmem>>, vector<896x512xbf16>
    %cst = arith.constant dense<0.000000e+00> : vector<16x512xf32>
    %2 = tpu.matmul %0, %1, %cst {dimension_numbers = #tpu.dot_dimension_numbers<[1], [0], [0], [1], [0, 0, 1, 1], [], []>} : vector<16x896xbf16>, vector<896x512xbf16>, vector<16x512xf32> -> vector<16x512xf32>
    %c0_3 = arith.constant 0 : index
    %c0_4 = arith.constant 0 : index
    %3 = vector.load %arg9[%c0_3, %c0_4] : memref<1x512xf32, #tpu.memory_space<vmem>>, vector<1x512xf32>
    %4 = vector.broadcast %3 : vector<1x512xf32> to vector<16x512xf32>
    %5 = arith.addf %2, %4 : vector<16x512xf32>
    %cst_5 = arith.constant 1.000000e+00 : f32
    %6 = vector.broadcast %cst_5 : f32 to vector<16x512xf32>
    %7 = arith.cmpf oge, %5, %6 : vector<16x512xf32>
    %8 = arith.extui %7 : vector<16x512xi1> to vector<16x512xi32>
    %9 = arith.sitofp %8 : vector<16x512xi32> to vector<16x512xf32>
    %10 = arith.truncf %9 : vector<16x512xf32> to vector<16x512xbf16>
    %c0_6 = arith.constant 0 : index
    %c0_7 = arith.constant 0 : index
    %11 = vector.load %arg3[%c0_6, %c0_7] : memref<512x512xbf16, #tpu.memory_space<vmem>>, vector<512x512xbf16>
    %cst_8 = arith.constant dense<0.000000e+00> : vector<16x512xf32>
    %12 = tpu.matmul %10, %11, %cst_8 {dimension_numbers = #tpu.dot_dimension_numbers<[1], [0], [0], [1], [0, 0, 1, 1], [], []>} : vector<16x512xbf16>, vector<512x512xbf16>, vector<16x512xf32> -> vector<16x512xf32>
    %c0_9 = arith.constant 0 : index
    %c0_10 = arith.constant 0 : index
    %13 = vector.load %arg10[%c0_9, %c0_10] : memref<1x512xf32, #tpu.memory_space<vmem>>, vector<1x512xf32>
    %14 = vector.broadcast %13 : vector<1x512xf32> to vector<16x512xf32>
    %15 = arith.addf %12, %14 : vector<16x512xf32>
    %cst_11 = arith.constant 1.000000e+00 : f32
    %16 = vector.broadcast %cst_11 : f32 to vector<16x512xf32>
    %17 = arith.cmpf oge, %15, %16 : vector<16x512xf32>
    %18 = arith.extui %17 : vector<16x512xi1> to vector<16x512xi32>
    %19 = arith.sitofp %18 : vector<16x512xi32> to vector<16x512xf32>
    %20 = arith.truncf %19 : vector<16x512xf32> to vector<16x512xbf16>
    %c0_12 = arith.constant 0 : index
    %c0_13 = arith.constant 0 : index
    %21 = vector.load %arg4[%c0_12, %c0_13] : memref<512x512xbf16, #tpu.memory_space<vmem>>, vector<512x512xbf16>
    %cst_14 = arith.constant dense<0.000000e+00> : vector<16x512xf32>
    %22 = tpu.matmul %20, %21, %cst_14 {dimension_numbers = #tpu.dot_dimension_numbers<[1], [0], [0], [1], [0, 0, 1, 1], [], []>} : vector<16x512xbf16>, vector<512x512xbf16>, vector<16x512xf32> -> vector<16x512xf32>
    %c0_15 = arith.constant 0 : index
    %c0_16 = arith.constant 0 : index
    %23 = vector.load %arg11[%c0_15, %c0_16] : memref<1x512xf32, #tpu.memory_space<vmem>>, vector<1x512xf32>
    %24 = vector.broadcast %23 : vector<1x512xf32> to vector<16x512xf32>
    %25 = arith.addf %22, %24 : vector<16x512xf32>
    %cst_17 = arith.constant 1.000000e+00 : f32
    %26 = vector.broadcast %cst_17 : f32 to vector<16x512xf32>
    %27 = arith.cmpf oge, %25, %26 : vector<16x512xf32>
    %28 = arith.extui %27 : vector<16x512xi1> to vector<16x512xi32>
    %29 = arith.sitofp %28 : vector<16x512xi32> to vector<16x512xf32>
    %30 = arith.truncf %29 : vector<16x512xf32> to vector<16x512xbf16>
    %c0_18 = arith.constant 0 : index
    %c0_19 = arith.constant 0 : index
    %31 = vector.load %arg5[%c0_18, %c0_19] : memref<512x512xbf16, #tpu.memory_space<vmem>>, vector<512x512xbf16>
    %cst_20 = arith.constant dense<0.000000e+00> : vector<16x512xf32>
    %32 = tpu.matmul %30, %31, %cst_20 {dimension_numbers = #tpu.dot_dimension_numbers<[1], [0], [0], [1], [0, 0, 1, 1], [], []>} : vector<16x512xbf16>, vector<512x512xbf16>, vector<16x512xf32> -> vector<16x512xf32>
    %c0_21 = arith.constant 0 : index
    %c0_22 = arith.constant 0 : index
    %33 = vector.load %arg12[%c0_21, %c0_22] : memref<1x512xf32, #tpu.memory_space<vmem>>, vector<1x512xf32>
    %34 = vector.broadcast %33 : vector<1x512xf32> to vector<16x512xf32>
    %35 = arith.addf %32, %34 : vector<16x512xf32>
    %cst_23 = arith.constant 1.000000e+00 : f32
    %36 = vector.broadcast %cst_23 : f32 to vector<16x512xf32>
    %37 = arith.cmpf oge, %35, %36 : vector<16x512xf32>
    %38 = arith.extui %37 : vector<16x512xi1> to vector<16x512xi32>
    %39 = arith.sitofp %38 : vector<16x512xi32> to vector<16x512xf32>
    %40 = arith.truncf %39 : vector<16x512xf32> to vector<16x512xbf16>
    %c0_24 = arith.constant 0 : index
    %c0_25 = arith.constant 0 : index
    %41 = vector.load %arg6[%c0_24, %c0_25] : memref<512x512xbf16, #tpu.memory_space<vmem>>, vector<512x512xbf16>
    %cst_26 = arith.constant dense<0.000000e+00> : vector<16x512xf32>
    %42 = tpu.matmul %40, %41, %cst_26 {dimension_numbers = #tpu.dot_dimension_numbers<[1], [0], [0], [1], [0, 0, 1, 1], [], []>} : vector<16x512xbf16>, vector<512x512xbf16>, vector<16x512xf32> -> vector<16x512xf32>
    %c0_27 = arith.constant 0 : index
    %c0_28 = arith.constant 0 : index
    %43 = vector.load %arg13[%c0_27, %c0_28] : memref<1x512xf32, #tpu.memory_space<vmem>>, vector<1x512xf32>
    %44 = vector.broadcast %43 : vector<1x512xf32> to vector<16x512xf32>
    %45 = arith.addf %42, %44 : vector<16x512xf32>
    %cst_29 = arith.constant 1.000000e+00 : f32
    %46 = vector.broadcast %cst_29 : f32 to vector<16x512xf32>
    %47 = arith.cmpf oge, %45, %46 : vector<16x512xf32>
    %48 = arith.extui %47 : vector<16x512xi1> to vector<16x512xi32>
    %49 = arith.sitofp %48 : vector<16x512xi32> to vector<16x512xf32>
    %50 = arith.truncf %49 : vector<16x512xf32> to vector<16x512xbf16>
    %c0_30 = arith.constant 0 : index
    %c0_31 = arith.constant 0 : index
    %51 = vector.load %arg7[%c0_30, %c0_31] : memref<512x512xbf16, #tpu.memory_space<vmem>>, vector<512x512xbf16>
    %cst_32 = arith.constant dense<0.000000e+00> : vector<16x512xf32>
    %52 = tpu.matmul %50, %51, %cst_32 {dimension_numbers = #tpu.dot_dimension_numbers<[1], [0], [0], [1], [0, 0, 1, 1], [], []>} : vector<16x512xbf16>, vector<512x512xbf16>, vector<16x512xf32> -> vector<16x512xf32>
    %c0_33 = arith.constant 0 : index
    %c0_34 = arith.constant 0 : index
    %53 = vector.load %arg14[%c0_33, %c0_34] : memref<1x512xf32, #tpu.memory_space<vmem>>, vector<1x512xf32>
    %54 = vector.broadcast %53 : vector<1x512xf32> to vector<16x512xf32>
    %55 = arith.addf %52, %54 : vector<16x512xf32>
    %cst_35 = arith.constant 1.000000e+00 : f32
    %56 = vector.broadcast %cst_35 : f32 to vector<16x512xf32>
    %57 = arith.cmpf oge, %55, %56 : vector<16x512xf32>
    %58 = arith.extui %57 : vector<16x512xi1> to vector<16x512xi32>
    %59 = arith.sitofp %58 : vector<16x512xi32> to vector<16x512xf32>
    %60 = arith.truncf %59 : vector<16x512xf32> to vector<16x512xbf16>
    %c0_36 = arith.constant 0 : index
    %c0_37 = arith.constant 0 : index
    %61 = vector.load %arg8[%c0_36, %c0_37] : memref<512x128xbf16, #tpu.memory_space<vmem>>, vector<512x128xbf16>
    %cst_38 = arith.constant dense<0.000000e+00> : vector<16x128xf32>
    %62 = tpu.matmul %60, %61, %cst_38 {dimension_numbers = #tpu.dot_dimension_numbers<[1], [0], [0], [1], [0, 0, 1, 1], [], []>} : vector<16x512xbf16>, vector<512x128xbf16>, vector<16x128xf32> -> vector<16x128xf32>
    %c0_39 = arith.constant 0 : index
    %c0_40 = arith.constant 0 : index
    %63 = vector.load %arg15[%c0_39, %c0_40] : memref<1x128xf32, #tpu.memory_space<vmem>>, vector<1x128xf32>
    %64 = vector.broadcast %63 : vector<1x128xf32> to vector<16x128xf32>
    %65 = arith.addf %62, %64 : vector<16x128xf32>
    %cst_41 = arith.constant 1.000000e+00 : f32
    %66 = vector.broadcast %cst_41 : f32 to vector<16x128xf32>
    %67 = arith.cmpf oge, %65, %66 : vector<16x128xf32>
    %68 = arith.extui %67 : vector<16x128xi1> to vector<16x128xi32>
    %69 = arith.sitofp %68 : vector<16x128xi32> to vector<16x128xf32>
    %c0_42 = arith.constant 0 : index
    %c0_43 = arith.constant 0 : index
    %70 = vector.load %arg16[%c0_42, %c0_43] : memref<16x128xf32, #tpu.memory_space<vmem>>, vector<16x128xf32>
    tpu.vector_store %arg16[%c0_42, %c0_43], %69 {strides = array<i32>} : memref<16x128xf32, #tpu.memory_space<vmem>>, vector<16x128xf32>,
    return
  }
  func.func @transform_0(%arg0: i32) -> (i32, i32) {
    %c0_i32 = arith.constant 0 : i32
    %c0_i32_0 = arith.constant 0 : i32
    return %arg0, %c0_i32 : i32, i32
  }
  func.func @transform_1(%arg0: i32) -> (i32, i32) {
    %c0_i32 = arith.constant 0 : i32
    %c0_i32_0 = arith.constant 0 : i32
    %c0_i32_1 = arith.constant 0 : i32
    return %c0_i32, %c0_i32_0 : i32, i32
  }
  func.func @transform_2(%arg0: i32) -> (i32, i32) {
    %c0_i32 = arith.constant 0 : i32
    %c0_i32_0 = arith.constant 0 : i32
    %c0_i32_1 = arith.constant 0 : i32
    return %c0_i32, %c0_i32_0 : i32, i32
  }
  func.func @transform_3(%arg0: i32) -> (i32, i32) {
    %c0_i32 = arith.constant 0 : i32
    %c0_i32_0 = arith.constant 0 : i32
    %c0_i32_1 = arith.constant 0 : i32
    return %c0_i32, %c0_i32_0 : i32, i32
  }
  func.func @transform_4(%arg0: i32) -> (i32, i32) {
    %c0_i32 = arith.constant 0 : i32
    %c0_i32_0 = arith.constant 0 : i32
    %c0_i32_1 = arith.constant 0 : i32
    return %c0_i32, %c0_i32_0 : i32, i32
  }
  func.func @transform_5(%arg0: i32) -> (i32, i32) {
    %c0_i32 = arith.constant 0 : i32
    %c0_i32_0 = arith.constant 0 : i32
    %c0_i32_1 = arith.constant 0 : i32
    return %c0_i32, %c0_i32_0 : i32, i32
  }
  func.func @transform_6(%arg0: i32) -> (i32, i32) {
    %c0_i32 = arith.constant 0 : i32
    %c0_i32_0 = arith.constant 0 : i32
    %c0_i32_1 = arith.constant 0 : i32
    return %c0_i32, %c0_i32_0 : i32, i32
  }
  func.func @transform_7(%arg0: i32) -> (i32, i32) {
    %c0_i32 = arith.constant 0 : i32
    %c0_i32_0 = arith.constant 0 : i32
    %c0_i32_1 = arith.constant 0 : i32
    return %c0_i32, %c0_i32_0 : i32, i32
  }
  func.func @transform_8(%arg0: i32) -> (i32, i32) {
    %c0_i32 = arith.constant 0 : i32
    %c0_i32_0 = arith.constant 0 : i32
    %c0_i32_1 = arith.constant 0 : i32
    return %c0_i32, %c0_i32_0 : i32, i32
  }
  func.func @transform_9(%arg0: i32) -> (i32, i32) {
    %c0_i32 = arith.constant 0 : i32
    %c0_i32_0 = arith.constant 0 : i32
    %c0_i32_1 = arith.constant 0 : i32
    return %c0_i32, %c0_i32_0 : i32, i32
  }
  func.func @transform_10(%arg0: i32) -> (i32, i32) {
    %c0_i32 = arith.constant 0 : i32
    %c0_i32_0 = arith.constant 0 : i32
    %c0_i32_1 = arith.constant 0 : i32
    return %c0_i32, %c0_i32_0 : i32, i32
  }
  func.func @transform_11(%arg0: i32) -> (i32, i32) {
    %c0_i32 = arith.constant 0 : i32
    %c0_i32_0 = arith.constant 0 : i32
    %c0_i32_1 = arith.constant 0 : i32
    return %c0_i32, %c0_i32_0 : i32, i32
  }
  func.func @transform_12(%arg0: i32) -> (i32, i32) {
    %c0_i32 = arith.constant 0 : i32
    %c0_i32_0 = arith.constant 0 : i32
    %c0_i32_1 = arith.constant 0 : i32
    return %c0_i32, %c0_i32_0 : i32, i32
  }
  func.func @transform_13(%arg0: i32) -> (i32, i32) {
    %c0_i32 = arith.constant 0 : i32
    %c0_i32_0 = arith.constant 0 : i32
    %c0_i32_1 = arith.constant 0 : i32
    return %c0_i32, %c0_i32_0 : i32, i32
  }
  func.func @transform_14(%arg0: i32) -> (i32, i32) {
    %c0_i32 = arith.constant 0 : i32
    %c0_i32_0 = arith.constant 0 : i32
    %c0_i32_1 = arith.constant 0 : i32
    return %c0_i32, %c0_i32_0 : i32, i32
  }
  func.func @transform_15(%arg0: i32) -> (i32, i32) {
    %c0_i32 = arith.constant 0 : i32
    %c0_i32_0 = arith.constant 0 : i32
    return %arg0, %c0_i32 : i32, i32
  }
}

</mosaic_0001>

<bundles_post_ra>
// kernel: tpu_custom_call.1
= control target key start
LH: loop header
LB: loop body
LE: loop exit
PB: predicated region body
PF: predicated region fallthrough
CT: control target
= control target key end

     0   :  { %s10418_s0 = inlined_call_operand.hbm [shape: bf16[16,896], index: 0, kind: input, shape index: {}]   ;;  %s10419_s1 = inlined_call_operand.hbm [shape: bf16[896,512], index: 1, kind: input, shape index: {}]   ;;  %s10420_s2 = inlined_call_operand.hbm [shape: bf16[512,512], index: 2, kind: input, shape index: {}]   ;;  %s10421_s3 = inlined_call_operand.hbm [shape: bf16[512,512], index: 3, kind: input, shape index: {}]   ;;  %s10422_s4 = inlined_call_operand.hbm [shape: bf16[512,512], index: 4, kind: input, shape index: {}]   ;;  %s10423_s5 = inlined_call_operand.hbm [shape: bf16[512,512], index: 5, kind: input, shape index: {}]   ;;  %s10424_s6 = inlined_call_operand.hbm [shape: bf16[512,512], index: 6, kind: input, shape index: {}]   ;;  %s10425_s7 = inlined_call_operand.hbm [shape: bf16[512,128], index: 7, kind: input, shape index: {}]   ;;  %s10426_s8 = inlined_call_operand.vmem [shape: f32[1,512], index: 8, kind: input, shape index: {}]   ;;  %s10427_s9 = inlined_call_operand.vmem [shape: f32[1,512], index: 9, kind: input, shape index: {}]   ;;  %s10428_s10 = inlined_call_operand.vmem [shape: f32[1,512], index: 10, kind: input, shape index: {}]   ;;  %s10429_s11 = inlined_call_operand.vmem [shape: f32[1,512], index: 11, kind: input, shape index: {}]   ;;  %s10430_s12 = inlined_call_operand.vmem [shape: f32[1,512], index: 12, kind: input, shape index: {}]   ;;  %s10431_s13 = inlined_call_operand.vmem [shape: f32[1,512], index: 13, kind: input, shape index: {}]   ;;  %s10432_s14 = inlined_call_operand.vmem [shape: f32[1,128], index: 14, kind: input, shape index: {}]   ;;  %s10433_s15 = inlined_call_operand.hbm [shape: f32[16,128], index: 15, kind: output, shape index: {}]  }
   0x1   :  { %10435 = sst [smem:[#allocation23_spill]] %s10433_s15 }
   0x2   :  { %20 = vsyncpa [#allocation3], 0 }
   0x3   :  { %21 = vsyncpa [#allocation6], 0 }
   0x4   :  { %22 = vsyncpa [#allocation9], 0 }
   0x5   :  { %23 = vsyncpa [#allocation12], 0 }
   0x6   :  { %24 = vsyncpa [#allocation15], 0 }
   0x7   :  { %25 = vsyncpa [#allocation4], 0  ;;  %s10033_s18 = smov [#allocation5]   ;;  %s9823_s22 = scalar_lea.hbm %s10419_s1, 28672 }
   0x8   :  { %s43_s19 = sshll.u32 %s10033_s18, 4  ;;  %p9824_p0 = scmp.ne.s32.totalorder %s10419_s1, %s9823_s22  ;;  %s44_s19 = int_to_ptr.vmem [resolvable:$true] %s43_s19 }
   0x9   :  { %p9827_p1 = scmp.lt.u32.totalorder %s9823_s22, %s10419_s1 }
   0xb   :  { %p9829_p2 = pnand %p9827_p1, %p9824_p0 }
   0xd   :  { %9832 = shalt.err (!%p9829_p2)
}
   0xe   :  { %s9833_s27 = scalar_lea.vmem %s44_s19, 28672  ;;  %p9838_p4 = scmp.lt.s32.totalorder %s44_s19, %s44_s19 }
   0xf   :  { %p9834_p3 = scmp.ne.s32.totalorder %s44_s19, %s9833_s27  ;;  %p9839_p5 = scmp.lt.s32.totalorder %s9833_s27, %s9833_s27 }
  0x11   :  { %p9840_p6 = por %p9839_p5, %p9838_p4 }
  0x13   :  { %p9841_p7 = pnand %p9840_p6, %p9834_p3 }
  0x15   :  { %9844 = shalt.err (!%p9841_p7)
}
  0x16   :  { %s10034_s28 = smov 256   ;;  %s10035_s29 = smov 16  }
  0x17   :  { %49 = dma.hbm_to_vmem [thread:$0]  %s10419_s1, 28672, %s44_s19, [#allocation6], %s10034_s28, %s10034_s28, %s10035_s29  }
  0x18   :  { %s10036_s17 = smov [#allocation8]   ;;  %s10037_s20 = smov [#allocation11]  }
  0x19   :  { %s67_s18 = sshll.u32 %s10036_s17, 4  ;;  %s91_s21 = sshll.u32 %s10037_s20, 4  ;;  %s68_s18 = int_to_ptr.vmem [resolvable:$true] %s67_s18  ;;  %s92_s21 = int_to_ptr.vmem [resolvable:$true] %s91_s21 }
  0x1a   :  { %s9845_s24 = scalar_lea.hbm %s10421_s3, 16384 }
  0x1b   :  { %p9846_p8 = scmp.ne.s32.totalorder %s10421_s3, %s9845_s24  ;;  %p9849_p9 = scmp.lt.u32.totalorder %s9845_s24, %s10421_s3 }
  0x1d   :  { %p9851_p10 = pnand %p9849_p9, %p9846_p8 }
  0x1f   :  { %9854 = shalt.err (!%p9851_p10)
}
  0x20   :  { %s9855_s1 = scalar_lea.vmem %s68_s18, 16384  ;;  %p9860_p12 = scmp.lt.s32.totalorder %s68_s18, %s68_s18 }
  0x21   :  { %p9856_p11 = scmp.ne.s32.totalorder %s68_s18, %s9855_s1  ;;  %p9861_p13 = scmp.lt.s32.totalorder %s9855_s1, %s9855_s1 }
  0x23   :  { %p9862_p0 = por %p9861_p13, %p9860_p12 }
  0x25   :  { %p9863_p1 = pnand %p9862_p0, %p9856_p11 }
  0x27   :  { %9866 = shalt.err (!%p9863_p1)
}
  0x28   :  { %73 = dma.hbm_to_vmem [thread:$0]  %s10421_s3, 16384, %s68_s18, [#allocation9], %s10034_s28, %s10034_s28, %s10035_s29  }
  0x29   :  { %s9867_s17 = scalar_lea.hbm %s10423_s5, 16384 }
  0x2a   :  { %p9868_p2 = scmp.ne.s32.totalorder %s10423_s5, %s9867_s17  ;;  %p9871_p3 = scmp.lt.u32.totalorder %s9867_s17, %s10423_s5 }
  0x2c   :  { %p9873_p4 = pnand %p9871_p3, %p9868_p2 }
  0x2e   :  { %9876 = shalt.err (!%p9873_p4)
}
  0x2f   :  { %s9877_s25 = scalar_lea.vmem %s92_s21, 16384  ;;  %p9882_p6 = scmp.lt.s32.totalorder %s92_s21, %s92_s21 }
  0x30   :  { %p9878_p5 = scmp.ne.s32.totalorder %s92_s21, %s9877_s25  ;;  %p9883_p7 = scmp.lt.s32.totalorder %s9877_s25, %s9877_s25 }
  0x32   :  { %p9884_p8 = por %p9883_p7, %p9882_p6 }
  0x34   :  { %p9885_p9 = pnand %p9884_p8, %p9878_p5 }
  0x36   :  { %9888 = shalt.err (!%p9885_p9)
}
  0x37   :  { %97 = dma.hbm_to_vmem [thread:$0]  %s10423_s5, 16384, %s92_s21, [#allocation12], %s10034_s28, %s10034_s28, %s10035_s29  }
  0x38   :  { %s10038_s26 = smov [#allocation2]   ;;  %s9889_s30 = scalar_lea.hbm %s10418_s0, 896 }
  0x39   :  { %s31_s27 = sshll.u32 %s10038_s26, 4  ;;  %p9890_p10 = scmp.ne.s32.totalorder %s10418_s0, %s9889_s30  ;;  %s32_s27 = int_to_ptr.vmem [resolvable:$true] %s31_s27 }
  0x3a   :  { %p9893_p11 = scmp.lt.u32.totalorder %s9889_s30, %s10418_s0 }
  0x3c   :  { %p9895_p12 = pnand %p9893_p11, %p9890_p10 }
  0x3e   :  { %9898 = shalt.err (!%p9895_p12)
}
  0x3f   :  { %s9899_s22 = scalar_lea.vmem %s32_s27, 896  ;;  %p9904_p0 = scmp.lt.s32.totalorder %s32_s27, %s32_s27 }
  0x40   :  { %p9900_p13 = scmp.ne.s32.totalorder %s32_s27, %s9899_s22  ;;  %p9905_p1 = scmp.lt.s32.totalorder %s9899_s22, %s9899_s22 }
  0x42   :  { %p9906_p2 = por %p9905_p1, %p9904_p0 }
  0x44   :  { %p9907_p3 = pnand %p9906_p2, %p9900_p13 }
  0x46   :  { %9910 = shalt.err (!%p9907_p3)
}
  0x47   :  { %s10039_s5 = smov 448   ;;  %s10040_s21 = smov 28  }
  0x48   :  { %37 = dma.hbm_to_vmem [thread:$0]  %s10418_s0, 896, %s32_s27, [#allocation3], %s10039_s5, %s10039_s5, %s10040_s21  }
  0x49   :  { %s10041_s25 = smov [#allocation7]   ;;  %s10042_s18 = smov [#allocation10]  }
  0x4a   :  { %s55_s3 = sshll.u32 %s10041_s25, 4  ;;  %s79_s26 = sshll.u32 %s10042_s18, 4  ;;  %s56_s3 = int_to_ptr.vmem [resolvable:$true] %s55_s3  ;;  %s10190_s26 = int_to_ptr.vmem [resolvable:$true] %s79_s26 }
  0x4b   :  { %s9911_s30 = scalar_lea.hbm %s10420_s2, 16384 }
  0x4c   :  { %p9912_p4 = scmp.ne.s32.totalorder %s10420_s2, %s9911_s30  ;;  %p9915_p5 = scmp.lt.u32.totalorder %s9911_s30, %s10420_s2 }
  0x4e   :  { %p9917_p6 = pnand %p9915_p5, %p9912_p4 }
  0x50   :  { %9920 = shalt.err (!%p9917_p6)
}
  0x51   :  { %s9921_s0 = scalar_lea.vmem %s56_s3, 16384  ;;  %p9926_p8 = scmp.lt.s32.totalorder %s56_s3, %s56_s3 }
  0x52   :  { %p9922_p7 = scmp.ne.s32.totalorder %s56_s3, %s9921_s0  ;;  %p9927_p9 = scmp.lt.s32.totalorder %s9921_s0, %s9921_s0 }
  0x54   :  { %p9928_p10 = por %p9927_p9, %p9926_p8 }
  0x56   :  { %p9929_p11 = pnand %p9928_p10, %p9922_p7 }
  0x58   :  { %9932 = shalt.err (!%p9929_p11)
}
  0x59   :  { %61 = dma.hbm_to_vmem [thread:$0]  %s10420_s2, 16384, %s56_s3, [#allocation6], %s10034_s28, %s10034_s28, %s10035_s29  }
  0x5a   :  { %s9933_s23 = scalar_lea.hbm %s10422_s4, 16384 }
  0x5b   :  { %p9934_p12 = scmp.ne.s32.totalorder %s10422_s4, %s9933_s23  ;;  %p9937_p13 = scmp.lt.u32.totalorder %s9933_s23, %s10422_s4 }
  0x5d   :  { %p9939_p0 = pnand %p9937_p13, %p9934_p12 }
  0x5f   :  { %9942 = shalt.err (!%p9939_p0)
}
  0x60   :  { %s9943_s19 = scalar_lea.vmem %s10190_s26, 16384  ;;  %p9948_p2 = scmp.lt.s32.totalorder %s10190_s26, %s10190_s26 }
  0x61   :  { %p9944_p1 = scmp.ne.s32.totalorder %s10190_s26, %s9943_s19  ;;  %p9949_p3 = scmp.lt.s32.totalorder %s9943_s19, %s9943_s19 }
  0x63   :  { %p9950_p4 = por %p9949_p3, %p9948_p2 }
  0x65   :  { %p9951_p5 = pnand %p9950_p4, %p9944_p1 }
  0x67   :  { %9954 = shalt.err (!%p9951_p5)
}
  0x68   :  { %85 = dma.hbm_to_vmem [thread:$0]  %s10422_s4, 16384, %s10190_s26, [#allocation9], %s10034_s28, %s10034_s28, %s10035_s29  }
  0x69   :  { %s10043_s30 = smov [#allocation13]   ;;  %s10044_s15 = smov [#allocation14]  }
  0x6a   :  { %s103_s16 = sshll.u32 %s10043_s30, 4  ;;  %s115_s17 = sshll.u32 %s10044_s15, 4  ;;  %s104_s16 = int_to_ptr.vmem [resolvable:$true] %s103_s16  ;;  %s10227_s17 = int_to_ptr.vmem [resolvable:$true] %s115_s17 }
  0x6b   :  { %s9955_s27 = scalar_lea.hbm %s10424_s6, 16384 }
  0x6c   :  { %p9956_p6 = scmp.ne.s32.totalorder %s10424_s6, %s9955_s27  ;;  %p9959_p7 = scmp.lt.u32.totalorder %s9955_s27, %s10424_s6 }
  0x6e   :  { %p9961_p8 = pnand %p9959_p7, %p9956_p6 }
  0x70   :  { %9964 = shalt.err (!%p9961_p8)
}
  0x71   :  { %s9965_s4 = scalar_lea.vmem %s104_s16, 16384  ;;  %p9970_p10 = scmp.lt.s32.totalorder %s104_s16, %s104_s16 }
  0x72   :  { %p9966_p9 = scmp.ne.s32.totalorder %s104_s16, %s9965_s4  ;;  %p9971_p11 = scmp.lt.s32.totalorder %s9965_s4, %s9965_s4 }
  0x74   :  { %p9972_p12 = por %p9971_p11, %p9970_p10 }
  0x76   :  { %p9973_p13 = pnand %p9972_p12, %p9966_p9 }
  0x78   :  { %9976 = shalt.err (!%p9973_p13)
}
  0x79   :  { %109 = dma.hbm_to_vmem [thread:$0]  %s10424_s6, 16384, %s104_s16, [#allocation12], %s10034_s28, %s10034_s28, %s10035_s29  }
  0x7a   :  { %s9977_s1 = scalar_lea.hbm %s10425_s7, 4096 }
  0x7b   :  { %p9978_p0 = scmp.ne.s32.totalorder %s10425_s7, %s9977_s1  ;;  %p9981_p1 = scmp.lt.u32.totalorder %s9977_s1, %s10425_s7 }
  0x7d   :  { %p9983_p2 = pnand %p9981_p1, %p9978_p0 }
  0x7f   :  { %9986 = shalt.err (!%p9983_p2)
}
  0x80   :  { %s9987_s15 = scalar_lea.vmem %s10227_s17, 4096  ;;  %p9992_p4 = scmp.lt.s32.totalorder %s10227_s17, %s10227_s17 }
  0x81   :  { %p9988_p3 = scmp.ne.s32.totalorder %s10227_s17, %s9987_s15  ;;  %p9993_p5 = scmp.lt.s32.totalorder %s9987_s15, %s9987_s15 }
  0x83   :  { %p9994_p6 = por %p9993_p5, %p9992_p4 }
  0x85   :  { %p9995_p7 = pnand %p9994_p6, %p9988_p3 }
  0x87   :  { %9998 = shalt.err (!%p9995_p7)
}
  0x88   :  { %s10045_s6 = smov 64   ;;  %s10046_s28 = smov 4  }
  0x89   :  { %121 = dma.hbm_to_vmem [thread:$0]  %s10425_s7, 4096, %s10227_s17, [#allocation15], %s10045_s6, %s10045_s6, %s10046_s28  }
  0x8a   :  { %10021 = dma.done.wait [#allocation3], 896  }
  0x8b   :  { %10022 = vsyncadd [#allocation3], 4294966400 }
  0x8c   :  { %10023 = dma.done.wait [#allocation6], 45056  }
  0x8d   :  { %10024 = vsyncadd [#allocation6], 4294922240 }
  0x8e   :  { %10025 = dma.done.wait [#allocation9], 32768  }
  0x8f   :  { %10026 = vsyncadd [#allocation9], 4294934528 }
  0x90   :  { %10027 = dma.done.wait [#allocation12], 32768  }
  0x91   :  { %10028 = vsyncadd [#allocation12], 4294934528 }
  0x92   :  { %10029 = dma.done.wait [#allocation15], 4096  }
  0x93   :  { %10030 = vsyncadd [#allocation15], 4294963200  ;;  %v8485_v0 = vld [vmem:[#allocation5 + $0x4] ss:$16 sps:$4 sm:$0xff]   ;;  %v8487_v1 = vld [vmem:[#allocation5 + $0xc] ss:$16 sps:$4 sm:$0xff]  }
  0x94   :  { %1571 = vmatprep.subr.bf16.mxu0 %v8485_v0  ;;  %v8489_v2 = vld [vmem:[#allocation5] ss:$16 sps:$4 sm:$0xff]   ;;  %v8490_v3 = vld [vmem:[#allocation5 + $0x8] ss:$16 sps:$4 sm:$0xff]   ;;  %1743 = vmatprep.subr.bf16.mxu1 %v8487_v1  ;;  %v8491_v4 = vld [vmem:[#allocation5 + $0x24] ss:$16 sps:$4 sm:$0xff]  }
  0x95   :  { %1572 = vmatpush1.bf16.msra.mxu0 %v8489_v2  ;;  %1744 = vmatpush1.bf16.msra.mxu1 %v8490_v3  ;;  %v8493_v5 = vld [vmem:[#allocation5 + $0x2c] ss:$16 sps:$4 sm:$0xff]   ;;  %v8495_v6 = vld [vmem:[#allocation5 + $0x20] ss:$16 sps:$4 sm:$0xff]   ;;  %v8496_v7 = vld [vmem:[#allocation5 + $0x28] ss:$16 sps:$4 sm:$0xff]  }
  0x96   :  { %1573 = vmatprep.subr.bf16.mxu0 %v8491_v4  ;;  %1745 = vmatprep.subr.bf16.mxu1 %v8493_v5  ;;  %v8497_v8 = vld [vmem:[#allocation5 + $0x44] ss:$16 sps:$4 sm:$0xff]   ;;  %v8499_v9 = vld [vmem:[#allocation5 + $0x4c] ss:$16 sps:$4 sm:$0xff]   ;;  %v8501_v10 = vld [vmem:[#allocation5 + $0x40] ss:$16 sps:$4 sm:$0xff]  }
  0x97   :  { %v8502_v11 = vld [vmem:[#allocation5 + $0x48] ss:$16 sps:$4 sm:$0xff]   ;;  %v8503_v12 = vld [vmem:[#allocation5 + $0x64] ss:$16 sps:$4 sm:$0xff]   ;;  %v8505_v13 = vld [vmem:[#allocation5 + $0x6c] ss:$16 sps:$4 sm:$0xff]  }
  0x98   :  { %v8507_v14 = vld [vmem:[#allocation5 + $0x60] ss:$16 sps:$4 sm:$0xff]   ;;  %v8508_v15 = vld [vmem:[#allocation5 + $0x68] ss:$16 sps:$4 sm:$0xff]   ;;  %v8509_v16 = vld [vmem:[#allocation5 + $0x84] ss:$16 sps:$4 sm:$0xff]  }
  0x99   :  { %1574 = vmatpush1.bf16.msra.mxu0 %v8495_v6  ;;  %1746 = vmatpush1.bf16.msra.mxu1 %v8496_v7  ;;  %v8511_v17 = vld [vmem:[#allocation5 + $0x8c] ss:$16 sps:$4 sm:$0xff]   ;;  %v8513_v18 = vld [vmem:[#allocation5 + $0x80] ss:$16 sps:$4 sm:$0xff]   ;;  %v8514_v19 = vld [vmem:[#allocation5 + $0x88] ss:$16 sps:$4 sm:$0xff]  }
  0x9a   :  { %1575 = vmatprep.subr.bf16.mxu0 %v8497_v8  ;;  %1747 = vmatprep.subr.bf16.mxu1 %v8499_v9  ;;  %v8515_v20 = vld [vmem:[#allocation5 + $0xa4] ss:$16 sps:$4 sm:$0xff]   ;;  %v8517_v21 = vld [vmem:[#allocation5 + $0xac] ss:$16 sps:$4 sm:$0xff]   ;;  %v8519_v22 = vld [vmem:[#allocation5 + $0xa0] ss:$16 sps:$4 sm:$0xff]  }
  0x9b   :  { %v8520_v23 = vld [vmem:[#allocation5 + $0xa8] ss:$16 sps:$4 sm:$0xff]   ;;  %v8521_v24 = vld [vmem:[#allocation5 + $0xc4] ss:$16 sps:$4 sm:$0xff]   ;;  %v8523_v25 = vld [vmem:[#allocation5 + $0xcc] ss:$16 sps:$4 sm:$0xff]  }
  0x9c   :  { %v8525_v26 = vld [vmem:[#allocation5 + $0xc0] ss:$16 sps:$4 sm:$0xff]   ;;  %v8526_v27 = vld [vmem:[#allocation5 + $0xc8] ss:$16 sps:$4 sm:$0xff]   ;;  %v8527_v28 = vld [vmem:[#allocation5 + $0xe4] ss:$16 sps:$4 sm:$0xff]  }
  0x9d   :  { %1576 = vmatpush1.bf16.msra.mxu0 %v8501_v10  ;;  %1748 = vmatpush1.bf16.msra.mxu1 %v8502_v11  ;;  %v8529_v29 = vld [vmem:[#allocation5 + $0xec] ss:$16 sps:$4 sm:$0xff]   ;;  %v8531_v30 = vld [vmem:[#allocation5 + $0xe0] ss:$16 sps:$4 sm:$0xff]   ;;  %v8532_v31 = vld [vmem:[#allocation5 + $0xe8] ss:$16 sps:$4 sm:$0xff]  }
  0x9e   :  { %1577 = vmatprep.subr.bf16.mxu0 %v8503_v12  ;;  %1749 = vmatprep.subr.bf16.mxu1 %v8505_v13  ;;  %v8533_v32 = vld [vmem:[#allocation5 + $0x104] ss:$16 sps:$4 sm:$0xff]   ;;  %v8535_v33 = vld [vmem:[#allocation5 + $0x10c] ss:$16 sps:$4 sm:$0xff]   ;;  %v8537_v34 = vld [vmem:[#allocation5 + $0x100] ss:$16 sps:$4 sm:$0xff]  }
  0x9f   :  { %v8538_v35 = vld [vmem:[#allocation5 + $0x108] ss:$16 sps:$4 sm:$0xff]   ;;  %v8539_v36 = vld [vmem:[#allocation5 + $0x124] ss:$16 sps:$4 sm:$0xff]   ;;  %v8541_v37 = vld [vmem:[#allocation5 + $0x12c] ss:$16 sps:$4 sm:$0xff]  }
  0xa0   :  { %v8543_v38 = vld [vmem:[#allocation5 + $0x120] ss:$16 sps:$4 sm:$0xff]   ;;  %v8544_v39 = vld [vmem:[#allocation5 + $0x128] ss:$16 sps:$4 sm:$0xff]   ;;  %v8545_v40 = vld [vmem:[#allocation5 + $0x144] ss:$16 sps:$4 sm:$0xff]  }
  0xa1   :  { %1578 = vmatpush1.bf16.msra.mxu0 %v8507_v14  ;;  %1750 = vmatpush1.bf16.msra.mxu1 %v8508_v15  ;;  %v8547_v41 = vld [vmem:[#allocation5 + $0x14c] ss:$16 sps:$4 sm:$0xff]   ;;  %v8549_v42 = vld [vmem:[#allocation5 + $0x140] ss:$16 sps:$4 sm:$0xff]   ;;  %v8550_v43 = vld [vmem:[#allocation5 + $0x148] ss:$16 sps:$4 sm:$0xff]  }
  0xa2   :  { %1579 = vmatprep.subr.bf16.mxu0 %v8509_v16  ;;  %1751 = vmatprep.subr.bf16.mxu1 %v8511_v17  ;;  %v8551_v44 = vld [vmem:[#allocation5 + $0x164] ss:$16 sps:$4 sm:$0xff]   ;;  %v8553_v45 = vld [vmem:[#allocation5 + $0x16c] ss:$16 sps:$4 sm:$0xff]   ;;  %v8555_v46 = vld [vmem:[#allocation5 + $0x160] ss:$16 sps:$4 sm:$0xff]  }
  0xa3   :  { %v8556_v47 = vld [vmem:[#allocation5 + $0x168] ss:$16 sps:$4 sm:$0xff]   ;;  %v8557_v49 = vld [vmem:[#allocation5 + $0x184] ss:$16 sps:$4 sm:$0xff]   ;;  %v8559_v50 = vld [vmem:[#allocation5 + $0x18c] ss:$16 sps:$4 sm:$0xff]  }
  0xa4   :  { %v8583_v48 = vld [vmem:[#allocation2 + $0x4] ss:$28 sps:$4 sm:$0xff]   ;;  %v8561_v51 = vld [vmem:[#allocation5 + $0x180] ss:$16 sps:$4 sm:$0xff]   ;;  %v8563_v53 = vld [vmem:[#allocation5 + $0x1a4] ss:$16 sps:$4 sm:$0xff]  }
  0xa5   :  { %1580 = vmatpush1.bf16.msra.mxu0 %v8513_v18  ;;  %1752 = vmatpush1.bf16.msra.mxu1 %v8514_v19  ;;  %v8562_v52 = vld [vmem:[#allocation5 + $0x188] ss:$16 sps:$4 sm:$0xff]   ;;  %v8565_v54 = vld [vmem:[#allocation5 + $0x1ac] ss:$16 sps:$4 sm:$0xff]   ;;  %v8567_v55 = vld [vmem:[#allocation5 + $0x1a0] ss:$16 sps:$4 sm:$0xff]  }
  0xa6   :  { %1581 = vmatprep.subr.bf16.mxu0 %v8515_v20  ;;  %1753 = vmatprep.subr.bf16.mxu1 %v8517_v21  ;;  %v8568_v56 = vld [vmem:[#allocation5 + $0x1a8] ss:$16 sps:$4 sm:$0xff]   ;;  %v8569_v57 = vld [vmem:[#allocation5 + $0x1c4] ss:$16 sps:$4 sm:$0xff]   ;;  %v8571_v58 = vld [vmem:[#allocation5 + $0x1cc] ss:$16 sps:$4 sm:$0xff]  }
  0xa7   :  { %1603 = vmatprep.mubr.bf16.mxu0 %v8583_v48  ;;  %1775 = vmatprep.mubr.bf16.mxu1 %v8583_v48  ;;  %v8573_v59 = vld [vmem:[#allocation5 + $0x1c0] ss:$16 sps:$4 sm:$0xff]   ;;  %v8574_v60 = vld [vmem:[#allocation5 + $0x1c8] ss:$16 sps:$4 sm:$0xff]   ;;  %v8575_v61 = vld [vmem:[#allocation5 + $0x1e4] ss:$16 sps:$4 sm:$0xff]  }
  0xa8   :  { %v8577_v62 = vld [vmem:[#allocation5 + $0x1ec] ss:$16 sps:$4 sm:$0xff]   ;;  %v8579_v63 = vld [vmem:[#allocation5 + $0x1e0] ss:$16 sps:$4 sm:$0xff]   ;;  %v8580_v0 = vld [vmem:[#allocation5 + $0x1e8] ss:$16 sps:$4 sm:$0xff]  }
  0xa9   :  { %1582 = vmatpush1.bf16.msra.mxu0 %v8519_v22  ;;  %1754 = vmatpush1.bf16.msra.mxu1 %v8520_v23  ;;  %v8586_v1 = vld [vmem:[#allocation5 + $0x204] ss:$16 sps:$4 sm:$0xff]   ;;  %v8589_v2 = vld [vmem:[#allocation5 + $0x20c] ss:$16 sps:$4 sm:$0xff]   ;;  %v8584_v4 = vld [vmem:[#allocation5 + $0x200] ss:$16 sps:$4 sm:$0xff]  }
  0xaa   :  { %1583 = vmatprep.subr.bf16.mxu0 %v8521_v24  ;;  %1755 = vmatprep.subr.bf16.mxu1 %v8523_v25  ;;  %v8581_v3 = vld [vmem:[#allocation2] ss:$28 sps:$4 sm:$0xff]   ;;  %v8595_v7 = vld [vmem:[#allocation5 + $0x22c] ss:$16 sps:$4 sm:$0xff]   ;;  %v8590_v8 = vld [vmem:[#allocation5 + $0x220] ss:$16 sps:$4 sm:$0xff]  }
  0xab   :  { %v8587_v5 = vld [vmem:[#allocation5 + $0x208] ss:$16 sps:$4 sm:$0xff]   ;;  %v8592_v6 = vld [vmem:[#allocation5 + $0x224] ss:$16 sps:$4 sm:$0xff]   ;;  %v8601_v11 = vld [vmem:[#allocation5 + $0x24c] ss:$16 sps:$4 sm:$0xff]  }
  0xac   :  { %v8593_v9 = vld [vmem:[#allocation5 + $0x228] ss:$16 sps:$4 sm:$0xff]   ;;  %v8598_v10 = vld [vmem:[#allocation5 + $0x244] ss:$16 sps:$4 sm:$0xff]   ;;  %v8596_v12 = vld [vmem:[#allocation5 + $0x240] ss:$16 sps:$4 sm:$0xff]  }
  0xad   :  { %1584 = vmatpush1.bf16.msra.mxu0 %v8525_v26  ;;  %1756 = vmatpush1.bf16.msra.mxu1 %v8526_v27  ;;  %v8599_v13 = vld [vmem:[#allocation5 + $0x248] ss:$16 sps:$4 sm:$0xff]   ;;  %v8604_v14 = vld [vmem:[#allocation5 + $0x264] ss:$16 sps:$4 sm:$0xff]   ;;  %v8607_v15 = vld [vmem:[#allocation5 + $0x26c] ss:$16 sps:$4 sm:$0xff]  }
  0xae   :  { %1585 = vmatprep.subr.bf16.mxu0 %v8527_v28  ;;  %1757 = vmatprep.subr.bf16.mxu1 %v8529_v29  ;;  %v8602_v16 = vld [vmem:[#allocation5 + $0x260] ss:$16 sps:$4 sm:$0xff]   ;;  %v8605_v17 = vld [vmem:[#allocation5 + $0x268] ss:$16 sps:$4 sm:$0xff]   ;;  %v8610_v18 = vld [vmem:[#allocation5 + $0x284] ss:$16 sps:$4 sm:$0xff]  }
  0xaf   :  { %v8613_v19 = vld [vmem:[#allocation5 + $0x28c] ss:$16 sps:$4 sm:$0xff]   ;;  %v8608_v20 = vld [vmem:[#allocation5 + $0x280] ss:$16 sps:$4 sm:$0xff]   ;;  %v8611_v21 = vld [vmem:[#allocation5 + $0x288] ss:$16 sps:$4 sm:$0xff]  }
  0xb0   :  { %v8616_v22 = vld [vmem:[#allocation5 + $0x2a4] ss:$16 sps:$4 sm:$0xff]   ;;  %v8619_v23 = vld [vmem:[#allocation5 + $0x2ac] ss:$16 sps:$4 sm:$0xff]   ;;  %v8614_v24 = vld [vmem:[#allocation5 + $0x2a0] ss:$16 sps:$4 sm:$0xff]  }
  0xb1   :  { %1586 = vmatpush1.bf16.msra.mxu0 %v8531_v30  ;;  %1758 = vmatpush1.bf16.msra.mxu1 %v8532_v31  ;;  %v8617_v25 = vld [vmem:[#allocation5 + $0x2a8] ss:$16 sps:$4 sm:$0xff]   ;;  %v8622_v26 = vld [vmem:[#allocation5 + $0x2c4] ss:$16 sps:$4 sm:$0xff]   ;;  %v8625_v27 = vld [vmem:[#allocation5 + $0x2cc] ss:$16 sps:$4 sm:$0xff]  }
  0xb2   :  { %1587 = vmatprep.subr.bf16.mxu0 %v8533_v32  ;;  %1759 = vmatprep.subr.bf16.mxu1 %v8535_v33  ;;  %v8620_v28 = vld [vmem:[#allocation5 + $0x2c0] ss:$16 sps:$4 sm:$0xff]   ;;  %v8623_v29 = vld [vmem:[#allocation5 + $0x2c8] ss:$16 sps:$4 sm:$0xff]   ;;  %v8628_v31 = vld [vmem:[#allocation5 + $0x2e4] ss:$16 sps:$4 sm:$0xff]  }
  0xb3   :  { %v8682_v30 = vld [vmem:[#allocation2 + $0xc] ss:$28 sps:$4 sm:$0xff]   ;;  %v8631_v32 = vld [vmem:[#allocation5 + $0x2ec] ss:$16 sps:$4 sm:$0xff]   ;;  %s10049_s23 = smov [#allocation16]  }
  0xb4   :  { %v8626_v33 = vld [vmem:[#allocation5 + $0x2e0] ss:$16 sps:$4 sm:$0xff]   ;;  %v8655_v48 = vld [vmem:[#allocation5 + $0x36c] ss:$16 sps:$4 sm:$0xff]   ;;  %s7251_s4 = sshll.u32 %s10049_s23, 4  ;;  %s7252_s4 = int_to_ptr.vmem [resolvable:$true] %s7251_s4 }
  0xb5   :  { %1588 = vmatpush1.bf16.msra.mxu0 %v8537_v34  ;;  %1760 = vmatpush1.bf16.msra.mxu1 %v8538_v35  ;;  %v8629_v34 = vld [vmem:[#allocation5 + $0x2e8] ss:$16 sps:$4 sm:$0xff]   ;;  %v8634_v35 = vld [vmem:[#allocation5 + $0x304] ss:$16 sps:$4 sm:$0xff]   ;;  %p10004_p9 = scmp.lt.s32.totalorder %s7252_s4, %s7252_s4 }
  0xb6   :  { %1589 = vmatprep.subr.bf16.mxu0 %v8539_v36  ;;  %1761 = vmatprep.subr.bf16.mxu1 %v8541_v37  ;;  %v8637_v36 = vld [vmem:[#allocation5 + $0x30c] ss:$16 sps:$4 sm:$0xff]   ;;  %v8632_v37 = vld [vmem:[#allocation5 + $0x300] ss:$16 sps:$4 sm:$0xff]  }
  0xb9   :  { %1590 = vmatpush1.bf16.msra.mxu0 %v8543_v38  ;;  %1762 = vmatpush1.bf16.msra.mxu1 %v8544_v39  ;;  %v8635_v38 = vld [vmem:[#allocation5 + $0x308] ss:$16 sps:$4 sm:$0xff]   ;;  %v8640_v39 = vld [vmem:[#allocation5 + $0x324] ss:$16 sps:$4 sm:$0xff]  }
  0xba   :  { %1591 = vmatprep.subr.bf16.mxu0 %v8545_v40  ;;  %1763 = vmatprep.subr.bf16.mxu1 %v8547_v41  ;;  %v8643_v40 = vld [vmem:[#allocation5 + $0x32c] ss:$16 sps:$4 sm:$0xff]   ;;  %v8638_v41 = vld [vmem:[#allocation5 + $0x320] ss:$16 sps:$4 sm:$0xff]  }
  0xbd   :  { %1592 = vmatpush1.bf16.msra.mxu0 %v8549_v42  ;;  %1764 = vmatpush1.bf16.msra.mxu1 %v8550_v43  ;;  %v8641_v42 = vld [vmem:[#allocation5 + $0x328] ss:$16 sps:$4 sm:$0xff]   ;;  %v8646_v43 = vld [vmem:[#allocation5 + $0x344] ss:$16 sps:$4 sm:$0xff]  }
  0xbe   :  { %1593 = vmatprep.subr.bf16.mxu0 %v8551_v44  ;;  %1765 = vmatprep.subr.bf16.mxu1 %v8553_v45  ;;  %v8649_v44 = vld [vmem:[#allocation5 + $0x34c] ss:$16 sps:$4 sm:$0xff]   ;;  %v8644_v45 = vld [vmem:[#allocation5 + $0x340] ss:$16 sps:$4 sm:$0xff]  }
  0xc1   :  { %1594 = vmatpush1.bf16.msra.mxu0 %v8555_v46  ;;  %1766 = vmatpush1.bf16.msra.mxu1 %v8556_v47  ;;  %v8647_v46 = vld [vmem:[#allocation5 + $0x348] ss:$16 sps:$4 sm:$0xff]   ;;  %v8652_v47 = vld [vmem:[#allocation5 + $0x364] ss:$16 sps:$4 sm:$0xff]  }
  0xc2   :  { %1595 = vmatprep.subr.bf16.mxu0 %v8557_v49  ;;  %1767 = vmatprep.subr.bf16.mxu1 %v8559_v50  ;;  %v8650_v49 = vld [vmem:[#allocation5 + $0x360] ss:$16 sps:$4 sm:$0xff]   ;;  %v8653_v50 = vld [vmem:[#allocation5 + $0x368] ss:$16 sps:$4 sm:$0xff]  }
  0xc5   :  { %1596 = vmatpush1.bf16.msra.mxu0 %v8561_v51  ;;  %1768 = vmatpush1.bf16.msra.mxu1 %v8562_v52  ;;  %v8658_v51 = vld [vmem:[#allocation5 + $0x384] ss:$16 sps:$4 sm:$0xff]   ;;  %v8661_v52 = vld [vmem:[#allocation5 + $0x38c] ss:$16 sps:$4 sm:$0xff]  }
  0xc6   :  { %1597 = vmatprep.subr.bf16.mxu0 %v8563_v53  ;;  %1769 = vmatprep.subr.bf16.mxu1 %v8565_v54  ;;  %v8656_v53 = vld [vmem:[#allocation5 + $0x380] ss:$16 sps:$4 sm:$0xff]   ;;  %v8659_v54 = vld [vmem:[#allocation5 + $0x388] ss:$16 sps:$4 sm:$0xff]  }
  0xc9   :  { %1598 = vmatpush1.bf16.msra.mxu0 %v8567_v55  ;;  %1770 = vmatpush1.bf16.msra.mxu1 %v8568_v56  ;;  %v8664_v55 = vld [vmem:[#allocation5 + $0x3a4] ss:$16 sps:$4 sm:$0xff]   ;;  %v8667_v56 = vld [vmem:[#allocation5 + $0x3ac] ss:$16 sps:$4 sm:$0xff]  }
  0xca   :  { %1599 = vmatprep.subr.bf16.mxu0 %v8569_v57  ;;  %1771 = vmatprep.subr.bf16.mxu1 %v8571_v58  ;;  %v8662_v57 = vld [vmem:[#allocation5 + $0x3a0] ss:$16 sps:$4 sm:$0xff]   ;;  %v8665_v58 = vld [vmem:[#allocation5 + $0x3a8] ss:$16 sps:$4 sm:$0xff]  }
  0xcd   :  { %1600 = vmatpush1.bf16.msra.mxu0 %v8573_v59  ;;  %1772 = vmatpush1.bf16.msra.mxu1 %v8574_v60  ;;  %v8670_v59 = vld [vmem:[#allocation5 + $0x3c4] ss:$16 sps:$4 sm:$0xff]   ;;  %v8673_v60 = vld [vmem:[#allocation5 + $0x3cc] ss:$16 sps:$4 sm:$0xff]  }
  0xce   :  { %1601 = vmatprep.subr.bf16.mxu0 %v8575_v61  ;;  %1773 = vmatprep.subr.bf16.mxu1 %v8577_v62  ;;  %v8668_v61 = vld [vmem:[#allocation5 + $0x3c0] ss:$16 sps:$4 sm:$0xff]   ;;  %v8671_v62 = vld [vmem:[#allocation5 + $0x3c8] ss:$16 sps:$4 sm:$0xff]  }
  0xd1   :  { %1602 = vmatpush1.bf16.msra.mxu0 %v8579_v63  ;;  %1774 = vmatpush1.bf16.msra.mxu1 %v8580_v0  ;;  %v8676_v63 = vld [vmem:[#allocation5 + $0x3e4] ss:$16 sps:$4 sm:$0xff]   ;;  %v8679_v0 = vld [vmem:[#allocation5 + $0x3ec] ss:$16 sps:$4 sm:$0xff]  }
  0xd2   :  { %1614 = vmatprep.subr.bf16.mxu0 %v8586_v1  ;;  %1786 = vmatprep.subr.bf16.mxu1 %v8589_v2  ;;  %v8674_v1 = vld [vmem:[#allocation5 + $0x3e0] ss:$16 sps:$4 sm:$0xff]   ;;  %v8677_v2 = vld [vmem:[#allocation5 + $0x3e8] ss:$16 sps:$4 sm:$0xff]  }
  0xd4   :  { %1604 = vmatmul.mubr.bf16.vlgmr.msra.gmra.mrb[0].mxu0 %v8581_v3  ;;  %1776 = vmatmul.mubr.bf16.vlgmr.msra.gmra.mrb[0].mxu1 %v8581_v3  ;;  %v8685_v3 = vld [vmem:[#allocation5 + $0x404] ss:$16 sps:$4 sm:$0xff]  }
  0xd5   :  { %1615 = vmatpush1.bf16.msra.mxu0 %v8584_v4  ;;  %1787 = vmatpush1.bf16.msra.mxu1 %v8587_v5  ;;  %v8688_v4 = vld [vmem:[#allocation5 + $0x40c] ss:$16 sps:$4 sm:$0xff]  }
  0xd6   :  { %1616 = vmatprep.subr.bf16.mxu0 %v8592_v6  ;;  %1788 = vmatprep.subr.bf16.mxu1 %v8595_v7  ;;  %v8680_v5 = vld [vmem:[#allocation2 + $0x8] ss:$28 sps:$4 sm:$0xff]   ;;  %v8686_v7 = vld [vmem:[#allocation5 + $0x408] ss:$16 sps:$4 sm:$0xff]  }
  0xd7   :  { %1646 = vmatprep.mubr.bf16.mxu0 %v8682_v30  ;;  %1818 = vmatprep.mubr.bf16.mxu1 %v8682_v30  ;;  %v8683_v6 = vld [vmem:[#allocation5 + $0x400] ss:$16 sps:$4 sm:$0xff]   ;;  %v8724_v30 = vld [vmem:[#allocation5 + $0x4cc] ss:$16 sps:$4 sm:$0xff]  }
  0xd9   :  { %1617 = vmatpush1.bf16.msra.mxu0 %v8590_v8  ;;  %1789 = vmatpush1.bf16.msra.mxu1 %v8593_v9  ;;  %v8691_v8 = vld [vmem:[#allocation5 + $0x424] ss:$16 sps:$4 sm:$0xff]   ;;  %v8694_v9 = vld [vmem:[#allocation5 + $0x42c] ss:$16 sps:$4 sm:$0xff]  }
  0xda   :  { %1618 = vmatprep.subr.bf16.mxu0 %v8598_v10  ;;  %1790 = vmatprep.subr.bf16.mxu1 %v8601_v11  ;;  %v8689_v10 = vld [vmem:[#allocation5 + $0x420] ss:$16 sps:$4 sm:$0xff]   ;;  %v8692_v11 = vld [vmem:[#allocation5 + $0x428] ss:$16 sps:$4 sm:$0xff]  }
  0xdd   :  { %1619 = vmatpush1.bf16.msra.mxu0 %v8596_v12  ;;  %1791 = vmatpush1.bf16.msra.mxu1 %v8599_v13  ;;  %v8781_v12 = vld [vmem:[#allocation2 + $0x14] ss:$28 sps:$4 sm:$0xff]   ;;  %v8697_v13 = vld [vmem:[#allocation5 + $0x444] ss:$16 sps:$4 sm:$0xff]  }
  0xde   :  { %1620 = vmatprep.subr.bf16.mxu0 %v8604_v14  ;;  %1792 = vmatprep.subr.bf16.mxu1 %v8607_v15  ;;  %v8700_v14 = vld [vmem:[#allocation5 + $0x44c] ss:$16 sps:$4 sm:$0xff]   ;;  %v8695_v15 = vld [vmem:[#allocation5 + $0x440] ss:$16 sps:$4 sm:$0xff]  }
  0xe1   :  { %1621 = vmatpush1.bf16.msra.mxu0 %v8602_v16  ;;  %1793 = vmatpush1.bf16.msra.mxu1 %v8605_v17  ;;  %v8698_v16 = vld [vmem:[#allocation5 + $0x448] ss:$16 sps:$4 sm:$0xff]   ;;  %v8703_v17 = vld [vmem:[#allocation5 + $0x464] ss:$16 sps:$4 sm:$0xff]  }
  0xe2   :  { %1622 = vmatprep.subr.bf16.mxu0 %v8610_v18  ;;  %1794 = vmatprep.subr.bf16.mxu1 %v8613_v19  ;;  %v8706_v18 = vld [vmem:[#allocation5 + $0x46c] ss:$16 sps:$4 sm:$0xff]   ;;  %v8701_v19 = vld [vmem:[#allocation5 + $0x460] ss:$16 sps:$4 sm:$0xff]  }
  0xe5   :  { %1623 = vmatpush1.bf16.msra.mxu0 %v8608_v20  ;;  %1795 = vmatpush1.bf16.msra.mxu1 %v8611_v21  ;;  %v8704_v20 = vld [vmem:[#allocation5 + $0x468] ss:$16 sps:$4 sm:$0xff]   ;;  %v8709_v21 = vld [vmem:[#allocation5 + $0x484] ss:$16 sps:$4 sm:$0xff]  }
  0xe6   :  { %1624 = vmatprep.subr.bf16.mxu0 %v8616_v22  ;;  %1796 = vmatprep.subr.bf16.mxu1 %v8619_v23  ;;  %v8712_v22 = vld [vmem:[#allocation5 + $0x48c] ss:$16 sps:$4 sm:$0xff]   ;;  %v8707_v23 = vld [vmem:[#allocation5 + $0x480] ss:$16 sps:$4 sm:$0xff]  }
  0xe9   :  { %1625 = vmatpush1.bf16.msra.mxu0 %v8614_v24  ;;  %1797 = vmatpush1.bf16.msra.mxu1 %v8617_v25  ;;  %v8710_v24 = vld [vmem:[#allocation5 + $0x488] ss:$16 sps:$4 sm:$0xff]   ;;  %v8715_v25 = vld [vmem:[#allocation5 + $0x4a4] ss:$16 sps:$4 sm:$0xff]  }
  0xea   :  { %1626 = vmatprep.subr.bf16.mxu0 %v8622_v26  ;;  %1798 = vmatprep.subr.bf16.mxu1 %v8625_v27  ;;  %v8718_v26 = vld [vmem:[#allocation5 + $0x4ac] ss:$16 sps:$4 sm:$0xff]   ;;  %v8713_v27 = vld [vmem:[#allocation5 + $0x4a0] ss:$16 sps:$4 sm:$0xff]  }
  0xed   :  { %1627 = vmatpush1.bf16.msra.mxu0 %v8620_v28  ;;  %1799 = vmatpush1.bf16.msra.mxu1 %v8623_v29  ;;  %v8716_v28 = vld [vmem:[#allocation5 + $0x4a8] ss:$16 sps:$4 sm:$0xff]   ;;  %v8721_v29 = vld [vmem:[#allocation5 + $0x4c4] ss:$16 sps:$4 sm:$0xff]  }
  0xee   :  { %1628 = vmatprep.subr.bf16.mxu0 %v8628_v31  ;;  %1800 = vmatprep.subr.bf16.mxu1 %v8631_v32  ;;  %v8719_v31 = vld [vmem:[#allocation5 + $0x4c0] ss:$16 sps:$4 sm:$0xff]   ;;  %v8722_v32 = vld [vmem:[#allocation5 + $0x4c8] ss:$16 sps:$4 sm:$0xff]  }
  0xf1   :  { %1629 = vmatpush1.bf16.msra.mxu0 %v8626_v33  ;;  %1801 = vmatpush1.bf16.msra.mxu1 %v8629_v34  ;;  %v8727_v33 = vld [vmem:[#allocation5 + $0x4e4] ss:$16 sps:$4 sm:$0xff]   ;;  %v8730_v34 = vld [vmem:[#allocation5 + $0x4ec] ss:$16 sps:$4 sm:$0xff]  }
  0xf2   :  { %1630 = vmatprep.subr.bf16.mxu0 %v8634_v35  ;;  %1802 = vmatprep.subr.bf16.mxu1 %v8637_v36  ;;  %v8725_v35 = vld [vmem:[#allocation5 + $0x4e0] ss:$16 sps:$4 sm:$0xff]   ;;  %v8728_v36 = vld [vmem:[#allocation5 + $0x4e8] ss:$16 sps:$4 sm:$0xff]  }
  0xf5   :  { %1631 = vmatpush1.bf16.msra.mxu0 %v8632_v37  ;;  %1803 = vmatpush1.bf16.msra.mxu1 %v8635_v38  ;;  %v8733_v37 = vld [vmem:[#allocation5 + $0x504] ss:$16 sps:$4 sm:$0xff]   ;;  %v8736_v38 = vld [vmem:[#allocation5 + $0x50c] ss:$16 sps:$4 sm:$0xff]  }
  0xf6   :  { %1632 = vmatprep.subr.bf16.mxu0 %v8640_v39  ;;  %1804 = vmatprep.subr.bf16.mxu1 %v8643_v40  ;;  %v8731_v39 = vld [vmem:[#allocation5 + $0x500] ss:$16 sps:$4 sm:$0xff]   ;;  %v8734_v40 = vld [vmem:[#allocation5 + $0x508] ss:$16 sps:$4 sm:$0xff]  }
  0xf9   :  { %1633 = vmatpush1.bf16.msra.mxu0 %v8638_v41  ;;  %1805 = vmatpush1.bf16.msra.mxu1 %v8641_v42  ;;  %v8739_v41 = vld [vmem:[#allocation5 + $0x524] ss:$16 sps:$4 sm:$0xff]   ;;  %v8742_v42 = vld [vmem:[#allocation5 + $0x52c] ss:$16 sps:$4 sm:$0xff]  }
  0xfa   :  { %1634 = vmatprep.subr.bf16.mxu0 %v8646_v43  ;;  %1806 = vmatprep.subr.bf16.mxu1 %v8649_v44  ;;  %v8737_v43 = vld [vmem:[#allocation5 + $0x520] ss:$16 sps:$4 sm:$0xff]   ;;  %v8740_v44 = vld [vmem:[#allocation5 + $0x528] ss:$16 sps:$4 sm:$0xff]  }
  0xfd   :  { %1635 = vmatpush1.bf16.msra.mxu0 %v8644_v45  ;;  %1807 = vmatpush1.bf16.msra.mxu1 %v8647_v46  ;;  %v8745_v45 = vld [vmem:[#allocation5 + $0x544] ss:$16 sps:$4 sm:$0xff]   ;;  %v8748_v46 = vld [vmem:[#allocation5 + $0x54c] ss:$16 sps:$4 sm:$0xff]  }
  0xfe   :  { %1636 = vmatprep.subr.bf16.mxu0 %v8652_v47  ;;  %1808 = vmatprep.subr.bf16.mxu1 %v8655_v48  ;;  %v8743_v47 = vld [vmem:[#allocation5 + $0x540] ss:$16 sps:$4 sm:$0xff]   ;;  %v8746_v48 = vld [vmem:[#allocation5 + $0x548] ss:$16 sps:$4 sm:$0xff]  }
 0x101   :  { %1637 = vmatpush1.bf16.msra.mxu0 %v8650_v49  ;;  %1809 = vmatpush1.bf16.msra.mxu1 %v8653_v50  ;;  %v8751_v49 = vld [vmem:[#allocation5 + $0x564] ss:$16 sps:$4 sm:$0xff]   ;;  %v8754_v50 = vld [vmem:[#allocation5 + $0x56c] ss:$16 sps:$4 sm:$0xff]  }
 0x102   :  { %1638 = vmatprep.subr.bf16.mxu0 %v8658_v51  ;;  %1810 = vmatprep.subr.bf16.mxu1 %v8661_v52  ;;  %v8749_v51 = vld [vmem:[#allocation5 + $0x560] ss:$16 sps:$4 sm:$0xff]   ;;  %v8752_v52 = vld [vmem:[#allocation5 + $0x568] ss:$16 sps:$4 sm:$0xff]  }
 0x105   :  { %1639 = vmatpush1.bf16.msra.mxu0 %v8656_v53  ;;  %1811 = vmatpush1.bf16.msra.mxu1 %v8659_v54  ;;  %v8757_v53 = vld [vmem:[#allocation5 + $0x584] ss:$16 sps:$4 sm:$0xff]   ;;  %v8760_v54 = vld [vmem:[#allocation5 + $0x58c] ss:$16 sps:$4 sm:$0xff]  }
 0x106   :  { %1640 = vmatprep.subr.bf16.mxu0 %v8664_v55  ;;  %1812 = vmatprep.subr.bf16.mxu1 %v8667_v56  ;;  %v8755_v55 = vld [vmem:[#allocation5 + $0x580] ss:$16 sps:$4 sm:$0xff]   ;;  %v8758_v56 = vld [vmem:[#allocation5 + $0x588] ss:$16 sps:$4 sm:$0xff]  }
 0x109   :  { %1641 = vmatpush1.bf16.msra.mxu0 %v8662_v57  ;;  %1813 = vmatpush1.bf16.msra.mxu1 %v8665_v58  ;;  %v8763_v57 = vld [vmem:[#allocation5 + $0x5a4] ss:$16 sps:$4 sm:$0xff]   ;;  %v8766_v58 = vld [vmem:[#allocation5 + $0x5ac] ss:$16 sps:$4 sm:$0xff]  }
 0x10a   :  { %1642 = vmatprep.subr.bf16.mxu0 %v8670_v59  ;;  %1814 = vmatprep.subr.bf16.mxu1 %v8673_v60  ;;  %v8761_v59 = vld [vmem:[#allocation5 + $0x5a0] ss:$16 sps:$4 sm:$0xff]   ;;  %v8764_v60 = vld [vmem:[#allocation5 + $0x5a8] ss:$16 sps:$4 sm:$0xff]  }
 0x10d   :  { %1643 = vmatpush1.bf16.msra.mxu0 %v8668_v61  ;;  %1815 = vmatpush1.bf16.msra.mxu1 %v8671_v62  ;;  %v8769_v61 = vld [vmem:[#allocation5 + $0x5c4] ss:$16 sps:$4 sm:$0xff]   ;;  %v8772_v62 = vld [vmem:[#allocation5 + $0x5cc] ss:$16 sps:$4 sm:$0xff]  }
 0x10e   :  { %1644 = vmatprep.subr.bf16.mxu0 %v8676_v63  ;;  %1816 = vmatprep.subr.bf16.mxu1 %v8679_v0  ;;  %v8767_v63 = vld [vmem:[#allocation5 + $0x5c0] ss:$16 sps:$4 sm:$0xff]   ;;  %v8770_v0 = vld [vmem:[#allocation5 + $0x5c8] ss:$16 sps:$4 sm:$0xff]  }
 0x111   :  { %1645 = vmatpush1.bf16.msra.mxu0 %v8674_v1  ;;  %1817 = vmatpush1.bf16.msra.mxu1 %v8677_v2  ;;  %v8775_v1 = vld [vmem:[#allocation5 + $0x5e4] ss:$16 sps:$4 sm:$0xff]   ;;  %v8778_v2 = vld [vmem:[#allocation5 + $0x5ec] ss:$16 sps:$4 sm:$0xff]  }
 0x112   :  { %1657 = vmatprep.subr.bf16.mxu0 %v8685_v3  ;;  %1829 = vmatprep.subr.bf16.mxu1 %v8688_v4  ;;  %v8773_v3 = vld [vmem:[#allocation5 + $0x5e0] ss:$16 sps:$4 sm:$0xff]   ;;  %v8776_v4 = vld [vmem:[#allocation5 + $0x5e8] ss:$16 sps:$4 sm:$0xff]  }
 0x114   :  { %1647 = vmatmul.mubr.bf16.vlgmr.msra.gmra.mrb[0].mxu0 %v8680_v5  ;;  %1819 = vmatmul.mubr.bf16.vlgmr.msra.gmra.mrb[0].mxu1 %v8680_v5  ;;  %v8784_v5 = vld [vmem:[#allocation5 + $0x604] ss:$16 sps:$4 sm:$0xff]  }
 0x115   :  { %1658 = vmatpush1.bf16.msra.mxu0 %v8683_v6  ;;  %1830 = vmatpush1.bf16.msra.mxu1 %v8686_v7  ;;  %v8779_v6 = vld [vmem:[#allocation2 + $0x10] ss:$28 sps:$4 sm:$0xff]   ;;  %v8787_v7 = vld [vmem:[#allocation5 + $0x60c] ss:$16 sps:$4 sm:$0xff]  }
 0x116   :  { %1659 = vmatprep.subr.bf16.mxu0 %v8691_v8  ;;  %1831 = vmatprep.subr.bf16.mxu1 %v8694_v9  ;;  %v8782_v8 = vld [vmem:[#allocation5 + $0x600] ss:$16 sps:$4 sm:$0xff]   ;;  %v8785_v9 = vld [vmem:[#allocation5 + $0x608] ss:$16 sps:$4 sm:$0xff]  }
 0x117   :  { %1689 = vmatprep.mubr.bf16.mxu0 %v8781_v12  ;;  %1861 = vmatprep.mubr.bf16.mxu1 %v8781_v12  ;;  %v8788_v12 = vld [vmem:[#allocation5 + $0x620] ss:$16 sps:$4 sm:$0xff]  }
 0x119   :  { %1660 = vmatpush1.bf16.msra.mxu0 %v8689_v10  ;;  %1832 = vmatpush1.bf16.msra.mxu1 %v8692_v11  ;;  %v8790_v10 = vld [vmem:[#allocation5 + $0x624] ss:$16 sps:$4 sm:$0xff]   ;;  %v8793_v11 = vld [vmem:[#allocation5 + $0x62c] ss:$16 sps:$4 sm:$0xff]  }
 0x11a   :  { %1661 = vmatprep.subr.bf16.mxu0 %v8697_v13  ;;  %1833 = vmatprep.subr.bf16.mxu1 %v8700_v14  ;;  %v8791_v13 = vld [vmem:[#allocation5 + $0x628] ss:$16 sps:$4 sm:$0xff]   ;;  %v8796_v14 = vld [vmem:[#allocation5 + $0x644] ss:$16 sps:$4 sm:$0xff]  }
 0x11d   :  { %1662 = vmatpush1.bf16.msra.mxu0 %v8695_v15  ;;  %1834 = vmatpush1.bf16.msra.mxu1 %v8698_v16  ;;  %v8799_v15 = vld [vmem:[#allocation5 + $0x64c] ss:$16 sps:$4 sm:$0xff]   ;;  %v8794_v16 = vld [vmem:[#allocation5 + $0x640] ss:$16 sps:$4 sm:$0xff]  }
 0x11e   :  { %1663 = vmatprep.subr.bf16.mxu0 %v8703_v17  ;;  %1835 = vmatprep.subr.bf16.mxu1 %v8706_v18  ;;  %v8797_v17 = vld [vmem:[#allocation5 + $0x648] ss:$16 sps:$4 sm:$0xff]   ;;  %v10047_v18 = vmov 0  }
 0x121   :  { %1664 = vmatpush1.bf16.msra.mxu0 %v8701_v19  ;;  %1836 = vmatpush1.bf16.msra.mxu1 %v8704_v20  ;;  %v8802_v19 = vld [vmem:[#allocation5 + $0x664] ss:$16 sps:$4 sm:$0xff]   ;;  %v8805_v20 = vld [vmem:[#allocation5 + $0x66c] ss:$16 sps:$4 sm:$0xff]  }
 0x122   :  { %1665 = vmatprep.subr.bf16.mxu0 %v8709_v21  ;;  %1837 = vmatprep.subr.bf16.mxu1 %v8712_v22  ;;  %v8800_v21 = vld [vmem:[#allocation5 + $0x660] ss:$16 sps:$4 sm:$0xff]   ;;  %v8803_v22 = vld [vmem:[#allocation5 + $0x668] ss:$16 sps:$4 sm:$0xff]  }
 0x125   :  { %1666 = vmatpush1.bf16.msra.mxu0 %v8707_v23  ;;  %1838 = vmatpush1.bf16.msra.mxu1 %v8710_v24  ;;  %v8808_v23 = vld [vmem:[#allocation5 + $0x684] ss:$16 sps:$4 sm:$0xff]   ;;  %v8811_v24 = vld [vmem:[#allocation5 + $0x68c] ss:$16 sps:$4 sm:$0xff]  }
 0x126   :  { %1667 = vmatprep.subr.bf16.mxu0 %v8715_v25  ;;  %1839 = vmatprep.subr.bf16.mxu1 %v8718_v26  ;;  %v8806_v25 = vld [vmem:[#allocation5 + $0x680] ss:$16 sps:$4 sm:$0xff]   ;;  %v8809_v26 = vld [vmem:[#allocation5 + $0x688] ss:$16 sps:$4 sm:$0xff]  }
 0x129   :  { %1668 = vmatpush1.bf16.msra.mxu0 %v8713_v27  ;;  %1840 = vmatpush1.bf16.msra.mxu1 %v8716_v28  ;;  %v8814_v27 = vld [vmem:[#allocation5 + $0x6a4] ss:$16 sps:$4 sm:$0xff]   ;;  %v8817_v28 = vld [vmem:[#allocation5 + $0x6ac] ss:$16 sps:$4 sm:$0xff]  }
 0x12a   :  { %1669 = vmatprep.subr.bf16.mxu0 %v8721_v29  ;;  %1841 = vmatprep.subr.bf16.mxu1 %v8724_v30  ;;  %v8812_v29 = vld [vmem:[#allocation5 + $0x6a0] ss:$16 sps:$4 sm:$0xff]   ;;  %v8815_v30 = vld [vmem:[#allocation5 + $0x6a8] ss:$16 sps:$4 sm:$0xff]  }
 0x12d   :  { %1670 = vmatpush1.bf16.msra.mxu0 %v8719_v31  ;;  %1842 = vmatpush1.bf16.msra.mxu1 %v8722_v32  ;;  %v8820_v31 = vld [vmem:[#allocation5 + $0x6c4] ss:$16 sps:$4 sm:$0xff]   ;;  %v8823_v32 = vld [vmem:[#allocation5 + $0x6cc] ss:$16 sps:$4 sm:$0xff]  }
 0x12e   :  { %1671 = vmatprep.subr.bf16.mxu0 %v8727_v33  ;;  %1843 = vmatprep.subr.bf16.mxu1 %v8730_v34  ;;  %v8818_v33 = vld [vmem:[#allocation5 + $0x6c0] ss:$16 sps:$4 sm:$0xff]   ;;  %v8821_v34 = vld [vmem:[#allocation5 + $0x6c8] ss:$16 sps:$4 sm:$0xff]  }
 0x131   :  { %1672 = vmatpush1.bf16.msra.mxu0 %v8725_v35  ;;  %1844 = vmatpush1.bf16.msra.mxu1 %v8728_v36  ;;  %v8826_v35 = vld [vmem:[#allocation5 + $0x6e4] ss:$16 sps:$4 sm:$0xff]   ;;  %v8829_v36 = vld [vmem:[#allocation5 + $0x6ec] ss:$16 sps:$4 sm:$0xff]  }
 0x132   :  { %1673 = vmatprep.subr.bf16.mxu0 %v8733_v37  ;;  %1845 = vmatprep.subr.bf16.mxu1 %v8736_v38  ;;  %v8824_v37 = vld [vmem:[#allocation5 + $0x6e0] ss:$16 sps:$4 sm:$0xff]   ;;  %v8827_v38 = vld [vmem:[#allocation5 + $0x6e8] ss:$16 sps:$4 sm:$0xff]  }
 0x135   :  { %1674 = vmatpush1.bf16.msra.mxu0 %v8731_v39  ;;  %1846 = vmatpush1.bf16.msra.mxu1 %v8734_v40  ;;  %v8833_v39 = vld [vmem:[#allocation7 + $0x4] ss:$16 sps:$4 sm:$0xff]   ;;  %v8836_v40 = vld [vmem:[#allocation7 + $0xc] ss:$16 sps:$4 sm:$0xff]  }
 0x136   :  { %1675 = vmatprep.subr.bf16.mxu0 %v8739_v41  ;;  %1847 = vmatprep.subr.bf16.mxu1 %v8742_v42  ;;  %v8830_v41 = vld [vmem:[#allocation2 + $0x18] ss:$28 sps:$4 sm:$0xff]  }
 0x137   :  { %v8831_v42 = vld [vmem:[#allocation7] ss:$16 sps:$4 sm:$0xff]  }
 0x139   :  { %1676 = vmatpush1.bf16.msra.mxu0 %v8737_v43  ;;  %1848 = vmatpush1.bf16.msra.mxu1 %v8740_v44  ;;  %v8834_v43 = vld [vmem:[#allocation7 + $0x8] ss:$16 sps:$4 sm:$0xff]   ;;  %v8839_v44 = vld [vmem:[#allocation7 + $0x24] ss:$16 sps:$4 sm:$0xff]  }
 0x13a   :  { %1677 = vmatprep.subr.bf16.mxu0 %v8745_v45  ;;  %1849 = vmatprep.subr.bf16.mxu1 %v8748_v46  ;;  %v8842_v45 = vld [vmem:[#allocation7 + $0x2c] ss:$16 sps:$4 sm:$0xff]   ;;  %v8837_v46 = vld [vmem:[#allocation7 + $0x20] ss:$16 sps:$4 sm:$0xff]  }
 0x13d   :  { %1678 = vmatpush1.bf16.msra.mxu0 %v8743_v47  ;;  %1850 = vmatpush1.bf16.msra.mxu1 %v8746_v48  ;;  %v8840_v47 = vld [vmem:[#allocation7 + $0x28] ss:$16 sps:$4 sm:$0xff]   ;;  %v8845_v48 = vld [vmem:[#allocation7 + $0x44] ss:$16 sps:$4 sm:$0xff]  }
 0x13e   :  { %1679 = vmatprep.subr.bf16.mxu0 %v8751_v49  ;;  %1851 = vmatprep.subr.bf16.mxu1 %v8754_v50  ;;  %v8848_v49 = vld [vmem:[#allocation7 + $0x4c] ss:$16 sps:$4 sm:$0xff]   ;;  %v8843_v50 = vld [vmem:[#allocation7 + $0x40] ss:$16 sps:$4 sm:$0xff]  }
 0x141   :  { %1680 = vmatpush1.bf16.msra.mxu0 %v8749_v51  ;;  %1852 = vmatpush1.bf16.msra.mxu1 %v8752_v52  ;;  %v8846_v51 = vld [vmem:[#allocation7 + $0x48] ss:$16 sps:$4 sm:$0xff]   ;;  %v8851_v52 = vld [vmem:[#allocation7 + $0x64] ss:$16 sps:$4 sm:$0xff]  }
 0x142   :  { %1681 = vmatprep.subr.bf16.mxu0 %v8757_v53  ;;  %1853 = vmatprep.subr.bf16.mxu1 %v8760_v54  ;;  %v8854_v53 = vld [vmem:[#allocation7 + $0x6c] ss:$16 sps:$4 sm:$0xff]   ;;  %v8849_v54 = vld [vmem:[#allocation7 + $0x60] ss:$16 sps:$4 sm:$0xff]  }
 0x145   :  { %1682 = vmatpush1.bf16.msra.mxu0 %v8755_v55  ;;  %1854 = vmatpush1.bf16.msra.mxu1 %v8758_v56  ;;  %v8852_v55 = vld [vmem:[#allocation7 + $0x68] ss:$16 sps:$4 sm:$0xff]   ;;  %v8857_v56 = vld [vmem:[#allocation7 + $0x84] ss:$16 sps:$4 sm:$0xff]  }
 0x146   :  { %1683 = vmatprep.subr.bf16.mxu0 %v8763_v57  ;;  %1855 = vmatprep.subr.bf16.mxu1 %v8766_v58  ;;  %v8860_v57 = vld [vmem:[#allocation7 + $0x8c] ss:$16 sps:$4 sm:$0xff]   ;;  %v8855_v58 = vld [vmem:[#allocation7 + $0x80] ss:$16 sps:$4 sm:$0xff]  }
 0x149   :  { %1684 = vmatpush1.bf16.msra.mxu0 %v8761_v59  ;;  %1856 = vmatpush1.bf16.msra.mxu1 %v8764_v60  ;;  %v8858_v59 = vld [vmem:[#allocation7 + $0x88] ss:$16 sps:$4 sm:$0xff]   ;;  %v8863_v60 = vld [vmem:[#allocation7 + $0xa4] ss:$16 sps:$4 sm:$0xff]  }
 0x14a   :  { %1685 = vmatprep.subr.bf16.mxu0 %v8769_v61  ;;  %1857 = vmatprep.subr.bf16.mxu1 %v8772_v62  ;;  %v8866_v61 = vld [vmem:[#allocation7 + $0xac] ss:$16 sps:$4 sm:$0xff]   ;;  %v8861_v62 = vld [vmem:[#allocation7 + $0xa0] ss:$16 sps:$4 sm:$0xff]  }
 0x14d   :  { %1686 = vmatpush1.bf16.msra.mxu0 %v8767_v63  ;;  %1858 = vmatpush1.bf16.msra.mxu1 %v8770_v0  ;;  %v8864_v63 = vld [vmem:[#allocation7 + $0xa8] ss:$16 sps:$4 sm:$0xff]   ;;  %v8869_v0 = vld [vmem:[#allocation7 + $0xc4] ss:$16 sps:$4 sm:$0xff]  }
 0x14e   :  { %1687 = vmatprep.subr.bf16.mxu0 %v8775_v1  ;;  %1859 = vmatprep.subr.bf16.mxu1 %v8778_v2  ;;  %v8872_v1 = vld [vmem:[#allocation7 + $0xcc] ss:$16 sps:$4 sm:$0xff]   ;;  %v8867_v2 = vld [vmem:[#allocation7 + $0xc0] ss:$16 sps:$4 sm:$0xff]  }
 0x151   :  { %1688 = vmatpush1.bf16.msra.mxu0 %v8773_v3  ;;  %1860 = vmatpush1.bf16.msra.mxu1 %v8776_v4  ;;  %v8870_v3 = vld [vmem:[#allocation7 + $0xc8] ss:$16 sps:$4 sm:$0xff]   ;;  %v8875_v4 = vld [vmem:[#allocation7 + $0xe4] ss:$16 sps:$4 sm:$0xff]  }
 0x152   :  { %1700 = vmatprep.subr.bf16.mxu0 %v8784_v5  ;;  %1872 = vmatprep.subr.bf16.mxu1 %v8787_v7  ;;  %v8878_v5 = vld [vmem:[#allocation7 + $0xec] ss:$16 sps:$4 sm:$0xff]   ;;  %v8876_v7 = vld [vmem:[#allocation7 + $0xe8] ss:$16 sps:$4 sm:$0xff]  }
 0x154   :  { %1690 = vmatmul.mubr.bf16.vlgmr.msra.gmra.mrb[0].mxu0 %v8779_v6  ;;  %1862 = vmatmul.mubr.bf16.vlgmr.msra.gmra.mrb[0].mxu1 %v8779_v6  ;;  %v8873_v6 = vld [vmem:[#allocation7 + $0xe0] ss:$16 sps:$4 sm:$0xff]  }
 0x155   :  { %1701 = vmatpush1.bf16.msra.mxu0 %v8782_v8  ;;  %1873 = vmatpush1.bf16.msra.mxu1 %v8785_v9  ;;  %v8881_v8 = vld [vmem:[#allocation7 + $0x104] ss:$16 sps:$4 sm:$0xff]   ;;  %v8884_v9 = vld [vmem:[#allocation7 + $0x10c] ss:$16 sps:$4 sm:$0xff]  }
 0x156   :  { %1702 = vmatprep.subr.bf16.mxu0 %v8790_v10  ;;  %1874 = vmatprep.subr.bf16.mxu1 %v8793_v11  ;;  %v8879_v10 = vld [vmem:[#allocation7 + $0x100] ss:$16 sps:$4 sm:$0xff]   ;;  %v8882_v11 = vld [vmem:[#allocation7 + $0x108] ss:$16 sps:$4 sm:$0xff]  }
 0x157   :  { %1732 = vmatprep.mubr.bf16.mxu0 %v10047_v18  ;;  %1904 = vmatprep.mubr.bf16.mxu1 %v10047_v18  ;;  %v8891_v18 = vld [vmem:[#allocation7 + $0x140] ss:$16 sps:$4 sm:$0xff]  }
 0x159   :  { %1703 = vmatpush1.bf16.msra.mxu0 %v8788_v12  ;;  %1875 = vmatpush1.bf16.msra.mxu1 %v8791_v13  ;;  %v8887_v12 = vld [vmem:[#allocation7 + $0x124] ss:$16 sps:$4 sm:$0xff]   ;;  %v8890_v13 = vld [vmem:[#allocation7 + $0x12c] ss:$16 sps:$4 sm:$0xff]  }
 0x15a   :  { %1704 = vmatprep.subr.bf16.mxu0 %v8796_v14  ;;  %1876 = vmatprep.subr.bf16.mxu1 %v8799_v15  ;;  %v8885_v14 = vld [vmem:[#allocation7 + $0x120] ss:$16 sps:$4 sm:$0xff]   ;;  %v8888_v15 = vld [vmem:[#allocation7 + $0x128] ss:$16 sps:$4 sm:$0xff]  }
 0x15d   :  { %1705 = vmatpush1.bf16.msra.mxu0 %v8794_v16  ;;  %1877 = vmatpush1.bf16.msra.mxu1 %v8797_v17  ;;  %v8893_v16 = vld [vmem:[#allocation7 + $0x144] ss:$16 sps:$4 sm:$0xff]   ;;  %v8896_v17 = vld [vmem:[#allocation7 + $0x14c] ss:$16 sps:$4 sm:$0xff]  }
 0x15e   :  { %1706 = vmatprep.subr.bf16.mxu0 %v8802_v19  ;;  %1878 = vmatprep.subr.bf16.mxu1 %v8805_v20  ;;  %v8894_v19 = vld [vmem:[#allocation7 + $0x148] ss:$16 sps:$4 sm:$0xff]   ;;  %v8899_v20 = vld [vmem:[#allocation7 + $0x164] ss:$16 sps:$4 sm:$0xff]  }
 0x161   :  { %1707 = vmatpush1.bf16.msra.mxu0 %v8800_v21  ;;  %1879 = vmatpush1.bf16.msra.mxu1 %v8803_v22  ;;  %v8902_v21 = vld [vmem:[#allocation7 + $0x16c] ss:$16 sps:$4 sm:$0xff]   ;;  %v8897_v22 = vld [vmem:[#allocation7 + $0x160] ss:$16 sps:$4 sm:$0xff]  }
 0x162   :  { %1708 = vmatprep.subr.bf16.mxu0 %v8808_v23  ;;  %1880 = vmatprep.subr.bf16.mxu1 %v8811_v24  ;;  %v8900_v23 = vld [vmem:[#allocation7 + $0x168] ss:$16 sps:$4 sm:$0xff]   ;;  %v8905_v24 = vld [vmem:[#allocation7 + $0x184] ss:$16 sps:$4 sm:$0xff]  }
 0x165   :  { %1709 = vmatpush1.bf16.msra.mxu0 %v8806_v25  ;;  %1881 = vmatpush1.bf16.msra.mxu1 %v8809_v26  ;;  %v8908_v25 = vld [vmem:[#allocation7 + $0x18c] ss:$16 sps:$4 sm:$0xff]   ;;  %v8903_v26 = vld [vmem:[#allocation7 + $0x180] ss:$16 sps:$4 sm:$0xff]  }
 0x166   :  { %1710 = vmatprep.subr.bf16.mxu0 %v8814_v27  ;;  %1882 = vmatprep.subr.bf16.mxu1 %v8817_v28  ;;  %v8906_v27 = vld [vmem:[#allocation7 + $0x188] ss:$16 sps:$4 sm:$0xff]   ;;  %v8911_v28 = vld [vmem:[#allocation7 + $0x1a4] ss:$16 sps:$4 sm:$0xff]  }
 0x169   :  { %1711 = vmatpush1.bf16.msra.mxu0 %v8812_v29  ;;  %1883 = vmatpush1.bf16.msra.mxu1 %v8815_v30  ;;  %v8914_v29 = vld [vmem:[#allocation7 + $0x1ac] ss:$16 sps:$4 sm:$0xff]   ;;  %v8909_v30 = vld [vmem:[#allocation7 + $0x1a0] ss:$16 sps:$4 sm:$0xff]  }
 0x16a   :  { %1712 = vmatprep.subr.bf16.mxu0 %v8820_v31  ;;  %1884 = vmatprep.subr.bf16.mxu1 %v8823_v32  ;;  %v8912_v31 = vld [vmem:[#allocation7 + $0x1a8] ss:$16 sps:$4 sm:$0xff]   ;;  %v8917_v32 = vld [vmem:[#allocation7 + $0x1c4] ss:$16 sps:$4 sm:$0xff]  }
 0x16d   :  { %1713 = vmatpush1.bf16.msra.mxu0 %v8818_v33  ;;  %1885 = vmatpush1.bf16.msra.mxu1 %v8821_v34  ;;  %v8920_v33 = vld [vmem:[#allocation7 + $0x1cc] ss:$16 sps:$4 sm:$0xff]   ;;  %v8915_v34 = vld [vmem:[#allocation7 + $0x1c0] ss:$16 sps:$4 sm:$0xff]  }
 0x16e   :  { %1714 = vmatprep.subr.bf16.mxu0 %v8826_v35  ;;  %1886 = vmatprep.subr.bf16.mxu1 %v8829_v36  ;;  %v8918_v35 = vld [vmem:[#allocation7 + $0x1c8] ss:$16 sps:$4 sm:$0xff]   ;;  %v8923_v36 = vld [vmem:[#allocation7 + $0x1e4] ss:$16 sps:$4 sm:$0xff]  }
 0x171   :  { %1715 = vmatpush1.bf16.msra.mxu0 %v8824_v37  ;;  %1887 = vmatpush1.bf16.msra.mxu1 %v8827_v38  ;;  %v8926_v37 = vld [vmem:[#allocation7 + $0x1ec] ss:$16 sps:$4 sm:$0xff]   ;;  %v8921_v38 = vld [vmem:[#allocation7 + $0x1e0] ss:$16 sps:$4 sm:$0xff]  }
 0x172   :  { %2733 = vmatprep.subr.bf16.mxu0 %v8833_v39  ;;  %2819 = vmatprep.subr.bf16.mxu1 %v8836_v40  ;;  %v8924_v39 = vld [vmem:[#allocation7 + $0x1e8] ss:$16 sps:$4 sm:$0xff]   ;;  %v8929_v40 = vld [vmem:[#allocation7 + $0x204] ss:$16 sps:$4 sm:$0xff]  }
 0x174   :  { %1733 = vmatmul.mubr.bf16.vlgmr.msra.gmra.mrb[0].mxu0 %v8830_v41  ;;  %1905 = vmatmul.mubr.bf16.vlgmr.msra.gmra.mrb[0].mxu1 %v8830_v41  ;;  %v8932_v41 = vld [vmem:[#allocation7 + $0x20c] ss:$16 sps:$4 sm:$0xff]  }
 0x175   :  { %2734 = vmatpush1.bf16.msra.mxu0 %v8831_v42  ;;  %2820 = vmatpush1.bf16.msra.mxu1 %v8834_v43  ;;  %v395_v42 = vlaneseq }
 0x176   :  { %2735 = vmatprep.subr.bf16.mxu0 %v8839_v44  ;;  %2821 = vmatprep.subr.bf16.mxu1 %v8842_v45  ;;  %v393_v44 = vld [vmem:[%s10426_s8] sm:$0xf] }
 0x177   :  { %v396_v43 = vshrl.u32 %v395_v42, 7  ;;  %v8983_v42 = vld [vmem:[#allocation7 + $0x324] ss:$16 sps:$4 sm:$0xff]  }
 0x179   :  { %2736 = vmatpush1.bf16.msra.mxu0 %v8837_v46  ;;  %2822 = vmatpush1.bf16.msra.mxu1 %v8840_v47  ;;  %v10264_v45 = vsub.s32 0, %v396_v43  ;;  %v10266_v46 = vsub.s32 2, %v396_v43  ;;  %v10268_v47 = vsub.s32 1, %v396_v43 }
 0x17a   :  { %2737 = vmatprep.subr.bf16.mxu0 %v8845_v48  ;;  %2823 = vmatprep.subr.bf16.mxu1 %v8848_v49  ;;  %v10270_v48 = vsub.s32 3, %v396_v43  ;;  %v8986_v43 = vld [vmem:[#allocation7 + $0x32c] ss:$16 sps:$4 sm:$0xff]  }
 0x17b   :  { %v398_v49 = vrot.slane %v393_v44, %v10264_v45 }
 0x17d   :  { %2738 = vmatpush1.bf16.msra.mxu0 %v8843_v50  ;;  %2824 = vmatpush1.bf16.msra.mxu1 %v8846_v51  ;;  %v406_v50 = vrot.slane %v393_v44, %v10266_v46  ;;  %v402_v51 = vrot.slane %v393_v44, %v10268_v47 }
 0x17e   :  { %2739 = vmatprep.subr.bf16.mxu0 %v8851_v52  ;;  %2825 = vmatprep.subr.bf16.mxu1 %v8854_v53  ;;  %v410_v52 = vrot.slane %v393_v44, %v10270_v48  ;;  %v8981_v44 = vld [vmem:[#allocation7 + $0x320] ss:$16 sps:$4 sm:$0xff]  }
 0x181   :  { %2740 = vmatpush1.bf16.msra.mxu0 %v8849_v54  ;;  %2826 = vmatpush1.bf16.msra.mxu1 %v8852_v55 }
 0x182   :  { %2741 = vmatprep.subr.bf16.mxu0 %v8857_v56  ;;  %2827 = vmatprep.subr.bf16.mxu1 %v8860_v57 }
 0x185   :  { %2742 = vmatpush1.bf16.msra.mxu0 %v8855_v58  ;;  %2828 = vmatpush1.bf16.msra.mxu1 %v8858_v59 }
 0x186   :  { %2743 = vmatprep.subr.bf16.mxu0 %v8863_v60  ;;  %2829 = vmatprep.subr.bf16.mxu1 %v8866_v61 }
 0x189   :  { %2744 = vmatpush1.bf16.msra.mxu0 %v8861_v62  ;;  %2830 = vmatpush1.bf16.msra.mxu1 %v8864_v63 }
 0x18a   :  { %2745 = vmatprep.subr.bf16.mxu0 %v8869_v0  ;;  %2831 = vmatprep.subr.bf16.mxu1 %v8872_v1 }
 0x18d   :  { %2746 = vmatpush1.bf16.msra.mxu0 %v8867_v2  ;;  %2832 = vmatpush1.bf16.msra.mxu1 %v8870_v3 }
 0x18e   :  { %2747 = vmatprep.subr.bf16.mxu0 %v8875_v4  ;;  %2833 = vmatprep.subr.bf16.mxu1 %v8878_v5  ;;  %v8927_v5 = vld [vmem:[#allocation7 + $0x200] ss:$16 sps:$4 sm:$0xff]  }
 0x191   :  { %2748 = vmatpush1.bf16.msra.mxu0 %v8873_v6  ;;  %2834 = vmatpush1.bf16.msra.mxu1 %v8876_v7  ;;  %v8930_v6 = vld [vmem:[#allocation7 + $0x208] ss:$16 sps:$4 sm:$0xff]   ;;  %v9022_v7 = vld [vmem:[#allocation7 + $0x3ec] ss:$16 sps:$4 sm:$0xff]  }
 0x192   :  { %2749 = vmatprep.subr.bf16.mxu0 %v8881_v8  ;;  %2835 = vmatprep.subr.bf16.mxu1 %v8884_v9  ;;  %v8935_v9 = vld [vmem:[#allocation7 + $0x224] ss:$16 sps:$4 sm:$0xff]   ;;  %v9041_v8 = vld [vmem:[#allocation8 + $0x60] ss:$16 sps:$4 sm:$0xff]  }
 0x195   :  { %2750 = vmatpush1.bf16.msra.mxu0 %v8879_v10  ;;  %2836 = vmatpush1.bf16.msra.mxu1 %v8882_v11  ;;  %v8938_v10 = vld [vmem:[#allocation7 + $0x22c] ss:$16 sps:$4 sm:$0xff]   ;;  %v10048_v11 = vmov 1.0|1.0  }
 0x196   :  { %2751 = vmatprep.subr.bf16.mxu0 %v8887_v12  ;;  %2837 = vmatprep.subr.bf16.mxu1 %v8890_v13  ;;  %v8933_v12 = vld [vmem:[#allocation7 + $0x220] ss:$16 sps:$4 sm:$0xff]   ;;  %v8936_v13 = vld [vmem:[#allocation7 + $0x228] ss:$16 sps:$4 sm:$0xff]  }
 0x199   :  { %2752 = vmatpush1.bf16.msra.mxu0 %v8885_v14  ;;  %2838 = vmatpush1.bf16.msra.mxu1 %v8888_v15  ;;  %v8941_v14 = vld [vmem:[#allocation7 + $0x244] ss:$16 sps:$4 sm:$0xff]   ;;  %v8944_v15 = vld [vmem:[#allocation7 + $0x24c] ss:$16 sps:$4 sm:$0xff]  }
 0x19a   :  { %2753 = vmatprep.subr.bf16.mxu0 %v8893_v16  ;;  %2839 = vmatprep.subr.bf16.mxu1 %v8896_v17  ;;  %v8939_v16 = vld [vmem:[#allocation7 + $0x240] ss:$16 sps:$4 sm:$0xff]   ;;  %v8942_v17 = vld [vmem:[#allocation7 + $0x248] ss:$16 sps:$4 sm:$0xff]  }
 0x19d   :  { %2754 = vmatpush1.bf16.msra.mxu0 %v8891_v18  ;;  %2840 = vmatpush1.bf16.msra.mxu1 %v8894_v19  ;;  %v8947_v18 = vld [vmem:[#allocation7 + $0x264] ss:$16 sps:$4 sm:$0xff]   ;;  %v8950_v19 = vld [vmem:[#allocation7 + $0x26c] ss:$16 sps:$4 sm:$0xff]  }
 0x19e   :  { %2755 = vmatprep.subr.bf16.mxu0 %v8899_v20  ;;  %2841 = vmatprep.subr.bf16.mxu1 %v8902_v21  ;;  %v8945_v20 = vld [vmem:[#allocation7 + $0x260] ss:$16 sps:$4 sm:$0xff]   ;;  %v8948_v21 = vld [vmem:[#allocation7 + $0x268] ss:$16 sps:$4 sm:$0xff]  }
 0x1a1   :  { %2756 = vmatpush1.bf16.msra.mxu0 %v8897_v22  ;;  %2842 = vmatpush1.bf16.msra.mxu1 %v8900_v23  ;;  %v8953_v22 = vld [vmem:[#allocation7 + $0x284] ss:$16 sps:$4 sm:$0xff]   ;;  %v8956_v23 = vld [vmem:[#allocation7 + $0x28c] ss:$16 sps:$4 sm:$0xff]  }
 0x1a2   :  { %2757 = vmatprep.subr.bf16.mxu0 %v8905_v24  ;;  %2843 = vmatprep.subr.bf16.mxu1 %v8908_v25  ;;  %v8951_v24 = vld [vmem:[#allocation7 + $0x280] ss:$16 sps:$4 sm:$0xff]   ;;  %v8954_v25 = vld [vmem:[#allocation7 + $0x288] ss:$16 sps:$4 sm:$0xff]  }
 0x1a5   :  { %2758 = vmatpush1.bf16.msra.mxu0 %v8903_v26  ;;  %2844 = vmatpush1.bf16.msra.mxu1 %v8906_v27  ;;  %v8959_v26 = vld [vmem:[#allocation7 + $0x2a4] ss:$16 sps:$4 sm:$0xff]   ;;  %v8962_v27 = vld [vmem:[#allocation7 + $0x2ac] ss:$16 sps:$4 sm:$0xff]  }
 0x1a6   :  { %2759 = vmatprep.subr.bf16.mxu0 %v8911_v28  ;;  %2845 = vmatprep.subr.bf16.mxu1 %v8914_v29  ;;  %v8957_v28 = vld [vmem:[#allocation7 + $0x2a0] ss:$16 sps:$4 sm:$0xff]   ;;  %v8960_v29 = vld [vmem:[#allocation7 + $0x2a8] ss:$16 sps:$4 sm:$0xff]  }
 0x1a9   :  { %2760 = vmatpush1.bf16.msra.mxu0 %v8909_v30  ;;  %2846 = vmatpush1.bf16.msra.mxu1 %v8912_v31  ;;  %v8965_v30 = vld [vmem:[#allocation7 + $0x2c4] ss:$16 sps:$4 sm:$0xff]   ;;  %v8968_v31 = vld [vmem:[#allocation7 + $0x2cc] ss:$16 sps:$4 sm:$0xff]  }
 0x1aa   :  { %2761 = vmatprep.subr.bf16.mxu0 %v8917_v32  ;;  %2847 = vmatprep.subr.bf16.mxu1 %v8920_v33  ;;  %v8963_v32 = vld [vmem:[#allocation7 + $0x2c0] ss:$16 sps:$4 sm:$0xff]   ;;  %v8966_v33 = vld [vmem:[#allocation7 + $0x2c8] ss:$16 sps:$4 sm:$0xff]  }
 0x1ad   :  { %2762 = vmatpush1.bf16.msra.mxu0 %v8915_v34  ;;  %2848 = vmatpush1.bf16.msra.mxu1 %v8918_v35  ;;  %v8971_v34 = vld [vmem:[#allocation7 + $0x2e4] ss:$16 sps:$4 sm:$0xff]   ;;  %v8974_v35 = vld [vmem:[#allocation7 + $0x2ec] ss:$16 sps:$4 sm:$0xff]  }
 0x1ae   :  { %2763 = vmatprep.subr.bf16.mxu0 %v8923_v36  ;;  %2849 = vmatprep.subr.bf16.mxu1 %v8926_v37  ;;  %v8969_v36 = vld [vmem:[#allocation7 + $0x2e0] ss:$16 sps:$4 sm:$0xff]   ;;  %v8972_v37 = vld [vmem:[#allocation7 + $0x2e8] ss:$16 sps:$4 sm:$0xff]  }
 0x1b1   :  { %2764 = vmatpush1.bf16.msra.mxu0 %v8921_v38  ;;  %2850 = vmatpush1.bf16.msra.mxu1 %v8924_v39  ;;  %v8977_v38 = vld [vmem:[#allocation7 + $0x304] ss:$16 sps:$4 sm:$0xff]   ;;  %v8980_v39 = vld [vmem:[#allocation7 + $0x30c] ss:$16 sps:$4 sm:$0xff]  }
 0x1b2   :  { %2776 = vmatprep.subr.bf16.mxu0 %v8929_v40  ;;  %2862 = vmatprep.subr.bf16.mxu1 %v8932_v41  ;;  %v8975_v40 = vld [vmem:[#allocation7 + $0x300] ss:$16 sps:$4 sm:$0xff]   ;;  %v8978_v41 = vld [vmem:[#allocation7 + $0x308] ss:$16 sps:$4 sm:$0xff]  }
 0x247   :  { %v1734_v53 = vpop.f32.mrb[0].mxu0  ;;  %v1906_v54 = vpop.f32.mrb[0].mxu1 }
 0x248   :  { %v8353_v55 = vadd.f32 %v1734_v53, %v398_v49  ;;  %v8357_v56 = vadd.f32 %v1906_v54, %v406_v50  ;;  %v1736_v57 = vpop.f32.mrb[1].mxu0  ;;  %v1908_v58 = vpop.f32.mrb[1].mxu1  ;;  %v8990_v53 = vld [vmem:[#allocation7 + $0x348] ss:$16 sps:$4 sm:$0xff]   ;;  %v8995_v54 = vld [vmem:[#allocation7 + $0x364] ss:$16 sps:$4 sm:$0xff]  }
 0x249   :  { %v1738_v59 = vpop.f32.mrb[2].mxu0  ;;  %v1910_v60 = vpop.f32.mrb[2].mxu1  ;;  %v8354_v61 = vadd.f32 %v1736_v57, %v402_v51  ;;  %v8358_v62 = vadd.f32 %v1908_v58, %v410_v52  ;;  %v8996_v57 = vld [vmem:[#allocation7 + $0x368] ss:$16 sps:$4 sm:$0xff]   ;;  %v9001_v58 = vld [vmem:[#allocation7 + $0x384] ss:$16 sps:$4 sm:$0xff]  }
 0x24a   :  { %v8355_v63 = vadd.f32 %v1738_v59, %v398_v49  ;;  %v8359_v0 = vadd.f32 %v1910_v60, %v406_v50  ;;  %v1740_v1 = vpop.f32.mrb[3].mxu0  ;;  %v1912_v2 = vpop.f32.mrb[3].mxu1  ;;  %vm1915_vm0 = vcmp.ge.f32.partialorder %v8353_v55, 1.0  ;;  %vm1917_vm1 = vcmp.ge.f32.partialorder %v8357_v56, 1.0  ;;  %v8984_v49 = vld [vmem:[#allocation7 + $0x328] ss:$16 sps:$4 sm:$0xff]  }
 0x24b   :  { %v8356_v3 = vadd.f32 %v1740_v1, %v402_v51  ;;  %v8360_v4 = vadd.f32 %v1912_v2, %v410_v52  ;;  %vm1916_vm7 = vcmp.ge.f32.partialorder %v8354_v61, 1.0  ;;  %vm1918_vm9 = vcmp.ge.f32.partialorder %v8358_v62, 1.0  ;;  %v8989_v50 = vld [vmem:[#allocation7 + $0x344] ss:$16 sps:$4 sm:$0xff]   ;;  %v8992_v51 = vld [vmem:[#allocation7 + $0x34c] ss:$16 sps:$4 sm:$0xff]  }
 0x24c   :  { %vm1919_vm2 = vcmp.ge.f32.partialorder %v8355_v63, 1.0  ;;  %vm1921_vm3 = vcmp.ge.f32.partialorder %v8359_v0, 1.0  ;;  %v8987_v52 = vld [vmem:[#allocation7 + $0x340] ss:$16 sps:$4 sm:$0xff]   ;;  %v8998_v55 = vld [vmem:[#allocation7 + $0x36c] ss:$16 sps:$4 sm:$0xff]  }
 0x24d   :  { %vm10276_vm4 = vmpackc.low %vm1919_vm2, %vm1915_vm0  ;;  %vm1920_vm5 = vcmp.ge.f32.partialorder %v8356_v3, 1.0  ;;  %vm1922_vm6 = vcmp.ge.f32.partialorder %v8360_v4, 1.0  ;;  %v8993_v56 = vld [vmem:[#allocation7 + $0x360] ss:$16 sps:$4 sm:$0xff]   ;;  %v9004_v59 = vld [vmem:[#allocation7 + $0x38c] ss:$16 sps:$4 sm:$0xff]  }
 0x24e   :  { %vm10280_vm8 = vmpackc.low %vm1921_vm3, %vm1917_vm1  ;;  %v8999_v60 = vld [vmem:[#allocation7 + $0x380] ss:$16 sps:$4 sm:$0xff]   ;;  %v9002_v61 = vld [vmem:[#allocation7 + $0x388] ss:$16 sps:$4 sm:$0xff]  }
 0x24f   :  { %vm7634_vm10 = vmpackc.low %vm1920_vm5, %vm1916_vm7  ;;  %v9007_v62 = vld [vmem:[#allocation7 + $0x3a4] ss:$16 sps:$4 sm:$0xff]   ;;  %v9010_v63 = vld [vmem:[#allocation7 + $0x3ac] ss:$16 sps:$4 sm:$0xff]  }
 0x250   :  { %vm7638_vm11 = vmpackc.low %vm1922_vm6, %vm1918_vm9  ;;  %7635 = vmatprep.mubr.msk.bf16.mxu0 %vm7634_vm10, %v10048_v11  ;;  %7643 = vmatprep.mubr.msk.bf16.mxu1 %vm7634_vm10, %v10048_v11  ;;  %v9005_v0 = vld [vmem:[#allocation7 + $0x3a0] ss:$16 sps:$4 sm:$0xff]   ;;  %v9008_v1 = vld [vmem:[#allocation7 + $0x3a8] ss:$16 sps:$4 sm:$0xff]  }
 0x251   :  { %7637 = vmatmul.mubr.msk.bf16.vlgmr.msra.gmra.mrb[4].mxu0 %vm10276_vm4, %v10048_v11  ;;  %7645 = vmatmul.mubr.msk.bf16.vlgmr.msra.gmra.mrb[4].mxu1 %vm10276_vm4, %v10048_v11  ;;  %v9013_v2 = vld [vmem:[#allocation7 + $0x3c4] ss:$16 sps:$4 sm:$0xff]   ;;  %v9016_v3 = vld [vmem:[#allocation7 + $0x3cc] ss:$16 sps:$4 sm:$0xff]   ;;  %v9011_v4 = vld [vmem:[#allocation7 + $0x3c0] ss:$16 sps:$4 sm:$0xff]  }
 0x252   :  { %2777 = vmatpush1.bf16.msra.mxu0 %v8927_v5  ;;  %2863 = vmatpush1.bf16.msra.mxu1 %v8930_v6  ;;  %v9014_v5 = vld [vmem:[#allocation7 + $0x3c8] ss:$16 sps:$4 sm:$0xff]   ;;  %v9019_v6 = vld [vmem:[#allocation7 + $0x3e4] ss:$16 sps:$4 sm:$0xff]  }
 0x253   :  { %7639 = vmatprep.mubr.msk.bf16.mxu0 %vm7638_vm11, %v10048_v11  ;;  %7647 = vmatprep.mubr.msk.bf16.mxu1 %vm7638_vm11, %v10048_v11 }
 0x254   :  { %2778 = vmatprep.subr.bf16.mxu0 %v8935_v9  ;;  %2864 = vmatprep.subr.bf16.mxu1 %v8938_v10  ;;  %v9017_v9 = vld [vmem:[#allocation7 + $0x3e0] ss:$16 sps:$4 sm:$0xff]   ;;  %v9020_v10 = vld [vmem:[#allocation7 + $0x3e8] ss:$16 sps:$4 sm:$0xff]  }
 0x256   :  { %2779 = vmatpush1.bf16.msra.mxu0 %v8933_v12  ;;  %2865 = vmatpush1.bf16.msra.mxu1 %v8936_v13  ;;  %v9025_v12 = vld [vmem:[#allocation8 + $0x4] ss:$16 sps:$4 sm:$0xff]   ;;  %v9028_v13 = vld [vmem:[#allocation8 + $0xc] ss:$16 sps:$4 sm:$0xff]  }
 0x257   :  { %2780 = vmatprep.subr.bf16.mxu0 %v8941_v14  ;;  %2866 = vmatprep.subr.bf16.mxu1 %v8944_v15  ;;  %v9023_v14 = vld [vmem:[#allocation8] ss:$16 sps:$4 sm:$0xff]   ;;  %v9026_v15 = vld [vmem:[#allocation8 + $0x8] ss:$16 sps:$4 sm:$0xff]  }
 0x25a   :  { %2781 = vmatpush1.bf16.msra.mxu0 %v8939_v16  ;;  %2867 = vmatpush1.bf16.msra.mxu1 %v8942_v17  ;;  %v9031_v16 = vld [vmem:[#allocation8 + $0x24] ss:$16 sps:$4 sm:$0xff]   ;;  %v9034_v17 = vld [vmem:[#allocation8 + $0x2c] ss:$16 sps:$4 sm:$0xff]  }
 0x25b   :  { %2782 = vmatprep.subr.bf16.mxu0 %v8947_v18  ;;  %2868 = vmatprep.subr.bf16.mxu1 %v8950_v19  ;;  %v9029_v18 = vld [vmem:[#allocation8 + $0x20] ss:$16 sps:$4 sm:$0xff]   ;;  %v9032_v19 = vld [vmem:[#allocation8 + $0x28] ss:$16 sps:$4 sm:$0xff]  }
 0x25e   :  { %2783 = vmatpush1.bf16.msra.mxu0 %v8945_v20  ;;  %2869 = vmatpush1.bf16.msra.mxu1 %v8948_v21  ;;  %v9037_v20 = vld [vmem:[#allocation8 + $0x44] ss:$16 sps:$4 sm:$0xff]   ;;  %v9040_v21 = vld [vmem:[#allocation8 + $0x4c] ss:$16 sps:$4 sm:$0xff]  }
 0x25f   :  { %2784 = vmatprep.subr.bf16.mxu0 %v8953_v22  ;;  %2870 = vmatprep.subr.bf16.mxu1 %v8956_v23  ;;  %v9035_v22 = vld [vmem:[#allocation8 + $0x40] ss:$16 sps:$4 sm:$0xff]   ;;  %v9038_v23 = vld [vmem:[#allocation8 + $0x48] ss:$16 sps:$4 sm:$0xff]  }
 0x262   :  { %2785 = vmatpush1.bf16.msra.mxu0 %v8951_v24  ;;  %2871 = vmatpush1.bf16.msra.mxu1 %v8954_v25  ;;  %v9043_v24 = vld [vmem:[#allocation8 + $0x64] ss:$16 sps:$4 sm:$0xff]   ;;  %v9046_v25 = vld [vmem:[#allocation8 + $0x6c] ss:$16 sps:$4 sm:$0xff]  }
 0x263   :  { %2786 = vmatprep.subr.bf16.mxu0 %v8959_v26  ;;  %2872 = vmatprep.subr.bf16.mxu1 %v8962_v27  ;;  %v9044_v26 = vld [vmem:[#allocation8 + $0x68] ss:$16 sps:$4 sm:$0xff]   ;;  %v9049_v27 = vld [vmem:[#allocation8 + $0x84] ss:$16 sps:$4 sm:$0xff]  }
 0x266   :  { %2787 = vmatpush1.bf16.msra.mxu0 %v8957_v28  ;;  %2873 = vmatpush1.bf16.msra.mxu1 %v8960_v29  ;;  %v9052_v28 = vld [vmem:[#allocation8 + $0x8c] ss:$16 sps:$4 sm:$0xff]   ;;  %v9047_v29 = vld [vmem:[#allocation8 + $0x80] ss:$16 sps:$4 sm:$0xff]  }
 0x267   :  { %2788 = vmatprep.subr.bf16.mxu0 %v8965_v30  ;;  %2874 = vmatprep.subr.bf16.mxu1 %v8968_v31  ;;  %v9050_v30 = vld [vmem:[#allocation8 + $0x88] ss:$16 sps:$4 sm:$0xff]   ;;  %v9055_v31 = vld [vmem:[#allocation8 + $0xa4] ss:$16 sps:$4 sm:$0xff]  }
 0x26a   :  { %2789 = vmatpush1.bf16.msra.mxu0 %v8963_v32  ;;  %2875 = vmatpush1.bf16.msra.mxu1 %v8966_v33  ;;  %v9058_v32 = vld [vmem:[#allocation8 + $0xac] ss:$16 sps:$4 sm:$0xff]   ;;  %v9053_v33 = vld [vmem:[#allocation8 + $0xa0] ss:$16 sps:$4 sm:$0xff]  }
 0x26b   :  { %2790 = vmatprep.subr.bf16.mxu0 %v8971_v34  ;;  %2876 = vmatprep.subr.bf16.mxu1 %v8974_v35  ;;  %v9056_v34 = vld [vmem:[#allocation8 + $0xa8] ss:$16 sps:$4 sm:$0xff]   ;;  %v9061_v35 = vld [vmem:[#allocation8 + $0xc4] ss:$16 sps:$4 sm:$0xff]  }
 0x26e   :  { %2791 = vmatpush1.bf16.msra.mxu0 %v8969_v36  ;;  %2877 = vmatpush1.bf16.msra.mxu1 %v8972_v37  ;;  %v9064_v36 = vld [vmem:[#allocation8 + $0xcc] ss:$16 sps:$4 sm:$0xff]   ;;  %v9059_v37 = vld [vmem:[#allocation8 + $0xc0] ss:$16 sps:$4 sm:$0xff]  }
 0x26f   :  { %2792 = vmatprep.subr.bf16.mxu0 %v8977_v38  ;;  %2878 = vmatprep.subr.bf16.mxu1 %v8980_v39  ;;  %v9062_v38 = vld [vmem:[#allocation8 + $0xc8] ss:$16 sps:$4 sm:$0xff]   ;;  %v9067_v39 = vld [vmem:[#allocation8 + $0xe4] ss:$16 sps:$4 sm:$0xff]  }
 0x272   :  { %2793 = vmatpush1.bf16.msra.mxu0 %v8975_v40  ;;  %2879 = vmatpush1.bf16.msra.mxu1 %v8978_v41  ;;  %v9070_v40 = vld [vmem:[#allocation8 + $0xec] ss:$16 sps:$4 sm:$0xff]   ;;  %v9065_v41 = vld [vmem:[#allocation8 + $0xe0] ss:$16 sps:$4 sm:$0xff]  }
 0x273   :  { %2794 = vmatprep.subr.bf16.mxu0 %v8983_v42  ;;  %2880 = vmatprep.subr.bf16.mxu1 %v8986_v43  ;;  %v9068_v42 = vld [vmem:[#allocation8 + $0xe8] ss:$16 sps:$4 sm:$0xff]   ;;  %v9073_v43 = vld [vmem:[#allocation8 + $0x104] ss:$16 sps:$4 sm:$0xff]  }
 0x276   :  { %2795 = vmatpush1.bf16.msra.mxu0 %v8981_v44  ;;  %2881 = vmatpush1.bf16.msra.mxu1 %v8984_v49  ;;  %v9076_v44 = vld [vmem:[#allocation8 + $0x10c] ss:$16 sps:$4 sm:$0xff]   ;;  %v9071_v49 = vld [vmem:[#allocation8 + $0x100] ss:$16 sps:$4 sm:$0xff]  }
 0x277   :  { %2796 = vmatprep.subr.bf16.mxu0 %v8989_v50  ;;  %2882 = vmatprep.subr.bf16.mxu1 %v8992_v51  ;;  %v9074_v50 = vld [vmem:[#allocation8 + $0x108] ss:$16 sps:$4 sm:$0xff]   ;;  %v9079_v51 = vld [vmem:[#allocation8 + $0x124] ss:$16 sps:$4 sm:$0xff]  }
 0x27a   :  { %2797 = vmatpush1.bf16.msra.mxu0 %v8987_v52  ;;  %2883 = vmatpush1.bf16.msra.mxu1 %v8990_v53  ;;  %v9082_v52 = vld [vmem:[#allocation8 + $0x12c] ss:$16 sps:$4 sm:$0xff]   ;;  %v9077_v53 = vld [vmem:[#allocation8 + $0x120] ss:$16 sps:$4 sm:$0xff]  }
 0x27b   :  { %2798 = vmatprep.subr.bf16.mxu0 %v8995_v54  ;;  %2884 = vmatprep.subr.bf16.mxu1 %v8998_v55  ;;  %v9080_v54 = vld [vmem:[#allocation8 + $0x128] ss:$16 sps:$4 sm:$0xff]   ;;  %v9085_v55 = vld [vmem:[#allocation8 + $0x144] ss:$16 sps:$4 sm:$0xff]  }
 0x27e   :  { %2799 = vmatpush1.bf16.msra.mxu0 %v8993_v56  ;;  %2885 = vmatpush1.bf16.msra.mxu1 %v8996_v57  ;;  %v9088_v56 = vld [vmem:[#allocation8 + $0x14c] ss:$16 sps:$4 sm:$0xff]   ;;  %v9083_v57 = vld [vmem:[#allocation8 + $0x140] ss:$16 sps:$4 sm:$0xff]  }
 0x27f   :  { %2800 = vmatprep.subr.bf16.mxu0 %v9001_v58  ;;  %2886 = vmatprep.subr.bf16.mxu1 %v9004_v59  ;;  %v9086_v58 = vld [vmem:[#allocation8 + $0x148] ss:$16 sps:$4 sm:$0xff]   ;;  %v9091_v59 = vld [vmem:[#allocation8 + $0x164] ss:$16 sps:$4 sm:$0xff]  }
 0x282   :  { %2801 = vmatpush1.bf16.msra.mxu0 %v8999_v60  ;;  %2887 = vmatpush1.bf16.msra.mxu1 %v9002_v61  ;;  %v9094_v60 = vld [vmem:[#allocation8 + $0x16c] ss:$16 sps:$4 sm:$0xff]   ;;  %v9089_v61 = vld [vmem:[#allocation8 + $0x160] ss:$16 sps:$4 sm:$0xff]  }
 0x283   :  { %2802 = vmatprep.subr.bf16.mxu0 %v9007_v62  ;;  %2888 = vmatprep.subr.bf16.mxu1 %v9010_v63  ;;  %v9092_v62 = vld [vmem:[#allocation8 + $0x168] ss:$16 sps:$4 sm:$0xff]   ;;  %v9097_v63 = vld [vmem:[#allocation8 + $0x184] ss:$16 sps:$4 sm:$0xff]  }
 0x286   :  { %2803 = vmatpush1.bf16.msra.mxu0 %v9005_v0  ;;  %2889 = vmatpush1.bf16.msra.mxu1 %v9008_v1  ;;  %v9100_v0 = vld [vmem:[#allocation8 + $0x18c] ss:$16 sps:$4 sm:$0xff]   ;;  %v9095_v1 = vld [vmem:[#allocation8 + $0x180] ss:$16 sps:$4 sm:$0xff]  }
 0x287   :  { %2804 = vmatprep.subr.bf16.mxu0 %v9013_v2  ;;  %2890 = vmatprep.subr.bf16.mxu1 %v9016_v3  ;;  %v9098_v2 = vld [vmem:[#allocation8 + $0x188] ss:$16 sps:$4 sm:$0xff]   ;;  %v9103_v3 = vld [vmem:[#allocation8 + $0x1a4] ss:$16 sps:$4 sm:$0xff]  }
 0x28a   :  { %2805 = vmatpush1.bf16.msra.mxu0 %v9011_v4  ;;  %2891 = vmatpush1.bf16.msra.mxu1 %v9014_v5  ;;  %v9106_v4 = vld [vmem:[#allocation8 + $0x1ac] ss:$16 sps:$4 sm:$0xff]   ;;  %v9101_v5 = vld [vmem:[#allocation8 + $0x1a0] ss:$16 sps:$4 sm:$0xff]  }
 0x28b   :  { %2806 = vmatprep.subr.bf16.mxu0 %v9019_v6  ;;  %2892 = vmatprep.subr.bf16.mxu1 %v9022_v7  ;;  %v9104_v6 = vld [vmem:[#allocation8 + $0x1a8] ss:$16 sps:$4 sm:$0xff]   ;;  %v9109_v7 = vld [vmem:[#allocation8 + $0x1c4] ss:$16 sps:$4 sm:$0xff]  }
 0x28e   :  { %2807 = vmatpush1.bf16.msra.mxu0 %v9017_v9  ;;  %2893 = vmatpush1.bf16.msra.mxu1 %v9020_v10  ;;  %v9112_v9 = vld [vmem:[#allocation8 + $0x1cc] ss:$16 sps:$4 sm:$0xff]   ;;  %v9107_v10 = vld [vmem:[#allocation8 + $0x1c0] ss:$16 sps:$4 sm:$0xff]  }
 0x28f   :  { %3723 = vmatprep.subr.bf16.mxu0 %v9025_v12  ;;  %3809 = vmatprep.subr.bf16.mxu1 %v9028_v13  ;;  %v9110_v12 = vld [vmem:[#allocation8 + $0x1c8] ss:$16 sps:$4 sm:$0xff]   ;;  %v9115_v13 = vld [vmem:[#allocation8 + $0x1e4] ss:$16 sps:$4 sm:$0xff]  }
 0x291   :  { %7641 = vmatmul.mubr.msk.bf16.vlgmr.msra.gmra.mrb[4].mxu0 %vm10280_vm8, %v10048_v11  ;;  %7649 = vmatmul.mubr.msk.bf16.vlgmr.msra.gmra.mrb[4].mxu1 %vm10280_vm8, %v10048_v11 }
 0x292   :  { %3724 = vmatpush1.bf16.msra.mxu0 %v9023_v14  ;;  %3810 = vmatpush1.bf16.msra.mxu1 %v9026_v15  ;;  %v9118_v14 = vld [vmem:[#allocation8 + $0x1ec] ss:$16 sps:$4 sm:$0xff]   ;;  %v9113_v15 = vld [vmem:[#allocation8 + $0x1e0] ss:$16 sps:$4 sm:$0xff]  }
 0x293   :  { %3725 = vmatprep.subr.bf16.mxu0 %v9031_v16  ;;  %3811 = vmatprep.subr.bf16.mxu1 %v9034_v17  ;;  %v9116_v16 = vld [vmem:[#allocation8 + $0x1e8] ss:$16 sps:$4 sm:$0xff]   ;;  %v9121_v17 = vld [vmem:[#allocation8 + $0x204] ss:$16 sps:$4 sm:$0xff]  }
 0x296   :  { %3726 = vmatpush1.bf16.msra.mxu0 %v9029_v18  ;;  %3812 = vmatpush1.bf16.msra.mxu1 %v9032_v19  ;;  %v9124_v18 = vld [vmem:[#allocation8 + $0x20c] ss:$16 sps:$4 sm:$0xff]   ;;  %v2071_v19 = vld [vmem:[%s10427_s9] sm:$0xf] }
 0x297   :  { %3727 = vmatprep.subr.bf16.mxu0 %v9037_v20  ;;  %3813 = vmatprep.subr.bf16.mxu1 %v9040_v21  ;;  %v2076_v20 = vrot.slane %v2071_v19, %v10264_v45  ;;  %v2084_v21 = vrot.slane %v2071_v19, %v10266_v46 }
 0x29a   :  { %3728 = vmatpush1.bf16.msra.mxu0 %v9035_v22  ;;  %3814 = vmatpush1.bf16.msra.mxu1 %v9038_v23  ;;  %v2080_v22 = vrot.slane %v2071_v19, %v10268_v47 }
 0x29b   :  { %3729 = vmatprep.subr.bf16.mxu0 %v9043_v24  ;;  %3815 = vmatprep.subr.bf16.mxu1 %v9046_v25  ;;  %v2088_v25 = vrot.slane %v2071_v19, %v10270_v48  ;;  %v9176_v19 = vld [vmem:[#allocation8 + $0x328] ss:$16 sps:$4 sm:$0xff]  }
 0x29e   :  { %3730 = vmatpush1.bf16.msra.mxu0 %v9041_v8  ;;  %3816 = vmatpush1.bf16.msra.mxu1 %v9044_v26 }
 0x29f   :  { %3731 = vmatprep.subr.bf16.mxu0 %v9049_v27  ;;  %3817 = vmatprep.subr.bf16.mxu1 %v9052_v28 }
 0x2a2   :  { %3732 = vmatpush1.bf16.msra.mxu0 %v9047_v29  ;;  %3818 = vmatpush1.bf16.msra.mxu1 %v9050_v30 }
 0x2a3   :  { %3733 = vmatprep.subr.bf16.mxu0 %v9055_v31  ;;  %3819 = vmatprep.subr.bf16.mxu1 %v9058_v32 }
 0x2a6   :  { %3734 = vmatpush1.bf16.msra.mxu0 %v9053_v33  ;;  %3820 = vmatpush1.bf16.msra.mxu1 %v9056_v34 }
 0x2a7   :  { %3735 = vmatprep.subr.bf16.mxu0 %v9061_v35  ;;  %3821 = vmatprep.subr.bf16.mxu1 %v9064_v36 }
 0x2aa   :  { %3736 = vmatpush1.bf16.msra.mxu0 %v9059_v37  ;;  %3822 = vmatpush1.bf16.msra.mxu1 %v9062_v38 }
 0x2ab   :  { %3737 = vmatprep.subr.bf16.mxu0 %v9067_v39  ;;  %3823 = vmatprep.subr.bf16.mxu1 %v9070_v40  ;;  %v9119_v40 = vld [vmem:[#allocation8 + $0x200] ss:$16 sps:$4 sm:$0xff]  }
 0x2ac   :  { %v9233_v39 = vld [vmem:[#allocation10 + $0x60] ss:$16 sps:$4 sm:$0xff]  }
 0x2ae   :  { %3738 = vmatpush1.bf16.msra.mxu0 %v9065_v41  ;;  %3824 = vmatpush1.bf16.msra.mxu1 %v9068_v42  ;;  %v9122_v41 = vld [vmem:[#allocation8 + $0x208] ss:$16 sps:$4 sm:$0xff]   ;;  %v9127_v42 = vld [vmem:[#allocation8 + $0x224] ss:$16 sps:$4 sm:$0xff]  }
 0x2af   :  { %3739 = vmatprep.subr.bf16.mxu0 %v9073_v43  ;;  %3825 = vmatprep.subr.bf16.mxu1 %v9076_v44  ;;  %v9130_v43 = vld [vmem:[#allocation8 + $0x22c] ss:$16 sps:$4 sm:$0xff]   ;;  %v9125_v44 = vld [vmem:[#allocation8 + $0x220] ss:$16 sps:$4 sm:$0xff]  }
 0x2b2   :  { %3740 = vmatpush1.bf16.msra.mxu0 %v9071_v49  ;;  %3826 = vmatpush1.bf16.msra.mxu1 %v9074_v50  ;;  %v9128_v49 = vld [vmem:[#allocation8 + $0x228] ss:$16 sps:$4 sm:$0xff]   ;;  %v9133_v50 = vld [vmem:[#allocation8 + $0x244] ss:$16 sps:$4 sm:$0xff]  }
 0x2b3   :  { %3741 = vmatprep.subr.bf16.mxu0 %v9079_v51  ;;  %3827 = vmatprep.subr.bf16.mxu1 %v9082_v52  ;;  %v9136_v51 = vld [vmem:[#allocation8 + $0x24c] ss:$16 sps:$4 sm:$0xff]   ;;  %v9131_v52 = vld [vmem:[#allocation8 + $0x240] ss:$16 sps:$4 sm:$0xff]  }
 0x2b6   :  { %3742 = vmatpush1.bf16.msra.mxu0 %v9077_v53  ;;  %3828 = vmatpush1.bf16.msra.mxu1 %v9080_v54  ;;  %v9134_v53 = vld [vmem:[#allocation8 + $0x248] ss:$16 sps:$4 sm:$0xff]   ;;  %v9139_v54 = vld [vmem:[#allocation8 + $0x264] ss:$16 sps:$4 sm:$0xff]  }
 0x2b7   :  { %3743 = vmatprep.subr.bf16.mxu0 %v9085_v55  ;;  %3829 = vmatprep.subr.bf16.mxu1 %v9088_v56  ;;  %v9142_v55 = vld [vmem:[#allocation8 + $0x26c] ss:$16 sps:$4 sm:$0xff]   ;;  %v9137_v56 = vld [vmem:[#allocation8 + $0x260] ss:$16 sps:$4 sm:$0xff]  }
 0x2ba   :  { %3744 = vmatpush1.bf16.msra.mxu0 %v9083_v57  ;;  %3830 = vmatpush1.bf16.msra.mxu1 %v9086_v58  ;;  %v9140_v57 = vld [vmem:[#allocation8 + $0x268] ss:$16 sps:$4 sm:$0xff]   ;;  %v9145_v58 = vld [vmem:[#allocation8 + $0x284] ss:$16 sps:$4 sm:$0xff]  }
 0x2bb   :  { %3745 = vmatprep.subr.bf16.mxu0 %v9091_v59  ;;  %3831 = vmatprep.subr.bf16.mxu1 %v9094_v60  ;;  %v9148_v59 = vld [vmem:[#allocation8 + $0x28c] ss:$16 sps:$4 sm:$0xff]   ;;  %v9143_v60 = vld [vmem:[#allocation8 + $0x280] ss:$16 sps:$4 sm:$0xff]  }
 0x2be   :  { %3746 = vmatpush1.bf16.msra.mxu0 %v9089_v61  ;;  %3832 = vmatpush1.bf16.msra.mxu1 %v9092_v62  ;;  %v9146_v61 = vld [vmem:[#allocation8 + $0x288] ss:$16 sps:$4 sm:$0xff]   ;;  %v9151_v62 = vld [vmem:[#allocation8 + $0x2a4] ss:$16 sps:$4 sm:$0xff]  }
 0x2bf   :  { %3747 = vmatprep.subr.bf16.mxu0 %v9097_v63  ;;  %3833 = vmatprep.subr.bf16.mxu1 %v9100_v0  ;;  %v9154_v63 = vld [vmem:[#allocation8 + $0x2ac] ss:$16 sps:$4 sm:$0xff]   ;;  %v9149_v0 = vld [vmem:[#allocation8 + $0x2a0] ss:$16 sps:$4 sm:$0xff]  }
 0x2c2   :  { %3748 = vmatpush1.bf16.msra.mxu0 %v9095_v1  ;;  %3834 = vmatpush1.bf16.msra.mxu1 %v9098_v2  ;;  %v9152_v1 = vld [vmem:[#allocation8 + $0x2a8] ss:$16 sps:$4 sm:$0xff]   ;;  %v9157_v2 = vld [vmem:[#allocation8 + $0x2c4] ss:$16 sps:$4 sm:$0xff]  }
 0x2c3   :  { %3749 = vmatprep.subr.bf16.mxu0 %v9103_v3  ;;  %3835 = vmatprep.subr.bf16.mxu1 %v9106_v4  ;;  %v9160_v3 = vld [vmem:[#allocation8 + $0x2cc] ss:$16 sps:$4 sm:$0xff]   ;;  %v9155_v4 = vld [vmem:[#allocation8 + $0x2c0] ss:$16 sps:$4 sm:$0xff]  }
 0x2c6   :  { %3750 = vmatpush1.bf16.msra.mxu0 %v9101_v5  ;;  %3836 = vmatpush1.bf16.msra.mxu1 %v9104_v6  ;;  %v9158_v5 = vld [vmem:[#allocation8 + $0x2c8] ss:$16 sps:$4 sm:$0xff]   ;;  %v9163_v6 = vld [vmem:[#allocation8 + $0x2e4] ss:$16 sps:$4 sm:$0xff]  }
 0x2c7   :  { %3751 = vmatprep.subr.bf16.mxu0 %v9109_v7  ;;  %3837 = vmatprep.subr.bf16.mxu1 %v9112_v9  ;;  %v9166_v7 = vld [vmem:[#allocation8 + $0x2ec] ss:$16 sps:$4 sm:$0xff]   ;;  %v9161_v9 = vld [vmem:[#allocation8 + $0x2e0] ss:$16 sps:$4 sm:$0xff]  }
 0x2ca   :  { %3752 = vmatpush1.bf16.msra.mxu0 %v9107_v10  ;;  %3838 = vmatpush1.bf16.msra.mxu1 %v9110_v12  ;;  %v9164_v10 = vld [vmem:[#allocation8 + $0x2e8] ss:$16 sps:$4 sm:$0xff]   ;;  %v9169_v12 = vld [vmem:[#allocation8 + $0x304] ss:$16 sps:$4 sm:$0xff]  }
 0x2cb   :  { %3753 = vmatprep.subr.bf16.mxu0 %v9115_v13  ;;  %3839 = vmatprep.subr.bf16.mxu1 %v9118_v14  ;;  %v9172_v13 = vld [vmem:[#allocation8 + $0x30c] ss:$16 sps:$4 sm:$0xff]   ;;  %v9167_v14 = vld [vmem:[#allocation8 + $0x300] ss:$16 sps:$4 sm:$0xff]  }
 0x2ce   :  { %3754 = vmatpush1.bf16.msra.mxu0 %v9113_v15  ;;  %3840 = vmatpush1.bf16.msra.mxu1 %v9116_v16  ;;  %v9170_v15 = vld [vmem:[#allocation8 + $0x308] ss:$16 sps:$4 sm:$0xff]   ;;  %v9175_v16 = vld [vmem:[#allocation8 + $0x324] ss:$16 sps:$4 sm:$0xff]  }
 0x2cf   :  { %3766 = vmatprep.subr.bf16.mxu0 %v9121_v17  ;;  %3852 = vmatprep.subr.bf16.mxu1 %v9124_v18  ;;  %v9178_v17 = vld [vmem:[#allocation8 + $0x32c] ss:$16 sps:$4 sm:$0xff]   ;;  %v9173_v18 = vld [vmem:[#allocation8 + $0x320] ss:$16 sps:$4 sm:$0xff]  }
 0x364   :  { %v2810_v23 = vpop.f32.mrb[4].mxu0  ;;  %v2896_v24 = vpop.f32.mrb[4].mxu1 }
 0x365   :  { %v8361_v8 = vadd.f32 %v2810_v23, %v2076_v20  ;;  %v2812_v26 = vpop.f32.mrb[5].mxu0  ;;  %v2898_v27 = vpop.f32.mrb[5].mxu1  ;;  %v8365_v28 = vadd.f32 %v2896_v24, %v2084_v21  ;;  %v9182_v23 = vld [vmem:[#allocation8 + $0x348] ss:$16 sps:$4 sm:$0xff]   ;;  %v9187_v24 = vld [vmem:[#allocation8 + $0x364] ss:$16 sps:$4 sm:$0xff]  }
 0x366   :  { %v2814_v29 = vpop.f32.mrb[6].mxu0  ;;  %v2900_v30 = vpop.f32.mrb[6].mxu1  ;;  %v8362_v31 = vadd.f32 %v2812_v26, %v2080_v22  ;;  %v8366_v36 = vadd.f32 %v2898_v27, %v2088_v25  ;;  %v9188_v26 = vld [vmem:[#allocation8 + $0x368] ss:$16 sps:$4 sm:$0xff]   ;;  %v9193_v27 = vld [vmem:[#allocation8 + $0x384] ss:$16 sps:$4 sm:$0xff]  }
 0x367   :  { %v8363_v32 = vadd.f32 %v2814_v29, %v2076_v20  ;;  %v8367_v33 = vadd.f32 %v2900_v30, %v2084_v21  ;;  %v2816_v34 = vpop.f32.mrb[7].mxu0  ;;  %v2902_v35 = vpop.f32.mrb[7].mxu1  ;;  %vm2905_vm12 = vcmp.ge.f32.partialorder %v8361_v8, 1.0  ;;  %vm2907_vm15 = vcmp.ge.f32.partialorder %v8365_v28, 1.0  ;;  %v9181_v20 = vld [vmem:[#allocation8 + $0x344] ss:$16 sps:$4 sm:$0xff]  }
 0x368   :  { %v8364_v37 = vadd.f32 %v2816_v34, %v2080_v22  ;;  %v8368_v38 = vadd.f32 %v2902_v35, %v2088_v25  ;;  %vm2906_vm3 = vcmp.ge.f32.partialorder %v8362_v31, 1.0  ;;  %vm2908_vm5 = vcmp.ge.f32.partialorder %v8366_v36, 1.0  ;;  %v9184_v21 = vld [vmem:[#allocation8 + $0x34c] ss:$16 sps:$4 sm:$0xff]   ;;  %v9179_v22 = vld [vmem:[#allocation8 + $0x340] ss:$16 sps:$4 sm:$0xff]  }
 0x369   :  { %vm2909_vm13 = vcmp.ge.f32.partialorder %v8363_v32, 1.0  ;;  %vm2911_vm14 = vcmp.ge.f32.partialorder %v8367_v33, 1.0  ;;  %v9190_v25 = vld [vmem:[#allocation8 + $0x36c] ss:$16 sps:$4 sm:$0xff]   ;;  %v9185_v8 = vld [vmem:[#allocation8 + $0x360] ss:$16 sps:$4 sm:$0xff]  }
 0x36a   :  { %vm7788_vm0 = vmpackc.low %vm2909_vm13, %vm2905_vm12  ;;  %vm2910_vm1 = vcmp.ge.f32.partialorder %v8364_v37, 1.0  ;;  %vm2912_vm2 = vcmp.ge.f32.partialorder %v8368_v38, 1.0  ;;  %v9196_v28 = vld [vmem:[#allocation8 + $0x38c] ss:$16 sps:$4 sm:$0xff]   ;;  %v9191_v29 = vld [vmem:[#allocation8 + $0x380] ss:$16 sps:$4 sm:$0xff]  }
 0x36b   :  { %vm10307_vm4 = vmpackc.low %vm2911_vm14, %vm2907_vm15  ;;  %v9194_v30 = vld [vmem:[#allocation8 + $0x388] ss:$16 sps:$4 sm:$0xff]   ;;  %v9199_v31 = vld [vmem:[#allocation8 + $0x3a4] ss:$16 sps:$4 sm:$0xff]  }
 0x36c   :  { %vm7786_vm6 = vmpackc.low %vm2910_vm1, %vm2906_vm3  ;;  %v9202_v32 = vld [vmem:[#allocation8 + $0x3ac] ss:$16 sps:$4 sm:$0xff]   ;;  %v9197_v33 = vld [vmem:[#allocation8 + $0x3a0] ss:$16 sps:$4 sm:$0xff]  }
 0x36d   :  { %vm7790_vm7 = vmpackc.low %vm2912_vm2, %vm2908_vm5  ;;  %7787 = vmatprep.mubr.msk.bf16.mxu0 %vm7786_vm6, %v10048_v11  ;;  %7795 = vmatprep.mubr.msk.bf16.mxu1 %vm7786_vm6, %v10048_v11  ;;  %v9200_v34 = vld [vmem:[#allocation8 + $0x3a8] ss:$16 sps:$4 sm:$0xff]   ;;  %v9205_v35 = vld [vmem:[#allocation8 + $0x3c4] ss:$16 sps:$4 sm:$0xff]  }
 0x36e   :  { %7789 = vmatmul.mubr.msk.bf16.vlgmr.msra.gmra.mrb[8].mxu0 %vm7788_vm0, %v10048_v11  ;;  %7797 = vmatmul.mubr.msk.bf16.vlgmr.msra.gmra.mrb[8].mxu1 %vm7788_vm0, %v10048_v11  ;;  %v9208_v36 = vld [vmem:[#allocation8 + $0x3cc] ss:$16 sps:$4 sm:$0xff]   ;;  %v9203_v37 = vld [vmem:[#allocation8 + $0x3c0] ss:$16 sps:$4 sm:$0xff]   ;;  %v9206_v38 = vld [vmem:[#allocation8 + $0x3c8] ss:$16 sps:$4 sm:$0xff]  }
 0x36f   :  { %3767 = vmatpush1.bf16.msra.mxu0 %v9119_v40  ;;  %3853 = vmatpush1.bf16.msra.mxu1 %v9122_v41  ;;  %v9211_v40 = vld [vmem:[#allocation8 + $0x3e4] ss:$16 sps:$4 sm:$0xff]   ;;  %v9214_v41 = vld [vmem:[#allocation8 + $0x3ec] ss:$16 sps:$4 sm:$0xff]  }
 0x370   :  { %7791 = vmatprep.mubr.msk.bf16.mxu0 %vm7790_vm7, %v10048_v11  ;;  %7799 = vmatprep.mubr.msk.bf16.mxu1 %vm7790_vm7, %v10048_v11 }
 0x371   :  { %3768 = vmatprep.subr.bf16.mxu0 %v9127_v42  ;;  %3854 = vmatprep.subr.bf16.mxu1 %v9130_v43  ;;  %v9209_v42 = vld [vmem:[#allocation8 + $0x3e0] ss:$16 sps:$4 sm:$0xff]   ;;  %v9212_v43 = vld [vmem:[#allocation8 + $0x3e8] ss:$16 sps:$4 sm:$0xff]  }
 0x373   :  { %3769 = vmatpush1.bf16.msra.mxu0 %v9125_v44  ;;  %3855 = vmatpush1.bf16.msra.mxu1 %v9128_v49  ;;  %v9217_v44 = vld [vmem:[#allocation10 + $0x4] ss:$16 sps:$4 sm:$0xff]   ;;  %v9220_v49 = vld [vmem:[#allocation10 + $0xc] ss:$16 sps:$4 sm:$0xff]  }
 0x374   :  { %3770 = vmatprep.subr.bf16.mxu0 %v9133_v50  ;;  %3856 = vmatprep.subr.bf16.mxu1 %v9136_v51  ;;  %v9215_v50 = vld [vmem:[#allocation10] ss:$16 sps:$4 sm:$0xff]   ;;  %v9218_v51 = vld [vmem:[#allocation10 + $0x8] ss:$16 sps:$4 sm:$0xff]  }
 0x377   :  { %3771 = vmatpush1.bf16.msra.mxu0 %v9131_v52  ;;  %3857 = vmatpush1.bf16.msra.mxu1 %v9134_v53  ;;  %v9223_v52 = vld [vmem:[#allocation10 + $0x24] ss:$16 sps:$4 sm:$0xff]   ;;  %v9226_v53 = vld [vmem:[#allocation10 + $0x2c] ss:$16 sps:$4 sm:$0xff]  }
 0x378   :  { %3772 = vmatprep.subr.bf16.mxu0 %v9139_v54  ;;  %3858 = vmatprep.subr.bf16.mxu1 %v9142_v55  ;;  %v9221_v54 = vld [vmem:[#allocation10 + $0x20] ss:$16 sps:$4 sm:$0xff]   ;;  %v9224_v55 = vld [vmem:[#allocation10 + $0x28] ss:$16 sps:$4 sm:$0xff]  }
 0x37b   :  { %3773 = vmatpush1.bf16.msra.mxu0 %v9137_v56  ;;  %3859 = vmatpush1.bf16.msra.mxu1 %v9140_v57  ;;  %v9229_v56 = vld [vmem:[#allocation10 + $0x44] ss:$16 sps:$4 sm:$0xff]   ;;  %v9232_v57 = vld [vmem:[#allocation10 + $0x4c] ss:$16 sps:$4 sm:$0xff]  }
 0x37c   :  { %3774 = vmatprep.subr.bf16.mxu0 %v9145_v58  ;;  %3860 = vmatprep.subr.bf16.mxu1 %v9148_v59  ;;  %v9227_v58 = vld [vmem:[#allocation10 + $0x40] ss:$16 sps:$4 sm:$0xff]   ;;  %v9230_v59 = vld [vmem:[#allocation10 + $0x48] ss:$16 sps:$4 sm:$0xff]  }
 0x37f   :  { %3775 = vmatpush1.bf16.msra.mxu0 %v9143_v60  ;;  %3861 = vmatpush1.bf16.msra.mxu1 %v9146_v61  ;;  %v9235_v60 = vld [vmem:[#allocation10 + $0x64] ss:$16 sps:$4 sm:$0xff]   ;;  %v9238_v61 = vld [vmem:[#allocation10 + $0x6c] ss:$16 sps:$4 sm:$0xff]  }
 0x380   :  { %3776 = vmatprep.subr.bf16.mxu0 %v9151_v62  ;;  %3862 = vmatprep.subr.bf16.mxu1 %v9154_v63  ;;  %v9236_v62 = vld [vmem:[#allocation10 + $0x68] ss:$16 sps:$4 sm:$0xff]   ;;  %v9241_v63 = vld [vmem:[#allocation10 + $0x84] ss:$16 sps:$4 sm:$0xff]  }
 0x383   :  { %3777 = vmatpush1.bf16.msra.mxu0 %v9149_v0  ;;  %3863 = vmatpush1.bf16.msra.mxu1 %v9152_v1  ;;  %v9244_v0 = vld [vmem:[#allocation10 + $0x8c] ss:$16 sps:$4 sm:$0xff]   ;;  %v9239_v1 = vld [vmem:[#allocation10 + $0x80] ss:$16 sps:$4 sm:$0xff]  }
 0x384   :  { %3778 = vmatprep.subr.bf16.mxu0 %v9157_v2  ;;  %3864 = vmatprep.subr.bf16.mxu1 %v9160_v3  ;;  %v9242_v2 = vld [vmem:[#allocation10 + $0x88] ss:$16 sps:$4 sm:$0xff]   ;;  %v9247_v3 = vld [vmem:[#allocation10 + $0xa4] ss:$16 sps:$4 sm:$0xff]  }
 0x387   :  { %3779 = vmatpush1.bf16.msra.mxu0 %v9155_v4  ;;  %3865 = vmatpush1.bf16.msra.mxu1 %v9158_v5  ;;  %v9250_v4 = vld [vmem:[#allocation10 + $0xac] ss:$16 sps:$4 sm:$0xff]   ;;  %v9245_v5 = vld [vmem:[#allocation10 + $0xa0] ss:$16 sps:$4 sm:$0xff]  }
 0x388   :  { %3780 = vmatprep.subr.bf16.mxu0 %v9163_v6  ;;  %3866 = vmatprep.subr.bf16.mxu1 %v9166_v7  ;;  %v9248_v6 = vld [vmem:[#allocation10 + $0xa8] ss:$16 sps:$4 sm:$0xff]   ;;  %v9253_v7 = vld [vmem:[#allocation10 + $0xc4] ss:$16 sps:$4 sm:$0xff]  }
 0x38b   :  { %3781 = vmatpush1.bf16.msra.mxu0 %v9161_v9  ;;  %3867 = vmatpush1.bf16.msra.mxu1 %v9164_v10  ;;  %v9256_v9 = vld [vmem:[#allocation10 + $0xcc] ss:$16 sps:$4 sm:$0xff]   ;;  %v9251_v10 = vld [vmem:[#allocation10 + $0xc0] ss:$16 sps:$4 sm:$0xff]  }
 0x38c   :  { %3782 = vmatprep.subr.bf16.mxu0 %v9169_v12  ;;  %3868 = vmatprep.subr.bf16.mxu1 %v9172_v13  ;;  %v9254_v12 = vld [vmem:[#allocation10 + $0xc8] ss:$16 sps:$4 sm:$0xff]   ;;  %v9259_v13 = vld [vmem:[#allocation10 + $0xe4] ss:$16 sps:$4 sm:$0xff]  }
 0x38f   :  { %3783 = vmatpush1.bf16.msra.mxu0 %v9167_v14  ;;  %3869 = vmatpush1.bf16.msra.mxu1 %v9170_v15  ;;  %v9262_v14 = vld [vmem:[#allocation10 + $0xec] ss:$16 sps:$4 sm:$0xff]   ;;  %v9257_v15 = vld [vmem:[#allocation10 + $0xe0] ss:$16 sps:$4 sm:$0xff]  }
 0x390   :  { %3784 = vmatprep.subr.bf16.mxu0 %v9175_v16  ;;  %3870 = vmatprep.subr.bf16.mxu1 %v9178_v17  ;;  %v9260_v16 = vld [vmem:[#allocation10 + $0xe8] ss:$16 sps:$4 sm:$0xff]   ;;  %v9265_v17 = vld [vmem:[#allocation10 + $0x104] ss:$16 sps:$4 sm:$0xff]  }
 0x393   :  { %3785 = vmatpush1.bf16.msra.mxu0 %v9173_v18  ;;  %3871 = vmatpush1.bf16.msra.mxu1 %v9176_v19  ;;  %v9268_v18 = vld [vmem:[#allocation10 + $0x10c] ss:$16 sps:$4 sm:$0xff]   ;;  %v9263_v19 = vld [vmem:[#allocation10 + $0x100] ss:$16 sps:$4 sm:$0xff]  }
 0x394   :  { %3786 = vmatprep.subr.bf16.mxu0 %v9181_v20  ;;  %3872 = vmatprep.subr.bf16.mxu1 %v9184_v21  ;;  %v9266_v20 = vld [vmem:[#allocation10 + $0x108] ss:$16 sps:$4 sm:$0xff]   ;;  %v9271_v21 = vld [vmem:[#allocation10 + $0x124] ss:$16 sps:$4 sm:$0xff]  }
 0x397   :  { %3787 = vmatpush1.bf16.msra.mxu0 %v9179_v22  ;;  %3873 = vmatpush1.bf16.msra.mxu1 %v9182_v23  ;;  %v9274_v22 = vld [vmem:[#allocation10 + $0x12c] ss:$16 sps:$4 sm:$0xff]   ;;  %v9269_v23 = vld [vmem:[#allocation10 + $0x120] ss:$16 sps:$4 sm:$0xff]  }
 0x398   :  { %3788 = vmatprep.subr.bf16.mxu0 %v9187_v24  ;;  %3874 = vmatprep.subr.bf16.mxu1 %v9190_v25  ;;  %v9272_v24 = vld [vmem:[#allocation10 + $0x128] ss:$16 sps:$4 sm:$0xff]   ;;  %v9277_v25 = vld [vmem:[#allocation10 + $0x144] ss:$16 sps:$4 sm:$0xff]  }
 0x39b   :  { %3789 = vmatpush1.bf16.msra.mxu0 %v9185_v8  ;;  %3875 = vmatpush1.bf16.msra.mxu1 %v9188_v26  ;;  %v9280_v8 = vld [vmem:[#allocation10 + $0x14c] ss:$16 sps:$4 sm:$0xff]   ;;  %v9275_v26 = vld [vmem:[#allocation10 + $0x140] ss:$16 sps:$4 sm:$0xff]  }
 0x39c   :  { %3790 = vmatprep.subr.bf16.mxu0 %v9193_v27  ;;  %3876 = vmatprep.subr.bf16.mxu1 %v9196_v28  ;;  %v9278_v27 = vld [vmem:[#allocation10 + $0x148] ss:$16 sps:$4 sm:$0xff]   ;;  %v9283_v28 = vld [vmem:[#allocation10 + $0x164] ss:$16 sps:$4 sm:$0xff]  }
 0x39f   :  { %3791 = vmatpush1.bf16.msra.mxu0 %v9191_v29  ;;  %3877 = vmatpush1.bf16.msra.mxu1 %v9194_v30  ;;  %v9286_v29 = vld [vmem:[#allocation10 + $0x16c] ss:$16 sps:$4 sm:$0xff]   ;;  %v9281_v30 = vld [vmem:[#allocation10 + $0x160] ss:$16 sps:$4 sm:$0xff]  }
 0x3a0   :  { %3792 = vmatprep.subr.bf16.mxu0 %v9199_v31  ;;  %3878 = vmatprep.subr.bf16.mxu1 %v9202_v32  ;;  %v9284_v31 = vld [vmem:[#allocation10 + $0x168] ss:$16 sps:$4 sm:$0xff]   ;;  %v9289_v32 = vld [vmem:[#allocation10 + $0x184] ss:$16 sps:$4 sm:$0xff]  }
 0x3a3   :  { %3793 = vmatpush1.bf16.msra.mxu0 %v9197_v33  ;;  %3879 = vmatpush1.bf16.msra.mxu1 %v9200_v34  ;;  %v9292_v33 = vld [vmem:[#allocation10 + $0x18c] ss:$16 sps:$4 sm:$0xff]   ;;  %v9287_v34 = vld [vmem:[#allocation10 + $0x180] ss:$16 sps:$4 sm:$0xff]  }
 0x3a4   :  { %3794 = vmatprep.subr.bf16.mxu0 %v9205_v35  ;;  %3880 = vmatprep.subr.bf16.mxu1 %v9208_v36  ;;  %v9290_v35 = vld [vmem:[#allocation10 + $0x188] ss:$16 sps:$4 sm:$0xff]   ;;  %v9295_v36 = vld [vmem:[#allocation10 + $0x1a4] ss:$16 sps:$4 sm:$0xff]  }
 0x3a7   :  { %3795 = vmatpush1.bf16.msra.mxu0 %v9203_v37  ;;  %3881 = vmatpush1.bf16.msra.mxu1 %v9206_v38  ;;  %v9298_v37 = vld [vmem:[#allocation10 + $0x1ac] ss:$16 sps:$4 sm:$0xff]   ;;  %v9293_v38 = vld [vmem:[#allocation10 + $0x1a0] ss:$16 sps:$4 sm:$0xff]  }
 0x3a8   :  { %3796 = vmatprep.subr.bf16.mxu0 %v9211_v40  ;;  %3882 = vmatprep.subr.bf16.mxu1 %v9214_v41  ;;  %v9296_v40 = vld [vmem:[#allocation10 + $0x1a8] ss:$16 sps:$4 sm:$0xff]   ;;  %v9301_v41 = vld [vmem:[#allocation10 + $0x1c4] ss:$16 sps:$4 sm:$0xff]  }
 0x3ab   :  { %3797 = vmatpush1.bf16.msra.mxu0 %v9209_v42  ;;  %3883 = vmatpush1.bf16.msra.mxu1 %v9212_v43  ;;  %v9304_v42 = vld [vmem:[#allocation10 + $0x1cc] ss:$16 sps:$4 sm:$0xff]   ;;  %v9299_v43 = vld [vmem:[#allocation10 + $0x1c0] ss:$16 sps:$4 sm:$0xff]  }
 0x3ac   :  { %4713 = vmatprep.subr.bf16.mxu0 %v9217_v44  ;;  %4799 = vmatprep.subr.bf16.mxu1 %v9220_v49  ;;  %v9302_v44 = vld [vmem:[#allocation10 + $0x1c8] ss:$16 sps:$4 sm:$0xff]   ;;  %v9307_v49 = vld [vmem:[#allocation10 + $0x1e4] ss:$16 sps:$4 sm:$0xff]  }
 0x3ae   :  { %7793 = vmatmul.mubr.msk.bf16.vlgmr.msra.gmra.mrb[8].mxu0 %vm10307_vm4, %v10048_v11  ;;  %7801 = vmatmul.mubr.msk.bf16.vlgmr.msra.gmra.mrb[8].mxu1 %vm10307_vm4, %v10048_v11 }
 0x3af   :  { %4714 = vmatpush1.bf16.msra.mxu0 %v9215_v50  ;;  %4800 = vmatpush1.bf16.msra.mxu1 %v9218_v51  ;;  %v9310_v50 = vld [vmem:[#allocation10 + $0x1ec] ss:$16 sps:$4 sm:$0xff]   ;;  %v9305_v51 = vld [vmem:[#allocation10 + $0x1e0] ss:$16 sps:$4 sm:$0xff]  }
 0x3b0   :  { %4715 = vmatprep.subr.bf16.mxu0 %v9223_v52  ;;  %4801 = vmatprep.subr.bf16.mxu1 %v9226_v53  ;;  %v9308_v52 = vld [vmem:[#allocation10 + $0x1e8] ss:$16 sps:$4 sm:$0xff]   ;;  %v9313_v53 = vld [vmem:[#allocation10 + $0x204] ss:$16 sps:$4 sm:$0xff]  }
 0x3b3   :  { %4716 = vmatpush1.bf16.msra.mxu0 %v9221_v54  ;;  %4802 = vmatpush1.bf16.msra.mxu1 %v9224_v55  ;;  %v9316_v54 = vld [vmem:[#allocation10 + $0x20c] ss:$16 sps:$4 sm:$0xff]   ;;  %v3061_v55 = vld [vmem:[%s10428_s10] sm:$0xf] }
 0x3b4   :  { %4717 = vmatprep.subr.bf16.mxu0 %v9229_v56  ;;  %4803 = vmatprep.subr.bf16.mxu1 %v9232_v57  ;;  %v3066_v56 = vrot.slane %v3061_v55, %v10264_v45  ;;  %v3074_v57 = vrot.slane %v3061_v55, %v10266_v46 }
 0x3b7   :  { %4718 = vmatpush1.bf16.msra.mxu0 %v9227_v58  ;;  %4804 = vmatpush1.bf16.msra.mxu1 %v9230_v59  ;;  %v3070_v58 = vrot.slane %v3061_v55, %v10268_v47 }
 0x3b8   :  { %4719 = vmatprep.subr.bf16.mxu0 %v9235_v60  ;;  %4805 = vmatprep.subr.bf16.mxu1 %v9238_v61  ;;  %v3078_v61 = vrot.slane %v3061_v55, %v10270_v48  ;;  %v9368_v55 = vld [vmem:[#allocation10 + $0x328] ss:$16 sps:$4 sm:$0xff]  }
 0x3bb   :  { %4720 = vmatpush1.bf16.msra.mxu0 %v9233_v39  ;;  %4806 = vmatpush1.bf16.msra.mxu1 %v9236_v62 }
 0x3bc   :  { %4721 = vmatprep.subr.bf16.mxu0 %v9241_v63  ;;  %4807 = vmatprep.subr.bf16.mxu1 %v9244_v0 }
 0x3bf   :  { %4722 = vmatpush1.bf16.msra.mxu0 %v9239_v1  ;;  %4808 = vmatpush1.bf16.msra.mxu1 %v9242_v2 }
 0x3c0   :  { %4723 = vmatprep.subr.bf16.mxu0 %v9247_v3  ;;  %4809 = vmatprep.subr.bf16.mxu1 %v9250_v4 }
 0x3c3   :  { %4724 = vmatpush1.bf16.msra.mxu0 %v9245_v5  ;;  %4810 = vmatpush1.bf16.msra.mxu1 %v9248_v6 }
 0x3c4   :  { %4725 = vmatprep.subr.bf16.mxu0 %v9253_v7  ;;  %4811 = vmatprep.subr.bf16.mxu1 %v9256_v9 }
 0x3c7   :  { %4726 = vmatpush1.bf16.msra.mxu0 %v9251_v10  ;;  %4812 = vmatpush1.bf16.msra.mxu1 %v9254_v12 }
 0x3c8   :  { %4727 = vmatprep.subr.bf16.mxu0 %v9259_v13  ;;  %4813 = vmatprep.subr.bf16.mxu1 %v9262_v14  ;;  %v9311_v14 = vld [vmem:[#allocation10 + $0x200] ss:$16 sps:$4 sm:$0xff]  }
 0x3c9   :  { %v9425_v13 = vld [vmem:[#allocation11 + $0x60] ss:$16 sps:$4 sm:$0xff]  }
 0x3cb   :  { %4728 = vmatpush1.bf16.msra.mxu0 %v9257_v15  ;;  %4814 = vmatpush1.bf16.msra.mxu1 %v9260_v16  ;;  %v9314_v15 = vld [vmem:[#allocation10 + $0x208] ss:$16 sps:$4 sm:$0xff]   ;;  %v9319_v16 = vld [vmem:[#allocation10 + $0x224] ss:$16 sps:$4 sm:$0xff]  }
 0x3cc   :  { %4729 = vmatprep.subr.bf16.mxu0 %v9265_v17  ;;  %4815 = vmatprep.subr.bf16.mxu1 %v9268_v18  ;;  %v9322_v17 = vld [vmem:[#allocation10 + $0x22c] ss:$16 sps:$4 sm:$0xff]   ;;  %v9317_v18 = vld [vmem:[#allocation10 + $0x220] ss:$16 sps:$4 sm:$0xff]  }
 0x3cf   :  { %4730 = vmatpush1.bf16.msra.mxu0 %v9263_v19  ;;  %4816 = vmatpush1.bf16.msra.mxu1 %v9266_v20  ;;  %v9320_v19 = vld [vmem:[#allocation10 + $0x228] ss:$16 sps:$4 sm:$0xff]   ;;  %v9325_v20 = vld [vmem:[#allocation10 + $0x244] ss:$16 sps:$4 sm:$0xff]  }
 0x3d0   :  { %4731 = vmatprep.subr.bf16.mxu0 %v9271_v21  ;;  %4817 = vmatprep.subr.bf16.mxu1 %v9274_v22  ;;  %v9328_v21 = vld [vmem:[#allocation10 + $0x24c] ss:$16 sps:$4 sm:$0xff]   ;;  %v9323_v22 = vld [vmem:[#allocation10 + $0x240] ss:$16 sps:$4 sm:$0xff]  }
 0x3d3   :  { %4732 = vmatpush1.bf16.msra.mxu0 %v9269_v23  ;;  %4818 = vmatpush1.bf16.msra.mxu1 %v9272_v24  ;;  %v9326_v23 = vld [vmem:[#allocation10 + $0x248] ss:$16 sps:$4 sm:$0xff]   ;;  %v9331_v24 = vld [vmem:[#allocation10 + $0x264] ss:$16 sps:$4 sm:$0xff]  }
 0x3d4   :  { %4733 = vmatprep.subr.bf16.mxu0 %v9277_v25  ;;  %4819 = vmatprep.subr.bf16.mxu1 %v9280_v8  ;;  %v9334_v25 = vld [vmem:[#allocation10 + $0x26c] ss:$16 sps:$4 sm:$0xff]   ;;  %v9329_v8 = vld [vmem:[#allocation10 + $0x260] ss:$16 sps:$4 sm:$0xff]  }
 0x3d7   :  { %4734 = vmatpush1.bf16.msra.mxu0 %v9275_v26  ;;  %4820 = vmatpush1.bf16.msra.mxu1 %v9278_v27  ;;  %v9332_v26 = vld [vmem:[#allocation10 + $0x268] ss:$16 sps:$4 sm:$0xff]   ;;  %v9337_v27 = vld [vmem:[#allocation10 + $0x284] ss:$16 sps:$4 sm:$0xff]  }
 0x3d8   :  { %4735 = vmatprep.subr.bf16.mxu0 %v9283_v28  ;;  %4821 = vmatprep.subr.bf16.mxu1 %v9286_v29  ;;  %v9340_v28 = vld [vmem:[#allocation10 + $0x28c] ss:$16 sps:$4 sm:$0xff]   ;;  %v9335_v29 = vld [vmem:[#allocation10 + $0x280] ss:$16 sps:$4 sm:$0xff]  }
 0x3db   :  { %4736 = vmatpush1.bf16.msra.mxu0 %v9281_v30  ;;  %4822 = vmatpush1.bf16.msra.mxu1 %v9284_v31  ;;  %v9338_v30 = vld [vmem:[#allocation10 + $0x288] ss:$16 sps:$4 sm:$0xff]   ;;  %v9343_v31 = vld [vmem:[#allocation10 + $0x2a4] ss:$16 sps:$4 sm:$0xff]  }
 0x3dc   :  { %4737 = vmatprep.subr.bf16.mxu0 %v9289_v32  ;;  %4823 = vmatprep.subr.bf16.mxu1 %v9292_v33  ;;  %v9346_v32 = vld [vmem:[#allocation10 + $0x2ac] ss:$16 sps:$4 sm:$0xff]   ;;  %v9341_v33 = vld [vmem:[#allocation10 + $0x2a0] ss:$16 sps:$4 sm:$0xff]  }
 0x3df   :  { %4738 = vmatpush1.bf16.msra.mxu0 %v9287_v34  ;;  %4824 = vmatpush1.bf16.msra.mxu1 %v9290_v35  ;;  %v9344_v34 = vld [vmem:[#allocation10 + $0x2a8] ss:$16 sps:$4 sm:$0xff]   ;;  %v9349_v35 = vld [vmem:[#allocation10 + $0x2c4] ss:$16 sps:$4 sm:$0xff]  }
 0x3e0   :  { %4739 = vmatprep.subr.bf16.mxu0 %v9295_v36  ;;  %4825 = vmatprep.subr.bf16.mxu1 %v9298_v37  ;;  %v9352_v36 = vld [vmem:[#allocation10 + $0x2cc] ss:$16 sps:$4 sm:$0xff]   ;;  %v9347_v37 = vld [vmem:[#allocation10 + $0x2c0] ss:$16 sps:$4 sm:$0xff]  }
 0x3e3   :  { %4740 = vmatpush1.bf16.msra.mxu0 %v9293_v38  ;;  %4826 = vmatpush1.bf16.msra.mxu1 %v9296_v40  ;;  %v9350_v38 = vld [vmem:[#allocation10 + $0x2c8] ss:$16 sps:$4 sm:$0xff]   ;;  %v9355_v40 = vld [vmem:[#allocation10 + $0x2e4] ss:$16 sps:$4 sm:$0xff]  }
 0x3e4   :  { %4741 = vmatprep.subr.bf16.mxu0 %v9301_v41  ;;  %4827 = vmatprep.subr.bf16.mxu1 %v9304_v42  ;;  %v9358_v41 = vld [vmem:[#allocation10 + $0x2ec] ss:$16 sps:$4 sm:$0xff]   ;;  %v9353_v42 = vld [vmem:[#allocation10 + $0x2e0] ss:$16 sps:$4 sm:$0xff]  }
 0x3e7   :  { %4742 = vmatpush1.bf16.msra.mxu0 %v9299_v43  ;;  %4828 = vmatpush1.bf16.msra.mxu1 %v9302_v44  ;;  %v9356_v43 = vld [vmem:[#allocation10 + $0x2e8] ss:$16 sps:$4 sm:$0xff]   ;;  %v9361_v44 = vld [vmem:[#allocation10 + $0x304] ss:$16 sps:$4 sm:$0xff]  }
 0x3e8   :  { %4743 = vmatprep.subr.bf16.mxu0 %v9307_v49  ;;  %4829 = vmatprep.subr.bf16.mxu1 %v9310_v50  ;;  %v9364_v49 = vld [vmem:[#allocation10 + $0x30c] ss:$16 sps:$4 sm:$0xff]   ;;  %v9359_v50 = vld [vmem:[#allocation10 + $0x300] ss:$16 sps:$4 sm:$0xff]  }
 0x3eb   :  { %4744 = vmatpush1.bf16.msra.mxu0 %v9305_v51  ;;  %4830 = vmatpush1.bf16.msra.mxu1 %v9308_v52  ;;  %v9362_v51 = vld [vmem:[#allocation10 + $0x308] ss:$16 sps:$4 sm:$0xff]   ;;  %v9367_v52 = vld [vmem:[#allocation10 + $0x324] ss:$16 sps:$4 sm:$0xff]  }
 0x3ec   :  { %4756 = vmatprep.subr.bf16.mxu0 %v9313_v53  ;;  %4842 = vmatprep.subr.bf16.mxu1 %v9316_v54  ;;  %v9370_v53 = vld [vmem:[#allocation10 + $0x32c] ss:$16 sps:$4 sm:$0xff]   ;;  %v9365_v54 = vld [vmem:[#allocation10 + $0x320] ss:$16 sps:$4 sm:$0xff]  }
 0x481   :  { %v3800_v59 = vpop.f32.mrb[8].mxu0  ;;  %v3886_v60 = vpop.f32.mrb[8].mxu1 }
 0x482   :  { %v8369_v39 = vadd.f32 %v3800_v59, %v3066_v56  ;;  %v3802_v62 = vpop.f32.mrb[9].mxu0  ;;  %v3888_v63 = vpop.f32.mrb[9].mxu1  ;;  %v8373_v0 = vadd.f32 %v3886_v60, %v3074_v57  ;;  %v9374_v59 = vld [vmem:[#allocation10 + $0x348] ss:$16 sps:$4 sm:$0xff]   ;;  %v9379_v60 = vld [vmem:[#allocation10 + $0x364] ss:$16 sps:$4 sm:$0xff]  }
 0x483   :  { %v3804_v1 = vpop.f32.mrb[10].mxu0  ;;  %v3890_v2 = vpop.f32.mrb[10].mxu1  ;;  %v8370_v3 = vadd.f32 %v3802_v62, %v3070_v58  ;;  %v8374_v9 = vadd.f32 %v3888_v63, %v3078_v61  ;;  %v9380_v62 = vld [vmem:[#allocation10 + $0x368] ss:$16 sps:$4 sm:$0xff]   ;;  %v9385_v63 = vld [vmem:[#allocation10 + $0x384] ss:$16 sps:$4 sm:$0xff]  }
 0x484   :  { %v8371_v4 = vadd.f32 %v3804_v1, %v3066_v56  ;;  %v8375_v5 = vadd.f32 %v3890_v2, %v3074_v57  ;;  %v3806_v6 = vpop.f32.mrb[11].mxu0  ;;  %v3892_v7 = vpop.f32.mrb[11].mxu1  ;;  %vm3895_vm8 = vcmp.ge.f32.partialorder %v8369_v39, 1.0  ;;  %vm3897_vm11 = vcmp.ge.f32.partialorder %v8373_v0, 1.0  ;;  %v9373_v56 = vld [vmem:[#allocation10 + $0x344] ss:$16 sps:$4 sm:$0xff]  }
 0x485   :  { %v8372_v10 = vadd.f32 %v3806_v6, %v3070_v58  ;;  %v8376_v12 = vadd.f32 %v3892_v7, %v3078_v61  ;;  %vm3896_vm15 = vcmp.ge.f32.partialorder %v8370_v3, 1.0  ;;  %vm3898_vm1 = vcmp.ge.f32.partialorder %v8374_v9, 1.0  ;;  %v9376_v57 = vld [vmem:[#allocation10 + $0x34c] ss:$16 sps:$4 sm:$0xff]   ;;  %v9371_v58 = vld [vmem:[#allocation10 + $0x340] ss:$16 sps:$4 sm:$0xff]  }
 0x486   :  { %vm3899_vm9 = vcmp.ge.f32.partialorder %v8371_v4, 1.0  ;;  %vm3901_vm10 = vcmp.ge.f32.partialorder %v8375_v5, 1.0  ;;  %v9382_v61 = vld [vmem:[#allocation10 + $0x36c] ss:$16 sps:$4 sm:$0xff]   ;;  %v9377_v39 = vld [vmem:[#allocation10 + $0x360] ss:$16 sps:$4 sm:$0xff]  }
 0x487   :  { %vm7940_vm12 = vmpackc.low %vm3899_vm9, %vm3895_vm8  ;;  %vm3900_vm13 = vcmp.ge.f32.partialorder %v8372_v10, 1.0  ;;  %vm3902_vm14 = vcmp.ge.f32.partialorder %v8376_v12, 1.0  ;;  %v9388_v0 = vld [vmem:[#allocation10 + $0x38c] ss:$16 sps:$4 sm:$0xff]   ;;  %v9383_v1 = vld [vmem:[#allocation10 + $0x380] ss:$16 sps:$4 sm:$0xff]  }
 0x488   :  { %vm10330_vm0 = vmpackc.low %vm3901_vm10, %vm3897_vm11  ;;  %v9386_v2 = vld [vmem:[#allocation10 + $0x388] ss:$16 sps:$4 sm:$0xff]   ;;  %v9391_v3 = vld [vmem:[#allocation10 + $0x3a4] ss:$16 sps:$4 sm:$0xff]  }
 0x489   :  { %vm7938_vm2 = vmpackc.low %vm3900_vm13, %vm3896_vm15  ;;  %v9394_v4 = vld [vmem:[#allocation10 + $0x3ac] ss:$16 sps:$4 sm:$0xff]   ;;  %v9389_v5 = vld [vmem:[#allocation10 + $0x3a0] ss:$16 sps:$4 sm:$0xff]  }
 0x48a   :  { %vm7942_vm3 = vmpackc.low %vm3902_vm14, %vm3898_vm1  ;;  %7939 = vmatprep.mubr.msk.bf16.mxu0 %vm7938_vm2, %v10048_v11  ;;  %7947 = vmatprep.mubr.msk.bf16.mxu1 %vm7938_vm2, %v10048_v11  ;;  %v9392_v6 = vld [vmem:[#allocation10 + $0x3a8] ss:$16 sps:$4 sm:$0xff]   ;;  %v9397_v7 = vld [vmem:[#allocation10 + $0x3c4] ss:$16 sps:$4 sm:$0xff]  }
 0x48b   :  { %7941 = vmatmul.mubr.msk.bf16.vlgmr.msra.gmra.mrb[12].mxu0 %vm7940_vm12, %v10048_v11  ;;  %7949 = vmatmul.mubr.msk.bf16.vlgmr.msra.gmra.mrb[12].mxu1 %vm7940_vm12, %v10048_v11  ;;  %v9400_v9 = vld [vmem:[#allocation10 + $0x3cc] ss:$16 sps:$4 sm:$0xff]   ;;  %v9395_v10 = vld [vmem:[#allocation10 + $0x3c0] ss:$16 sps:$4 sm:$0xff]   ;;  %v9398_v12 = vld [vmem:[#allocation10 + $0x3c8] ss:$16 sps:$4 sm:$0xff]  }
 0x48c   :  { %4757 = vmatpush1.bf16.msra.mxu0 %v9311_v14  ;;  %4843 = vmatpush1.bf16.msra.mxu1 %v9314_v15  ;;  %v9403_v14 = vld [vmem:[#allocation10 + $0x3e4] ss:$16 sps:$4 sm:$0xff]   ;;  %v9406_v15 = vld [vmem:[#allocation10 + $0x3ec] ss:$16 sps:$4 sm:$0xff]  }
 0x48d   :  { %7943 = vmatprep.mubr.msk.bf16.mxu0 %vm7942_vm3, %v10048_v11  ;;  %7951 = vmatprep.mubr.msk.bf16.mxu1 %vm7942_vm3, %v10048_v11 }
 0x48e   :  { %4758 = vmatprep.subr.bf16.mxu0 %v9319_v16  ;;  %4844 = vmatprep.subr.bf16.mxu1 %v9322_v17  ;;  %v9401_v16 = vld [vmem:[#allocation10 + $0x3e0] ss:$16 sps:$4 sm:$0xff]   ;;  %v9404_v17 = vld [vmem:[#allocation10 + $0x3e8] ss:$16 sps:$4 sm:$0xff]  }
 0x490   :  { %4759 = vmatpush1.bf16.msra.mxu0 %v9317_v18  ;;  %4845 = vmatpush1.bf16.msra.mxu1 %v9320_v19  ;;  %v9409_v18 = vld [vmem:[#allocation11 + $0x4] ss:$16 sps:$4 sm:$0xff]   ;;  %v9412_v19 = vld [vmem:[#allocation11 + $0xc] ss:$16 sps:$4 sm:$0xff]  }
 0x491   :  { %4760 = vmatprep.subr.bf16.mxu0 %v9325_v20  ;;  %4846 = vmatprep.subr.bf16.mxu1 %v9328_v21  ;;  %v9407_v20 = vld [vmem:[#allocation11] ss:$16 sps:$4 sm:$0xff]   ;;  %v9410_v21 = vld [vmem:[#allocation11 + $0x8] ss:$16 sps:$4 sm:$0xff]  }
 0x494   :  { %4761 = vmatpush1.bf16.msra.mxu0 %v9323_v22  ;;  %4847 = vmatpush1.bf16.msra.mxu1 %v9326_v23  ;;  %v9415_v22 = vld [vmem:[#allocation11 + $0x24] ss:$16 sps:$4 sm:$0xff]   ;;  %v9418_v23 = vld [vmem:[#allocation11 + $0x2c] ss:$16 sps:$4 sm:$0xff]  }
 0x495   :  { %4762 = vmatprep.subr.bf16.mxu0 %v9331_v24  ;;  %4848 = vmatprep.subr.bf16.mxu1 %v9334_v25  ;;  %v9413_v24 = vld [vmem:[#allocation11 + $0x20] ss:$16 sps:$4 sm:$0xff]   ;;  %v9416_v25 = vld [vmem:[#allocation11 + $0x28] ss:$16 sps:$4 sm:$0xff]  }
 0x498   :  { %4763 = vmatpush1.bf16.msra.mxu0 %v9329_v8  ;;  %4849 = vmatpush1.bf16.msra.mxu1 %v9332_v26  ;;  %v9421_v8 = vld [vmem:[#allocation11 + $0x44] ss:$16 sps:$4 sm:$0xff]   ;;  %v9424_v26 = vld [vmem:[#allocation11 + $0x4c] ss:$16 sps:$4 sm:$0xff]  }
 0x499   :  { %4764 = vmatprep.subr.bf16.mxu0 %v9337_v27  ;;  %4850 = vmatprep.subr.bf16.mxu1 %v9340_v28  ;;  %v9419_v27 = vld [vmem:[#allocation11 + $0x40] ss:$16 sps:$4 sm:$0xff]   ;;  %v9422_v28 = vld [vmem:[#allocation11 + $0x48] ss:$16 sps:$4 sm:$0xff]  }
 0x49c   :  { %4765 = vmatpush1.bf16.msra.mxu0 %v9335_v29  ;;  %4851 = vmatpush1.bf16.msra.mxu1 %v9338_v30  ;;  %v9427_v29 = vld [vmem:[#allocation11 + $0x64] ss:$16 sps:$4 sm:$0xff]   ;;  %v9430_v30 = vld [vmem:[#allocation11 + $0x6c] ss:$16 sps:$4 sm:$0xff]  }
 0x49d   :  { %4766 = vmatprep.subr.bf16.mxu0 %v9343_v31  ;;  %4852 = vmatprep.subr.bf16.mxu1 %v9346_v32  ;;  %v9428_v31 = vld [vmem:[#allocation11 + $0x68] ss:$16 sps:$4 sm:$0xff]   ;;  %v9433_v32 = vld [vmem:[#allocation11 + $0x84] ss:$16 sps:$4 sm:$0xff]  }
 0x4a0   :  { %4767 = vmatpush1.bf16.msra.mxu0 %v9341_v33  ;;  %4853 = vmatpush1.bf16.msra.mxu1 %v9344_v34  ;;  %v9436_v33 = vld [vmem:[#allocation11 + $0x8c] ss:$16 sps:$4 sm:$0xff]   ;;  %v9431_v34 = vld [vmem:[#allocation11 + $0x80] ss:$16 sps:$4 sm:$0xff]  }
 0x4a1   :  { %4768 = vmatprep.subr.bf16.mxu0 %v9349_v35  ;;  %4854 = vmatprep.subr.bf16.mxu1 %v9352_v36  ;;  %v9434_v35 = vld [vmem:[#allocation11 + $0x88] ss:$16 sps:$4 sm:$0xff]   ;;  %v9439_v36 = vld [vmem:[#allocation11 + $0xa4] ss:$16 sps:$4 sm:$0xff]  }
 0x4a4   :  { %4769 = vmatpush1.bf16.msra.mxu0 %v9347_v37  ;;  %4855 = vmatpush1.bf16.msra.mxu1 %v9350_v38  ;;  %v9442_v37 = vld [vmem:[#allocation11 + $0xac] ss:$16 sps:$4 sm:$0xff]   ;;  %v9437_v38 = vld [vmem:[#allocation11 + $0xa0] ss:$16 sps:$4 sm:$0xff]  }
 0x4a5   :  { %4770 = vmatprep.subr.bf16.mxu0 %v9355_v40  ;;  %4856 = vmatprep.subr.bf16.mxu1 %v9358_v41  ;;  %v9440_v40 = vld [vmem:[#allocation11 + $0xa8] ss:$16 sps:$4 sm:$0xff]   ;;  %v9445_v41 = vld [vmem:[#allocation11 + $0xc4] ss:$16 sps:$4 sm:$0xff]  }
 0x4a8   :  { %4771 = vmatpush1.bf16.msra.mxu0 %v9353_v42  ;;  %4857 = vmatpush1.bf16.msra.mxu1 %v9356_v43  ;;  %v9448_v42 = vld [vmem:[#allocation11 + $0xcc] ss:$16 sps:$4 sm:$0xff]   ;;  %v9443_v43 = vld [vmem:[#allocation11 + $0xc0] ss:$16 sps:$4 sm:$0xff]  }
 0x4a9   :  { %4772 = vmatprep.subr.bf16.mxu0 %v9361_v44  ;;  %4858 = vmatprep.subr.bf16.mxu1 %v9364_v49  ;;  %v9446_v44 = vld [vmem:[#allocation11 + $0xc8] ss:$16 sps:$4 sm:$0xff]   ;;  %v9451_v49 = vld [vmem:[#allocation11 + $0xe4] ss:$16 sps:$4 sm:$0xff]  }
 0x4ac   :  { %4773 = vmatpush1.bf16.msra.mxu0 %v9359_v50  ;;  %4859 = vmatpush1.bf16.msra.mxu1 %v9362_v51  ;;  %v9454_v50 = vld [vmem:[#allocation11 + $0xec] ss:$16 sps:$4 sm:$0xff]   ;;  %v9449_v51 = vld [vmem:[#allocation11 + $0xe0] ss:$16 sps:$4 sm:$0xff]  }
 0x4ad   :  { %4774 = vmatprep.subr.bf16.mxu0 %v9367_v52  ;;  %4860 = vmatprep.subr.bf16.mxu1 %v9370_v53  ;;  %v9452_v52 = vld [vmem:[#allocation11 + $0xe8] ss:$16 sps:$4 sm:$0xff]   ;;  %v9457_v53 = vld [vmem:[#allocation11 + $0x104] ss:$16 sps:$4 sm:$0xff]  }
 0x4b0   :  { %4775 = vmatpush1.bf16.msra.mxu0 %v9365_v54  ;;  %4861 = vmatpush1.bf16.msra.mxu1 %v9368_v55  ;;  %v9460_v54 = vld [vmem:[#allocation11 + $0x10c] ss:$16 sps:$4 sm:$0xff]   ;;  %v9455_v55 = vld [vmem:[#allocation11 + $0x100] ss:$16 sps:$4 sm:$0xff]  }
 0x4b1   :  { %4776 = vmatprep.subr.bf16.mxu0 %v9373_v56  ;;  %4862 = vmatprep.subr.bf16.mxu1 %v9376_v57  ;;  %v9458_v56 = vld [vmem:[#allocation11 + $0x108] ss:$16 sps:$4 sm:$0xff]   ;;  %v9463_v57 = vld [vmem:[#allocation11 + $0x124] ss:$16 sps:$4 sm:$0xff]  }
 0x4b4   :  { %4777 = vmatpush1.bf16.msra.mxu0 %v9371_v58  ;;  %4863 = vmatpush1.bf16.msra.mxu1 %v9374_v59  ;;  %v9466_v58 = vld [vmem:[#allocation11 + $0x12c] ss:$16 sps:$4 sm:$0xff]   ;;  %v9461_v59 = vld [vmem:[#allocation11 + $0x120] ss:$16 sps:$4 sm:$0xff]  }
 0x4b5   :  { %4778 = vmatprep.subr.bf16.mxu0 %v9379_v60  ;;  %4864 = vmatprep.subr.bf16.mxu1 %v9382_v61  ;;  %v9464_v60 = vld [vmem:[#allocation11 + $0x128] ss:$16 sps:$4 sm:$0xff]   ;;  %v9469_v61 = vld [vmem:[#allocation11 + $0x144] ss:$16 sps:$4 sm:$0xff]  }
 0x4b8   :  { %4779 = vmatpush1.bf16.msra.mxu0 %v9377_v39  ;;  %4865 = vmatpush1.bf16.msra.mxu1 %v9380_v62  ;;  %v9472_v39 = vld [vmem:[#allocation11 + $0x14c] ss:$16 sps:$4 sm:$0xff]   ;;  %v9467_v62 = vld [vmem:[#allocation11 + $0x140] ss:$16 sps:$4 sm:$0xff]  }
 0x4b9   :  { %4780 = vmatprep.subr.bf16.mxu0 %v9385_v63  ;;  %4866 = vmatprep.subr.bf16.mxu1 %v9388_v0  ;;  %v9470_v63 = vld [vmem:[#allocation11 + $0x148] ss:$16 sps:$4 sm:$0xff]   ;;  %v9475_v0 = vld [vmem:[#allocation11 + $0x164] ss:$16 sps:$4 sm:$0xff]  }
 0x4bc   :  { %4781 = vmatpush1.bf16.msra.mxu0 %v9383_v1  ;;  %4867 = vmatpush1.bf16.msra.mxu1 %v9386_v2  ;;  %v9478_v1 = vld [vmem:[#allocation11 + $0x16c] ss:$16 sps:$4 sm:$0xff]   ;;  %v9473_v2 = vld [vmem:[#allocation11 + $0x160] ss:$16 sps:$4 sm:$0xff]  }
 0x4bd   :  { %4782 = vmatprep.subr.bf16.mxu0 %v9391_v3  ;;  %4868 = vmatprep.subr.bf16.mxu1 %v9394_v4  ;;  %v9476_v3 = vld [vmem:[#allocation11 + $0x168] ss:$16 sps:$4 sm:$0xff]   ;;  %v9481_v4 = vld [vmem:[#allocation11 + $0x184] ss:$16 sps:$4 sm:$0xff]  }
 0x4c0   :  { %4783 = vmatpush1.bf16.msra.mxu0 %v9389_v5  ;;  %4869 = vmatpush1.bf16.msra.mxu1 %v9392_v6  ;;  %v9484_v5 = vld [vmem:[#allocation11 + $0x18c] ss:$16 sps:$4 sm:$0xff]   ;;  %v9479_v6 = vld [vmem:[#allocation11 + $0x180] ss:$16 sps:$4 sm:$0xff]  }
 0x4c1   :  { %4784 = vmatprep.subr.bf16.mxu0 %v9397_v7  ;;  %4870 = vmatprep.subr.bf16.mxu1 %v9400_v9  ;;  %v9482_v7 = vld [vmem:[#allocation11 + $0x188] ss:$16 sps:$4 sm:$0xff]   ;;  %v9487_v9 = vld [vmem:[#allocation11 + $0x1a4] ss:$16 sps:$4 sm:$0xff]  }
 0x4c4   :  { %4785 = vmatpush1.bf16.msra.mxu0 %v9395_v10  ;;  %4871 = vmatpush1.bf16.msra.mxu1 %v9398_v12  ;;  %v9490_v10 = vld [vmem:[#allocation11 + $0x1ac] ss:$16 sps:$4 sm:$0xff]   ;;  %v9485_v12 = vld [vmem:[#allocation11 + $0x1a0] ss:$16 sps:$4 sm:$0xff]  }
 0x4c5   :  { %4786 = vmatprep.subr.bf16.mxu0 %v9403_v14  ;;  %4872 = vmatprep.subr.bf16.mxu1 %v9406_v15  ;;  %v9488_v14 = vld [vmem:[#allocation11 + $0x1a8] ss:$16 sps:$4 sm:$0xff]   ;;  %v9493_v15 = vld [vmem:[#allocation11 + $0x1c4] ss:$16 sps:$4 sm:$0xff]  }
 0x4c8   :  { %4787 = vmatpush1.bf16.msra.mxu0 %v9401_v16  ;;  %4873 = vmatpush1.bf16.msra.mxu1 %v9404_v17  ;;  %v9496_v16 = vld [vmem:[#allocation11 + $0x1cc] ss:$16 sps:$4 sm:$0xff]   ;;  %v9491_v17 = vld [vmem:[#allocation11 + $0x1c0] ss:$16 sps:$4 sm:$0xff]  }
 0x4c9   :  { %5703 = vmatprep.subr.bf16.mxu0 %v9409_v18  ;;  %5789 = vmatprep.subr.bf16.mxu1 %v9412_v19  ;;  %v9494_v18 = vld [vmem:[#allocation11 + $0x1c8] ss:$16 sps:$4 sm:$0xff]   ;;  %v9499_v19 = vld [vmem:[#allocation11 + $0x1e4] ss:$16 sps:$4 sm:$0xff]  }
 0x4cb   :  { %7945 = vmatmul.mubr.msk.bf16.vlgmr.msra.gmra.mrb[12].mxu0 %vm10330_vm0, %v10048_v11  ;;  %7953 = vmatmul.mubr.msk.bf16.vlgmr.msra.gmra.mrb[12].mxu1 %vm10330_vm0, %v10048_v11 }
 0x4cc   :  { %5704 = vmatpush1.bf16.msra.mxu0 %v9407_v20  ;;  %5790 = vmatpush1.bf16.msra.mxu1 %v9410_v21  ;;  %v9502_v20 = vld [vmem:[#allocation11 + $0x1ec] ss:$16 sps:$4 sm:$0xff]   ;;  %v9497_v21 = vld [vmem:[#allocation11 + $0x1e0] ss:$16 sps:$4 sm:$0xff]  }
 0x4cd   :  { %5705 = vmatprep.subr.bf16.mxu0 %v9415_v22  ;;  %5791 = vmatprep.subr.bf16.mxu1 %v9418_v23  ;;  %v9500_v22 = vld [vmem:[#allocation11 + $0x1e8] ss:$16 sps:$4 sm:$0xff]   ;;  %v9505_v23 = vld [vmem:[#allocation11 + $0x204] ss:$16 sps:$4 sm:$0xff]  }
 0x4d0   :  { %5706 = vmatpush1.bf16.msra.mxu0 %v9413_v24  ;;  %5792 = vmatpush1.bf16.msra.mxu1 %v9416_v25  ;;  %v9508_v24 = vld [vmem:[#allocation11 + $0x20c] ss:$16 sps:$4 sm:$0xff]   ;;  %v4051_v25 = vld [vmem:[%s10429_s11] sm:$0xf] }
 0x4d1   :  { %5707 = vmatprep.subr.bf16.mxu0 %v9421_v8  ;;  %5793 = vmatprep.subr.bf16.mxu1 %v9424_v26  ;;  %v4056_v8 = vrot.slane %v4051_v25, %v10264_v45  ;;  %v4064_v26 = vrot.slane %v4051_v25, %v10266_v46 }
 0x4d4   :  { %5708 = vmatpush1.bf16.msra.mxu0 %v9419_v27  ;;  %5794 = vmatpush1.bf16.msra.mxu1 %v9422_v28  ;;  %v4060_v27 = vrot.slane %v4051_v25, %v10268_v47 }
 0x4d5   :  { %5709 = vmatprep.subr.bf16.mxu0 %v9427_v29  ;;  %5795 = vmatprep.subr.bf16.mxu1 %v9430_v30  ;;  %v4068_v30 = vrot.slane %v4051_v25, %v10270_v48  ;;  %v9560_v25 = vld [vmem:[#allocation11 + $0x328] ss:$16 sps:$4 sm:$0xff]  }
 0x4d8   :  { %5710 = vmatpush1.bf16.msra.mxu0 %v9425_v13  ;;  %5796 = vmatpush1.bf16.msra.mxu1 %v9428_v31 }
 0x4d9   :  { %5711 = vmatprep.subr.bf16.mxu0 %v9433_v32  ;;  %5797 = vmatprep.subr.bf16.mxu1 %v9436_v33 }
 0x4dc   :  { %5712 = vmatpush1.bf16.msra.mxu0 %v9431_v34  ;;  %5798 = vmatpush1.bf16.msra.mxu1 %v9434_v35 }
 0x4dd   :  { %5713 = vmatprep.subr.bf16.mxu0 %v9439_v36  ;;  %5799 = vmatprep.subr.bf16.mxu1 %v9442_v37 }
 0x4e0   :  { %5714 = vmatpush1.bf16.msra.mxu0 %v9437_v38  ;;  %5800 = vmatpush1.bf16.msra.mxu1 %v9440_v40 }
 0x4e1   :  { %5715 = vmatprep.subr.bf16.mxu0 %v9445_v41  ;;  %5801 = vmatprep.subr.bf16.mxu1 %v9448_v42 }
 0x4e4   :  { %5716 = vmatpush1.bf16.msra.mxu0 %v9443_v43  ;;  %5802 = vmatpush1.bf16.msra.mxu1 %v9446_v44 }
 0x4e5   :  { %5717 = vmatprep.subr.bf16.mxu0 %v9451_v49  ;;  %5803 = vmatprep.subr.bf16.mxu1 %v9454_v50  ;;  %v9503_v50 = vld [vmem:[#allocation11 + $0x200] ss:$16 sps:$4 sm:$0xff]  }
 0x4e6   :  { %v9617_v49 = vld [vmem:[#allocation13 + $0x60] ss:$16 sps:$4 sm:$0xff]  }
 0x4e8   :  { %5718 = vmatpush1.bf16.msra.mxu0 %v9449_v51  ;;  %5804 = vmatpush1.bf16.msra.mxu1 %v9452_v52  ;;  %v9506_v51 = vld [vmem:[#allocation11 + $0x208] ss:$16 sps:$4 sm:$0xff]   ;;  %v9511_v52 = vld [vmem:[#allocation11 + $0x224] ss:$16 sps:$4 sm:$0xff]  }
 0x4e9   :  { %5719 = vmatprep.subr.bf16.mxu0 %v9457_v53  ;;  %5805 = vmatprep.subr.bf16.mxu1 %v9460_v54  ;;  %v9514_v53 = vld [vmem:[#allocation11 + $0x22c] ss:$16 sps:$4 sm:$0xff]   ;;  %v9509_v54 = vld [vmem:[#allocation11 + $0x220] ss:$16 sps:$4 sm:$0xff]  }
 0x4ec   :  { %5720 = vmatpush1.bf16.msra.mxu0 %v9455_v55  ;;  %5806 = vmatpush1.bf16.msra.mxu1 %v9458_v56  ;;  %v9512_v55 = vld [vmem:[#allocation11 + $0x228] ss:$16 sps:$4 sm:$0xff]   ;;  %v9517_v56 = vld [vmem:[#allocation11 + $0x244] ss:$16 sps:$4 sm:$0xff]  }
 0x4ed   :  { %5721 = vmatprep.subr.bf16.mxu0 %v9463_v57  ;;  %5807 = vmatprep.subr.bf16.mxu1 %v9466_v58  ;;  %v9520_v57 = vld [vmem:[#allocation11 + $0x24c] ss:$16 sps:$4 sm:$0xff]   ;;  %v9515_v58 = vld [vmem:[#allocation11 + $0x240] ss:$16 sps:$4 sm:$0xff]  }
 0x4f0   :  { %5722 = vmatpush1.bf16.msra.mxu0 %v9461_v59  ;;  %5808 = vmatpush1.bf16.msra.mxu1 %v9464_v60  ;;  %v9518_v59 = vld [vmem:[#allocation11 + $0x248] ss:$16 sps:$4 sm:$0xff]   ;;  %v9523_v60 = vld [vmem:[#allocation11 + $0x264] ss:$16 sps:$4 sm:$0xff]  }
 0x4f1   :  { %5723 = vmatprep.subr.bf16.mxu0 %v9469_v61  ;;  %5809 = vmatprep.subr.bf16.mxu1 %v9472_v39  ;;  %v9526_v61 = vld [vmem:[#allocation11 + $0x26c] ss:$16 sps:$4 sm:$0xff]   ;;  %v9521_v39 = vld [vmem:[#allocation11 + $0x260] ss:$16 sps:$4 sm:$0xff]  }
 0x4f4   :  { %5724 = vmatpush1.bf16.msra.mxu0 %v9467_v62  ;;  %5810 = vmatpush1.bf16.msra.mxu1 %v9470_v63  ;;  %v9524_v62 = vld [vmem:[#allocation11 + $0x268] ss:$16 sps:$4 sm:$0xff]   ;;  %v9529_v63 = vld [vmem:[#allocation11 + $0x284] ss:$16 sps:$4 sm:$0xff]  }
 0x4f5   :  { %5725 = vmatprep.subr.bf16.mxu0 %v9475_v0  ;;  %5811 = vmatprep.subr.bf16.mxu1 %v9478_v1  ;;  %v9532_v0 = vld [vmem:[#allocation11 + $0x28c] ss:$16 sps:$4 sm:$0xff]   ;;  %v9527_v1 = vld [vmem:[#allocation11 + $0x280] ss:$16 sps:$4 sm:$0xff]  }
 0x4f8   :  { %5726 = vmatpush1.bf16.msra.mxu0 %v9473_v2  ;;  %5812 = vmatpush1.bf16.msra.mxu1 %v9476_v3  ;;  %v9530_v2 = vld [vmem:[#allocation11 + $0x288] ss:$16 sps:$4 sm:$0xff]   ;;  %v9535_v3 = vld [vmem:[#allocation11 + $0x2a4] ss:$16 sps:$4 sm:$0xff]  }
 0x4f9   :  { %5727 = vmatprep.subr.bf16.mxu0 %v9481_v4  ;;  %5813 = vmatprep.subr.bf16.mxu1 %v9484_v5  ;;  %v9538_v4 = vld [vmem:[#allocation11 + $0x2ac] ss:$16 sps:$4 sm:$0xff]   ;;  %v9533_v5 = vld [vmem:[#allocation11 + $0x2a0] ss:$16 sps:$4 sm:$0xff]  }
 0x4fc   :  { %5728 = vmatpush1.bf16.msra.mxu0 %v9479_v6  ;;  %5814 = vmatpush1.bf16.msra.mxu1 %v9482_v7  ;;  %v9536_v6 = vld [vmem:[#allocation11 + $0x2a8] ss:$16 sps:$4 sm:$0xff]   ;;  %v9541_v7 = vld [vmem:[#allocation11 + $0x2c4] ss:$16 sps:$4 sm:$0xff]  }
 0x4fd   :  { %5729 = vmatprep.subr.bf16.mxu0 %v9487_v9  ;;  %5815 = vmatprep.subr.bf16.mxu1 %v9490_v10  ;;  %v9544_v9 = vld [vmem:[#allocation11 + $0x2cc] ss:$16 sps:$4 sm:$0xff]   ;;  %v9539_v10 = vld [vmem:[#allocation11 + $0x2c0] ss:$16 sps:$4 sm:$0xff]  }
 0x500   :  { %5730 = vmatpush1.bf16.msra.mxu0 %v9485_v12  ;;  %5816 = vmatpush1.bf16.msra.mxu1 %v9488_v14  ;;  %v9542_v12 = vld [vmem:[#allocation11 + $0x2c8] ss:$16 sps:$4 sm:$0xff]   ;;  %v9547_v14 = vld [vmem:[#allocation11 + $0x2e4] ss:$16 sps:$4 sm:$0xff]  }
 0x501   :  { %5731 = vmatprep.subr.bf16.mxu0 %v9493_v15  ;;  %5817 = vmatprep.subr.bf16.mxu1 %v9496_v16  ;;  %v9550_v15 = vld [vmem:[#allocation11 + $0x2ec] ss:$16 sps:$4 sm:$0xff]   ;;  %v9545_v16 = vld [vmem:[#allocation11 + $0x2e0] ss:$16 sps:$4 sm:$0xff]  }
 0x504   :  { %5732 = vmatpush1.bf16.msra.mxu0 %v9491_v17  ;;  %5818 = vmatpush1.bf16.msra.mxu1 %v9494_v18  ;;  %v9548_v17 = vld [vmem:[#allocation11 + $0x2e8] ss:$16 sps:$4 sm:$0xff]   ;;  %v9553_v18 = vld [vmem:[#allocation11 + $0x304] ss:$16 sps:$4 sm:$0xff]  }
 0x505   :  { %5733 = vmatprep.subr.bf16.mxu0 %v9499_v19  ;;  %5819 = vmatprep.subr.bf16.mxu1 %v9502_v20  ;;  %v9556_v19 = vld [vmem:[#allocation11 + $0x30c] ss:$16 sps:$4 sm:$0xff]   ;;  %v9551_v20 = vld [vmem:[#allocation11 + $0x300] ss:$16 sps:$4 sm:$0xff]  }
 0x508   :  { %5734 = vmatpush1.bf16.msra.mxu0 %v9497_v21  ;;  %5820 = vmatpush1.bf16.msra.mxu1 %v9500_v22  ;;  %v9554_v21 = vld [vmem:[#allocation11 + $0x308] ss:$16 sps:$4 sm:$0xff]   ;;  %v9559_v22 = vld [vmem:[#allocation11 + $0x324] ss:$16 sps:$4 sm:$0xff]  }
 0x509   :  { %5746 = vmatprep.subr.bf16.mxu0 %v9505_v23  ;;  %5832 = vmatprep.subr.bf16.mxu1 %v9508_v24  ;;  %v9562_v23 = vld [vmem:[#allocation11 + $0x32c] ss:$16 sps:$4 sm:$0xff]   ;;  %v9557_v24 = vld [vmem:[#allocation11 + $0x320] ss:$16 sps:$4 sm:$0xff]  }
 0x59e   :  { %v4790_v28 = vpop.f32.mrb[12].mxu0  ;;  %v4876_v29 = vpop.f32.mrb[12].mxu1 }
 0x59f   :  { %v8377_v13 = vadd.f32 %v4790_v28, %v4056_v8  ;;  %v4792_v31 = vpop.f32.mrb[13].mxu0  ;;  %v4878_v32 = vpop.f32.mrb[13].mxu1  ;;  %v8381_v33 = vadd.f32 %v4876_v29, %v4064_v26  ;;  %v9566_v28 = vld [vmem:[#allocation11 + $0x348] ss:$16 sps:$4 sm:$0xff]   ;;  %v9571_v29 = vld [vmem:[#allocation11 + $0x364] ss:$16 sps:$4 sm:$0xff]  }
 0x5a0   :  { %v4794_v34 = vpop.f32.mrb[14].mxu0  ;;  %v4880_v35 = vpop.f32.mrb[14].mxu1  ;;  %v8378_v36 = vadd.f32 %v4792_v31, %v4060_v27  ;;  %v8382_v42 = vadd.f32 %v4878_v32, %v4068_v30  ;;  %v9572_v31 = vld [vmem:[#allocation11 + $0x368] ss:$16 sps:$4 sm:$0xff]   ;;  %v9577_v32 = vld [vmem:[#allocation11 + $0x384] ss:$16 sps:$4 sm:$0xff]  }
 0x5a1   :  { %v8379_v37 = vadd.f32 %v4794_v34, %v4056_v8  ;;  %v8383_v38 = vadd.f32 %v4880_v35, %v4064_v26  ;;  %v4796_v40 = vpop.f32.mrb[15].mxu0  ;;  %v4882_v41 = vpop.f32.mrb[15].mxu1  ;;  %vm4885_vm4 = vcmp.ge.f32.partialorder %v8377_v13, 1.0  ;;  %vm4887_vm7 = vcmp.ge.f32.partialorder %v8381_v33, 1.0  ;;  %v9565_v8 = vld [vmem:[#allocation11 + $0x344] ss:$16 sps:$4 sm:$0xff]  }
 0x5a2   :  { %v8380_v43 = vadd.f32 %v4796_v40, %v4060_v27  ;;  %v8384_v44 = vadd.f32 %v4882_v41, %v4068_v30  ;;  %vm4886_vm11 = vcmp.ge.f32.partialorder %v8378_v36, 1.0  ;;  %vm4888_vm13 = vcmp.ge.f32.partialorder %v8382_v42, 1.0  ;;  %v9568_v26 = vld [vmem:[#allocation11 + $0x34c] ss:$16 sps:$4 sm:$0xff]   ;;  %v9563_v27 = vld [vmem:[#allocation11 + $0x340] ss:$16 sps:$4 sm:$0xff]  }
 0x5a3   :  { %vm4889_vm5 = vcmp.ge.f32.partialorder %v8379_v37, 1.0  ;;  %vm4891_vm6 = vcmp.ge.f32.partialorder %v8383_v38, 1.0  ;;  %v9574_v30 = vld [vmem:[#allocation11 + $0x36c] ss:$16 sps:$4 sm:$0xff]   ;;  %v9569_v13 = vld [vmem:[#allocation11 + $0x360] ss:$16 sps:$4 sm:$0xff]  }
 0x5a4   :  { %vm8092_vm8 = vmpackc.low %vm4889_vm5, %vm4885_vm4  ;;  %vm4890_vm9 = vcmp.ge.f32.partialorder %v8380_v43, 1.0  ;;  %vm4892_vm10 = vcmp.ge.f32.partialorder %v8384_v44, 1.0  ;;  %v9580_v33 = vld [vmem:[#allocation11 + $0x38c] ss:$16 sps:$4 sm:$0xff]   ;;  %v9575_v34 = vld [vmem:[#allocation11 + $0x380] ss:$16 sps:$4 sm:$0xff]  }
 0x5a5   :  { %vm10353_vm12 = vmpackc.low %vm4891_vm6, %vm4887_vm7  ;;  %v9578_v35 = vld [vmem:[#allocation11 + $0x388] ss:$16 sps:$4 sm:$0xff]   ;;  %v9583_v36 = vld [vmem:[#allocation11 + $0x3a4] ss:$16 sps:$4 sm:$0xff]  }
 0x5a6   :  { %vm8090_vm14 = vmpackc.low %vm4890_vm9, %vm4886_vm11  ;;  %v9586_v37 = vld [vmem:[#allocation11 + $0x3ac] ss:$16 sps:$4 sm:$0xff]   ;;  %v9581_v38 = vld [vmem:[#allocation11 + $0x3a0] ss:$16 sps:$4 sm:$0xff]  }
 0x5a7   :  { %vm8094_vm15 = vmpackc.low %vm4892_vm10, %vm4888_vm13  ;;  %8091 = vmatprep.mubr.msk.bf16.mxu0 %vm8090_vm14, %v10048_v11  ;;  %8099 = vmatprep.mubr.msk.bf16.mxu1 %vm8090_vm14, %v10048_v11  ;;  %v9584_v40 = vld [vmem:[#allocation11 + $0x3a8] ss:$16 sps:$4 sm:$0xff]   ;;  %v9589_v41 = vld [vmem:[#allocation11 + $0x3c4] ss:$16 sps:$4 sm:$0xff]  }
 0x5a8   :  { %8093 = vmatmul.mubr.msk.bf16.vlgmr.msra.gmra.mrb[16].mxu0 %vm8092_vm8, %v10048_v11  ;;  %8101 = vmatmul.mubr.msk.bf16.vlgmr.msra.gmra.mrb[16].mxu1 %vm8092_vm8, %v10048_v11  ;;  %v9592_v42 = vld [vmem:[#allocation11 + $0x3cc] ss:$16 sps:$4 sm:$0xff]   ;;  %v9587_v43 = vld [vmem:[#allocation11 + $0x3c0] ss:$16 sps:$4 sm:$0xff]   ;;  %v9590_v44 = vld [vmem:[#allocation11 + $0x3c8] ss:$16 sps:$4 sm:$0xff]  }
 0x5a9   :  { %5747 = vmatpush1.bf16.msra.mxu0 %v9503_v50  ;;  %5833 = vmatpush1.bf16.msra.mxu1 %v9506_v51  ;;  %v9595_v50 = vld [vmem:[#allocation11 + $0x3e4] ss:$16 sps:$4 sm:$0xff]   ;;  %v9598_v51 = vld [vmem:[#allocation11 + $0x3ec] ss:$16 sps:$4 sm:$0xff]  }
 0x5aa   :  { %8095 = vmatprep.mubr.msk.bf16.mxu0 %vm8094_vm15, %v10048_v11  ;;  %8103 = vmatprep.mubr.msk.bf16.mxu1 %vm8094_vm15, %v10048_v11 }
 0x5ab   :  { %5748 = vmatprep.subr.bf16.mxu0 %v9511_v52  ;;  %5834 = vmatprep.subr.bf16.mxu1 %v9514_v53  ;;  %v9593_v52 = vld [vmem:[#allocation11 + $0x3e0] ss:$16 sps:$4 sm:$0xff]   ;;  %v9596_v53 = vld [vmem:[#allocation11 + $0x3e8] ss:$16 sps:$4 sm:$0xff]  }
 0x5ad   :  { %5749 = vmatpush1.bf16.msra.mxu0 %v9509_v54  ;;  %5835 = vmatpush1.bf16.msra.mxu1 %v9512_v55  ;;  %v9601_v54 = vld [vmem:[#allocation13 + $0x4] ss:$16 sps:$4 sm:$0xff]   ;;  %v9604_v55 = vld [vmem:[#allocation13 + $0xc] ss:$16 sps:$4 sm:$0xff]  }
 0x5ae   :  { %5750 = vmatprep.subr.bf16.mxu0 %v9517_v56  ;;  %5836 = vmatprep.subr.bf16.mxu1 %v9520_v57  ;;  %v9599_v56 = vld [vmem:[#allocation13] ss:$16 sps:$4 sm:$0xff]   ;;  %v9602_v57 = vld [vmem:[#allocation13 + $0x8] ss:$16 sps:$4 sm:$0xff]  }
 0x5b1   :  { %5751 = vmatpush1.bf16.msra.mxu0 %v9515_v58  ;;  %5837 = vmatpush1.bf16.msra.mxu1 %v9518_v59  ;;  %v9607_v58 = vld [vmem:[#allocation13 + $0x24] ss:$16 sps:$4 sm:$0xff]   ;;  %v9610_v59 = vld [vmem:[#allocation13 + $0x2c] ss:$16 sps:$4 sm:$0xff]  }
 0x5b2   :  { %5752 = vmatprep.subr.bf16.mxu0 %v9523_v60  ;;  %5838 = vmatprep.subr.bf16.mxu1 %v9526_v61  ;;  %v9605_v60 = vld [vmem:[#allocation13 + $0x20] ss:$16 sps:$4 sm:$0xff]   ;;  %v9608_v61 = vld [vmem:[#allocation13 + $0x28] ss:$16 sps:$4 sm:$0xff]  }
 0x5b5   :  { %5753 = vmatpush1.bf16.msra.mxu0 %v9521_v39  ;;  %5839 = vmatpush1.bf16.msra.mxu1 %v9524_v62  ;;  %v9613_v39 = vld [vmem:[#allocation13 + $0x44] ss:$16 sps:$4 sm:$0xff]   ;;  %v9616_v62 = vld [vmem:[#allocation13 + $0x4c] ss:$16 sps:$4 sm:$0xff]  }
 0x5b6   :  { %5754 = vmatprep.subr.bf16.mxu0 %v9529_v63  ;;  %5840 = vmatprep.subr.bf16.mxu1 %v9532_v0  ;;  %v9611_v63 = vld [vmem:[#allocation13 + $0x40] ss:$16 sps:$4 sm:$0xff]   ;;  %v9614_v0 = vld [vmem:[#allocation13 + $0x48] ss:$16 sps:$4 sm:$0xff]  }
 0x5b9   :  { %5755 = vmatpush1.bf16.msra.mxu0 %v9527_v1  ;;  %5841 = vmatpush1.bf16.msra.mxu1 %v9530_v2  ;;  %v9619_v1 = vld [vmem:[#allocation13 + $0x64] ss:$16 sps:$4 sm:$0xff]   ;;  %v9622_v2 = vld [vmem:[#allocation13 + $0x6c] ss:$16 sps:$4 sm:$0xff]  }
 0x5ba   :  { %5756 = vmatprep.subr.bf16.mxu0 %v9535_v3  ;;  %5842 = vmatprep.subr.bf16.mxu1 %v9538_v4  ;;  %v9620_v3 = vld [vmem:[#allocation13 + $0x68] ss:$16 sps:$4 sm:$0xff]   ;;  %v9625_v4 = vld [vmem:[#allocation13 + $0x84] ss:$16 sps:$4 sm:$0xff]  }
 0x5bd   :  { %5757 = vmatpush1.bf16.msra.mxu0 %v9533_v5  ;;  %5843 = vmatpush1.bf16.msra.mxu1 %v9536_v6  ;;  %v9628_v5 = vld [vmem:[#allocation13 + $0x8c] ss:$16 sps:$4 sm:$0xff]   ;;  %v9623_v6 = vld [vmem:[#allocation13 + $0x80] ss:$16 sps:$4 sm:$0xff]  }
 0x5be   :  { %5758 = vmatprep.subr.bf16.mxu0 %v9541_v7  ;;  %5844 = vmatprep.subr.bf16.mxu1 %v9544_v9  ;;  %v9626_v7 = vld [vmem:[#allocation13 + $0x88] ss:$16 sps:$4 sm:$0xff]   ;;  %v9631_v9 = vld [vmem:[#allocation13 + $0xa4] ss:$16 sps:$4 sm:$0xff]  }
 0x5c1   :  { %5759 = vmatpush1.bf16.msra.mxu0 %v9539_v10  ;;  %5845 = vmatpush1.bf16.msra.mxu1 %v9542_v12  ;;  %v9634_v10 = vld [vmem:[#allocation13 + $0xac] ss:$16 sps:$4 sm:$0xff]   ;;  %v9629_v12 = vld [vmem:[#allocation13 + $0xa0] ss:$16 sps:$4 sm:$0xff]  }
 0x5c2   :  { %5760 = vmatprep.subr.bf16.mxu0 %v9547_v14  ;;  %5846 = vmatprep.subr.bf16.mxu1 %v9550_v15  ;;  %v9632_v14 = vld [vmem:[#allocation13 + $0xa8] ss:$16 sps:$4 sm:$0xff]   ;;  %v9637_v15 = vld [vmem:[#allocation13 + $0xc4] ss:$16 sps:$4 sm:$0xff]  }
 0x5c5   :  { %5761 = vmatpush1.bf16.msra.mxu0 %v9545_v16  ;;  %5847 = vmatpush1.bf16.msra.mxu1 %v9548_v17  ;;  %v9640_v16 = vld [vmem:[#allocation13 + $0xcc] ss:$16 sps:$4 sm:$0xff]   ;;  %v9635_v17 = vld [vmem:[#allocation13 + $0xc0] ss:$16 sps:$4 sm:$0xff]  }
 0x5c6   :  { %5762 = vmatprep.subr.bf16.mxu0 %v9553_v18  ;;  %5848 = vmatprep.subr.bf16.mxu1 %v9556_v19  ;;  %v9638_v18 = vld [vmem:[#allocation13 + $0xc8] ss:$16 sps:$4 sm:$0xff]   ;;  %v9643_v19 = vld [vmem:[#allocation13 + $0xe4] ss:$16 sps:$4 sm:$0xff]  }
 0x5c9   :  { %5763 = vmatpush1.bf16.msra.mxu0 %v9551_v20  ;;  %5849 = vmatpush1.bf16.msra.mxu1 %v9554_v21  ;;  %v9646_v20 = vld [vmem:[#allocation13 + $0xec] ss:$16 sps:$4 sm:$0xff]   ;;  %v9641_v21 = vld [vmem:[#allocation13 + $0xe0] ss:$16 sps:$4 sm:$0xff]  }
 0x5ca   :  { %5764 = vmatprep.subr.bf16.mxu0 %v9559_v22  ;;  %5850 = vmatprep.subr.bf16.mxu1 %v9562_v23  ;;  %v9644_v22 = vld [vmem:[#allocation13 + $0xe8] ss:$16 sps:$4 sm:$0xff]   ;;  %v9649_v23 = vld [vmem:[#allocation13 + $0x104] ss:$16 sps:$4 sm:$0xff]  }
 0x5cd   :  { %5765 = vmatpush1.bf16.msra.mxu0 %v9557_v24  ;;  %5851 = vmatpush1.bf16.msra.mxu1 %v9560_v25  ;;  %v9652_v24 = vld [vmem:[#allocation13 + $0x10c] ss:$16 sps:$4 sm:$0xff]   ;;  %v9647_v25 = vld [vmem:[#allocation13 + $0x100] ss:$16 sps:$4 sm:$0xff]  }
 0x5ce   :  { %5766 = vmatprep.subr.bf16.mxu0 %v9565_v8  ;;  %5852 = vmatprep.subr.bf16.mxu1 %v9568_v26  ;;  %v9650_v8 = vld [vmem:[#allocation13 + $0x108] ss:$16 sps:$4 sm:$0xff]   ;;  %v9655_v26 = vld [vmem:[#allocation13 + $0x124] ss:$16 sps:$4 sm:$0xff]  }
 0x5d1   :  { %5767 = vmatpush1.bf16.msra.mxu0 %v9563_v27  ;;  %5853 = vmatpush1.bf16.msra.mxu1 %v9566_v28  ;;  %v9658_v27 = vld [vmem:[#allocation13 + $0x12c] ss:$16 sps:$4 sm:$0xff]   ;;  %v9653_v28 = vld [vmem:[#allocation13 + $0x120] ss:$16 sps:$4 sm:$0xff]  }
 0x5d2   :  { %5768 = vmatprep.subr.bf16.mxu0 %v9571_v29  ;;  %5854 = vmatprep.subr.bf16.mxu1 %v9574_v30  ;;  %v9656_v29 = vld [vmem:[#allocation13 + $0x128] ss:$16 sps:$4 sm:$0xff]   ;;  %v9661_v30 = vld [vmem:[#allocation13 + $0x144] ss:$16 sps:$4 sm:$0xff]  }
 0x5d5   :  { %5769 = vmatpush1.bf16.msra.mxu0 %v9569_v13  ;;  %5855 = vmatpush1.bf16.msra.mxu1 %v9572_v31  ;;  %v9664_v13 = vld [vmem:[#allocation13 + $0x14c] ss:$16 sps:$4 sm:$0xff]   ;;  %v9659_v31 = vld [vmem:[#allocation13 + $0x140] ss:$16 sps:$4 sm:$0xff]  }
 0x5d6   :  { %5770 = vmatprep.subr.bf16.mxu0 %v9577_v32  ;;  %5856 = vmatprep.subr.bf16.mxu1 %v9580_v33  ;;  %v9662_v32 = vld [vmem:[#allocation13 + $0x148] ss:$16 sps:$4 sm:$0xff]   ;;  %v9667_v33 = vld [vmem:[#allocation13 + $0x164] ss:$16 sps:$4 sm:$0xff]  }
 0x5d9   :  { %5771 = vmatpush1.bf16.msra.mxu0 %v9575_v34  ;;  %5857 = vmatpush1.bf16.msra.mxu1 %v9578_v35  ;;  %v9670_v34 = vld [vmem:[#allocation13 + $0x16c] ss:$16 sps:$4 sm:$0xff]   ;;  %v9665_v35 = vld [vmem:[#allocation13 + $0x160] ss:$16 sps:$4 sm:$0xff]  }
 0x5da   :  { %5772 = vmatprep.subr.bf16.mxu0 %v9583_v36  ;;  %5858 = vmatprep.subr.bf16.mxu1 %v9586_v37  ;;  %v9668_v36 = vld [vmem:[#allocation13 + $0x168] ss:$16 sps:$4 sm:$0xff]   ;;  %v9673_v37 = vld [vmem:[#allocation13 + $0x184] ss:$16 sps:$4 sm:$0xff]  }
 0x5dd   :  { %5773 = vmatpush1.bf16.msra.mxu0 %v9581_v38  ;;  %5859 = vmatpush1.bf16.msra.mxu1 %v9584_v40  ;;  %v9676_v38 = vld [vmem:[#allocation13 + $0x18c] ss:$16 sps:$4 sm:$0xff]   ;;  %v9671_v40 = vld [vmem:[#allocation13 + $0x180] ss:$16 sps:$4 sm:$0xff]  }
 0x5de   :  { %5774 = vmatprep.subr.bf16.mxu0 %v9589_v41  ;;  %5860 = vmatprep.subr.bf16.mxu1 %v9592_v42  ;;  %v9674_v41 = vld [vmem:[#allocation13 + $0x188] ss:$16 sps:$4 sm:$0xff]   ;;  %v9679_v42 = vld [vmem:[#allocation13 + $0x1a4] ss:$16 sps:$4 sm:$0xff]  }
 0x5e1   :  { %5775 = vmatpush1.bf16.msra.mxu0 %v9587_v43  ;;  %5861 = vmatpush1.bf16.msra.mxu1 %v9590_v44  ;;  %v9682_v43 = vld [vmem:[#allocation13 + $0x1ac] ss:$16 sps:$4 sm:$0xff]   ;;  %v9677_v44 = vld [vmem:[#allocation13 + $0x1a0] ss:$16 sps:$4 sm:$0xff]  }
 0x5e2   :  { %5776 = vmatprep.subr.bf16.mxu0 %v9595_v50  ;;  %5862 = vmatprep.subr.bf16.mxu1 %v9598_v51  ;;  %v9680_v50 = vld [vmem:[#allocation13 + $0x1a8] ss:$16 sps:$4 sm:$0xff]   ;;  %v9685_v51 = vld [vmem:[#allocation13 + $0x1c4] ss:$16 sps:$4 sm:$0xff]  }
 0x5e5   :  { %5777 = vmatpush1.bf16.msra.mxu0 %v9593_v52  ;;  %5863 = vmatpush1.bf16.msra.mxu1 %v9596_v53  ;;  %v9688_v52 = vld [vmem:[#allocation13 + $0x1cc] ss:$16 sps:$4 sm:$0xff]   ;;  %v9683_v53 = vld [vmem:[#allocation13 + $0x1c0] ss:$16 sps:$4 sm:$0xff]  }
 0x5e6   :  { %6693 = vmatprep.subr.bf16.mxu0 %v9601_v54  ;;  %6779 = vmatprep.subr.bf16.mxu1 %v9604_v55  ;;  %v9686_v54 = vld [vmem:[#allocation13 + $0x1c8] ss:$16 sps:$4 sm:$0xff]   ;;  %v9691_v55 = vld [vmem:[#allocation13 + $0x1e4] ss:$16 sps:$4 sm:$0xff]  }
 0x5e8   :  { %8097 = vmatmul.mubr.msk.bf16.vlgmr.msra.gmra.mrb[16].mxu0 %vm10353_vm12, %v10048_v11  ;;  %8105 = vmatmul.mubr.msk.bf16.vlgmr.msra.gmra.mrb[16].mxu1 %vm10353_vm12, %v10048_v11 }
 0x5e9   :  { %6694 = vmatpush1.bf16.msra.mxu0 %v9599_v56  ;;  %6780 = vmatpush1.bf16.msra.mxu1 %v9602_v57  ;;  %v9694_v56 = vld [vmem:[#allocation13 + $0x1ec] ss:$16 sps:$4 sm:$0xff]   ;;  %v9689_v57 = vld [vmem:[#allocation13 + $0x1e0] ss:$16 sps:$4 sm:$0xff]  }
 0x5ea   :  { %6695 = vmatprep.subr.bf16.mxu0 %v9607_v58  ;;  %6781 = vmatprep.subr.bf16.mxu1 %v9610_v59  ;;  %v9692_v58 = vld [vmem:[#allocation13 + $0x1e8] ss:$16 sps:$4 sm:$0xff]   ;;  %v9697_v59 = vld [vmem:[#allocation13 + $0x204] ss:$16 sps:$4 sm:$0xff]  }
 0x5ed   :  { %6696 = vmatpush1.bf16.msra.mxu0 %v9605_v60  ;;  %6782 = vmatpush1.bf16.msra.mxu1 %v9608_v61  ;;  %v9700_v60 = vld [vmem:[#allocation13 + $0x20c] ss:$16 sps:$4 sm:$0xff]   ;;  %v5041_v61 = vld [vmem:[%s10430_s12] sm:$0xf] }
 0x5ee   :  { %6697 = vmatprep.subr.bf16.mxu0 %v9613_v39  ;;  %6783 = vmatprep.subr.bf16.mxu1 %v9616_v62  ;;  %v5046_v39 = vrot.slane %v5041_v61, %v10264_v45  ;;  %v5054_v62 = vrot.slane %v5041_v61, %v10266_v46 }
 0x5f1   :  { %6698 = vmatpush1.bf16.msra.mxu0 %v9611_v63  ;;  %6784 = vmatpush1.bf16.msra.mxu1 %v9614_v0  ;;  %v5050_v63 = vrot.slane %v5041_v61, %v10268_v47 }
 0x5f2   :  { %6699 = vmatprep.subr.bf16.mxu0 %v9619_v1  ;;  %6785 = vmatprep.subr.bf16.mxu1 %v9622_v2  ;;  %v5058_v2 = vrot.slane %v5041_v61, %v10270_v48  ;;  %v9752_v61 = vld [vmem:[#allocation13 + $0x328] ss:$16 sps:$4 sm:$0xff]  }
 0x5f5   :  { %6700 = vmatpush1.bf16.msra.mxu0 %v9617_v49  ;;  %6786 = vmatpush1.bf16.msra.mxu1 %v9620_v3 }
 0x5f6   :  { %6701 = vmatprep.subr.bf16.mxu0 %v9625_v4  ;;  %6787 = vmatprep.subr.bf16.mxu1 %v9628_v5 }
 0x5f9   :  { %6702 = vmatpush1.bf16.msra.mxu0 %v9623_v6  ;;  %6788 = vmatpush1.bf16.msra.mxu1 %v9626_v7 }
 0x5fa   :  { %6703 = vmatprep.subr.bf16.mxu0 %v9631_v9  ;;  %6789 = vmatprep.subr.bf16.mxu1 %v9634_v10 }
 0x5fd   :  { %6704 = vmatpush1.bf16.msra.mxu0 %v9629_v12  ;;  %6790 = vmatpush1.bf16.msra.mxu1 %v9632_v14 }
 0x5fe   :  { %6705 = vmatprep.subr.bf16.mxu0 %v9637_v15  ;;  %6791 = vmatprep.subr.bf16.mxu1 %v9640_v16 }
 0x601   :  { %6706 = vmatpush1.bf16.msra.mxu0 %v9635_v17  ;;  %6792 = vmatpush1.bf16.msra.mxu1 %v9638_v18 }
 0x602   :  { %6707 = vmatprep.subr.bf16.mxu0 %v9643_v19  ;;  %6793 = vmatprep.subr.bf16.mxu1 %v9646_v20  ;;  %v9695_v20 = vld [vmem:[#allocation13 + $0x200] ss:$16 sps:$4 sm:$0xff]   ;;  %v9805_v19 = vld [vmem:[#allocation14 + $0x18] sm:$0xff]  }
 0x605   :  { %6708 = vmatpush1.bf16.msra.mxu0 %v9641_v21  ;;  %6794 = vmatpush1.bf16.msra.mxu1 %v9644_v22  ;;  %v9698_v21 = vld [vmem:[#allocation13 + $0x208] ss:$16 sps:$4 sm:$0xff]   ;;  %v9703_v22 = vld [vmem:[#allocation13 + $0x224] ss:$16 sps:$4 sm:$0xff]  }
 0x606   :  { %6709 = vmatprep.subr.bf16.mxu0 %v9649_v23  ;;  %6795 = vmatprep.subr.bf16.mxu1 %v9652_v24  ;;  %v9706_v23 = vld [vmem:[#allocation13 + $0x22c] ss:$16 sps:$4 sm:$0xff]   ;;  %v9701_v24 = vld [vmem:[#allocation13 + $0x220] ss:$16 sps:$4 sm:$0xff]  }
 0x609   :  { %6710 = vmatpush1.bf16.msra.mxu0 %v9647_v25  ;;  %6796 = vmatpush1.bf16.msra.mxu1 %v9650_v8  ;;  %v9704_v25 = vld [vmem:[#allocation13 + $0x228] ss:$16 sps:$4 sm:$0xff]   ;;  %v9709_v8 = vld [vmem:[#allocation13 + $0x244] ss:$16 sps:$4 sm:$0xff]  }
 0x60a   :  { %6711 = vmatprep.subr.bf16.mxu0 %v9655_v26  ;;  %6797 = vmatprep.subr.bf16.mxu1 %v9658_v27  ;;  %v9712_v26 = vld [vmem:[#allocation13 + $0x24c] ss:$16 sps:$4 sm:$0xff]   ;;  %v9707_v27 = vld [vmem:[#allocation13 + $0x240] ss:$16 sps:$4 sm:$0xff]  }
 0x60d   :  { %6712 = vmatpush1.bf16.msra.mxu0 %v9653_v28  ;;  %6798 = vmatpush1.bf16.msra.mxu1 %v9656_v29  ;;  %v9710_v28 = vld [vmem:[#allocation13 + $0x248] ss:$16 sps:$4 sm:$0xff]   ;;  %v9715_v29 = vld [vmem:[#allocation13 + $0x264] ss:$16 sps:$4 sm:$0xff]  }
 0x60e   :  { %6713 = vmatprep.subr.bf16.mxu0 %v9661_v30  ;;  %6799 = vmatprep.subr.bf16.mxu1 %v9664_v13  ;;  %v9718_v30 = vld [vmem:[#allocation13 + $0x26c] ss:$16 sps:$4 sm:$0xff]   ;;  %v9713_v13 = vld [vmem:[#allocation13 + $0x260] ss:$16 sps:$4 sm:$0xff]  }
 0x611   :  { %6714 = vmatpush1.bf16.msra.mxu0 %v9659_v31  ;;  %6800 = vmatpush1.bf16.msra.mxu1 %v9662_v32  ;;  %v9716_v31 = vld [vmem:[#allocation13 + $0x268] ss:$16 sps:$4 sm:$0xff]   ;;  %v9721_v32 = vld [vmem:[#allocation13 + $0x284] ss:$16 sps:$4 sm:$0xff]  }
 0x612   :  { %6715 = vmatprep.subr.bf16.mxu0 %v9667_v33  ;;  %6801 = vmatprep.subr.bf16.mxu1 %v9670_v34  ;;  %v9724_v33 = vld [vmem:[#allocation13 + $0x28c] ss:$16 sps:$4 sm:$0xff]   ;;  %v9719_v34 = vld [vmem:[#allocation13 + $0x280] ss:$16 sps:$4 sm:$0xff]  }
 0x615   :  { %6716 = vmatpush1.bf16.msra.mxu0 %v9665_v35  ;;  %6802 = vmatpush1.bf16.msra.mxu1 %v9668_v36  ;;  %v9722_v35 = vld [vmem:[#allocation13 + $0x288] ss:$16 sps:$4 sm:$0xff]   ;;  %v9727_v36 = vld [vmem:[#allocation13 + $0x2a4] ss:$16 sps:$4 sm:$0xff]  }
 0x616   :  { %6717 = vmatprep.subr.bf16.mxu0 %v9673_v37  ;;  %6803 = vmatprep.subr.bf16.mxu1 %v9676_v38  ;;  %v9730_v37 = vld [vmem:[#allocation13 + $0x2ac] ss:$16 sps:$4 sm:$0xff]   ;;  %v9725_v38 = vld [vmem:[#allocation13 + $0x2a0] ss:$16 sps:$4 sm:$0xff]  }
 0x619   :  { %6718 = vmatpush1.bf16.msra.mxu0 %v9671_v40  ;;  %6804 = vmatpush1.bf16.msra.mxu1 %v9674_v41  ;;  %v9728_v40 = vld [vmem:[#allocation13 + $0x2a8] ss:$16 sps:$4 sm:$0xff]   ;;  %v9733_v41 = vld [vmem:[#allocation13 + $0x2c4] ss:$16 sps:$4 sm:$0xff]  }
 0x61a   :  { %6719 = vmatprep.subr.bf16.mxu0 %v9679_v42  ;;  %6805 = vmatprep.subr.bf16.mxu1 %v9682_v43  ;;  %v9736_v42 = vld [vmem:[#allocation13 + $0x2cc] ss:$16 sps:$4 sm:$0xff]   ;;  %v9731_v43 = vld [vmem:[#allocation13 + $0x2c0] ss:$16 sps:$4 sm:$0xff]  }
 0x61d   :  { %6720 = vmatpush1.bf16.msra.mxu0 %v9677_v44  ;;  %6806 = vmatpush1.bf16.msra.mxu1 %v9680_v50  ;;  %v9734_v44 = vld [vmem:[#allocation13 + $0x2c8] ss:$16 sps:$4 sm:$0xff]   ;;  %v9739_v50 = vld [vmem:[#allocation13 + $0x2e4] ss:$16 sps:$4 sm:$0xff]  }
 0x61e   :  { %6721 = vmatprep.subr.bf16.mxu0 %v9685_v51  ;;  %6807 = vmatprep.subr.bf16.mxu1 %v9688_v52  ;;  %v9742_v51 = vld [vmem:[#allocation13 + $0x2ec] ss:$16 sps:$4 sm:$0xff]   ;;  %v9737_v52 = vld [vmem:[#allocation13 + $0x2e0] ss:$16 sps:$4 sm:$0xff]  }
 0x621   :  { %6722 = vmatpush1.bf16.msra.mxu0 %v9683_v53  ;;  %6808 = vmatpush1.bf16.msra.mxu1 %v9686_v54  ;;  %v9740_v53 = vld [vmem:[#allocation13 + $0x2e8] ss:$16 sps:$4 sm:$0xff]   ;;  %v9745_v54 = vld [vmem:[#allocation13 + $0x304] ss:$16 sps:$4 sm:$0xff]  }
 0x622   :  { %6723 = vmatprep.subr.bf16.mxu0 %v9691_v55  ;;  %6809 = vmatprep.subr.bf16.mxu1 %v9694_v56  ;;  %v9748_v55 = vld [vmem:[#allocation13 + $0x30c] ss:$16 sps:$4 sm:$0xff]   ;;  %v9743_v56 = vld [vmem:[#allocation13 + $0x300] ss:$16 sps:$4 sm:$0xff]  }
 0x625   :  { %6724 = vmatpush1.bf16.msra.mxu0 %v9689_v57  ;;  %6810 = vmatpush1.bf16.msra.mxu1 %v9692_v58  ;;  %v9746_v57 = vld [vmem:[#allocation13 + $0x308] ss:$16 sps:$4 sm:$0xff]   ;;  %v9751_v58 = vld [vmem:[#allocation13 + $0x324] ss:$16 sps:$4 sm:$0xff]  }
 0x626   :  { %6736 = vmatprep.subr.bf16.mxu0 %v9697_v59  ;;  %6822 = vmatprep.subr.bf16.mxu1 %v9700_v60  ;;  %v9754_v59 = vld [vmem:[#allocation13 + $0x32c] ss:$16 sps:$4 sm:$0xff]   ;;  %v9749_v60 = vld [vmem:[#allocation13 + $0x320] ss:$16 sps:$4 sm:$0xff]  }
 0x6bb   :  { %v5780_v0 = vpop.f32.mrb[16].mxu0  ;;  %v5866_v1 = vpop.f32.mrb[16].mxu1 }
 0x6bc   :  { %v8385_v49 = vadd.f32 %v5780_v0, %v5046_v39  ;;  %v5782_v3 = vpop.f32.mrb[17].mxu0  ;;  %v5868_v4 = vpop.f32.mrb[17].mxu1  ;;  %v8389_v5 = vadd.f32 %v5866_v1, %v5054_v62  ;;  %v9758_v0 = vld [vmem:[#allocation13 + $0x348] ss:$16 sps:$4 sm:$0xff]   ;;  %v9763_v1 = vld [vmem:[#allocation13 + $0x364] ss:$16 sps:$4 sm:$0xff]  }
 0x6bd   :  { %v5784_v6 = vpop.f32.mrb[18].mxu0  ;;  %v5870_v7 = vpop.f32.mrb[18].mxu1  ;;  %v8386_v9 = vadd.f32 %v5782_v3, %v5050_v63  ;;  %v8390_v16 = vadd.f32 %v5868_v4, %v5058_v2  ;;  %v9764_v3 = vld [vmem:[#allocation13 + $0x368] ss:$16 sps:$4 sm:$0xff]   ;;  %v9769_v4 = vld [vmem:[#allocation13 + $0x384] ss:$16 sps:$4 sm:$0xff]  }
 0x6be   :  { %v8387_v10 = vadd.f32 %v5784_v6, %v5046_v39  ;;  %v8391_v12 = vadd.f32 %v5870_v7, %v5054_v62  ;;  %v5786_v14 = vpop.f32.mrb[19].mxu0  ;;  %v5872_v15 = vpop.f32.mrb[19].mxu1  ;;  %vm5875_vm0 = vcmp.ge.f32.partialorder %v8385_v49, 1.0  ;;  %vm5877_vm3 = vcmp.ge.f32.partialorder %v8389_v5, 1.0  ;;  %v9757_v39 = vld [vmem:[#allocation13 + $0x344] ss:$16 sps:$4 sm:$0xff]  }
 0x6bf   :  { %v8388_v17 = vadd.f32 %v5786_v14, %v5050_v63  ;;  %v8392_v18 = vadd.f32 %v5872_v15, %v5058_v2  ;;  %vm5876_vm7 = vcmp.ge.f32.partialorder %v8386_v9, 1.0  ;;  %vm5878_vm9 = vcmp.ge.f32.partialorder %v8390_v16, 1.0  ;;  %v9760_v62 = vld [vmem:[#allocation13 + $0x34c] ss:$16 sps:$4 sm:$0xff]   ;;  %v9755_v63 = vld [vmem:[#allocation13 + $0x340] ss:$16 sps:$4 sm:$0xff]  }
 0x6c0   :  { %vm5879_vm1 = vcmp.ge.f32.partialorder %v8387_v10, 1.0  ;;  %vm5881_vm2 = vcmp.ge.f32.partialorder %v8391_v12, 1.0  ;;  %v9766_v2 = vld [vmem:[#allocation13 + $0x36c] ss:$16 sps:$4 sm:$0xff]   ;;  %v9761_v49 = vld [vmem:[#allocation13 + $0x360] ss:$16 sps:$4 sm:$0xff]  }
 0x6c1   :  { %vm8244_vm4 = vmpackc.low %vm5879_vm1, %vm5875_vm0  ;;  %vm5880_vm5 = vcmp.ge.f32.partialorder %v8388_v17, 1.0  ;;  %vm5882_vm6 = vcmp.ge.f32.partialorder %v8392_v18, 1.0  ;;  %v9772_v5 = vld [vmem:[#allocation13 + $0x38c] ss:$16 sps:$4 sm:$0xff]   ;;  %v9767_v6 = vld [vmem:[#allocation13 + $0x380] ss:$16 sps:$4 sm:$0xff]  }
 0x6c2   :  { %vm10376_vm8 = vmpackc.low %vm5881_vm2, %vm5877_vm3  ;;  %v9770_v7 = vld [vmem:[#allocation13 + $0x388] ss:$16 sps:$4 sm:$0xff]   ;;  %v9775_v9 = vld [vmem:[#allocation13 + $0x3a4] ss:$16 sps:$4 sm:$0xff]  }
 0x6c3   :  { %vm8242_vm10 = vmpackc.low %vm5880_vm5, %vm5876_vm7  ;;  %v9778_v10 = vld [vmem:[#allocation13 + $0x3ac] ss:$16 sps:$4 sm:$0xff]   ;;  %v9773_v12 = vld [vmem:[#allocation13 + $0x3a0] ss:$16 sps:$4 sm:$0xff]  }
 0x6c4   :  { %vm8246_vm11 = vmpackc.low %vm5882_vm6, %vm5878_vm9  ;;  %8243 = vmatprep.mubr.msk.bf16.mxu0 %vm8242_vm10, %v10048_v11  ;;  %8251 = vmatprep.mubr.msk.bf16.mxu1 %vm8242_vm10, %v10048_v11  ;;  %v9776_v14 = vld [vmem:[#allocation13 + $0x3a8] ss:$16 sps:$4 sm:$0xff]   ;;  %v9781_v15 = vld [vmem:[#allocation13 + $0x3c4] ss:$16 sps:$4 sm:$0xff]  }
 0x6c5   :  { %8245 = vmatmul.mubr.msk.bf16.vlgmr.msra.gmra.mrb[20].mxu0 %vm8244_vm4, %v10048_v11  ;;  %8253 = vmatmul.mubr.msk.bf16.vlgmr.msra.gmra.mrb[20].mxu1 %vm8244_vm4, %v10048_v11  ;;  %v9784_v16 = vld [vmem:[#allocation13 + $0x3cc] ss:$16 sps:$4 sm:$0xff]   ;;  %v9779_v17 = vld [vmem:[#allocation13 + $0x3c0] ss:$16 sps:$4 sm:$0xff]   ;;  %v9782_v18 = vld [vmem:[#allocation13 + $0x3c8] ss:$16 sps:$4 sm:$0xff]  }
 0x6c6   :  { %6737 = vmatpush1.bf16.msra.mxu0 %v9695_v20  ;;  %6823 = vmatpush1.bf16.msra.mxu1 %v9698_v21  ;;  %v9787_v20 = vld [vmem:[#allocation13 + $0x3e4] ss:$16 sps:$4 sm:$0xff]   ;;  %v9790_v21 = vld [vmem:[#allocation13 + $0x3ec] ss:$16 sps:$4 sm:$0xff]  }
 0x6c7   :  { %8247 = vmatprep.mubr.msk.bf16.mxu0 %vm8246_vm11, %v10048_v11  ;;  %8255 = vmatprep.mubr.msk.bf16.mxu1 %vm8246_vm11, %v10048_v11 }
 0x6c8   :  { %6738 = vmatprep.subr.bf16.mxu0 %v9703_v22  ;;  %6824 = vmatprep.subr.bf16.mxu1 %v9706_v23  ;;  %v9785_v22 = vld [vmem:[#allocation13 + $0x3e0] ss:$16 sps:$4 sm:$0xff]   ;;  %v9788_v23 = vld [vmem:[#allocation13 + $0x3e8] ss:$16 sps:$4 sm:$0xff]  }
 0x6ca   :  { %6739 = vmatpush1.bf16.msra.mxu0 %v9701_v24  ;;  %6825 = vmatpush1.bf16.msra.mxu1 %v9704_v25  ;;  %v9791_v24 = vld [vmem:[#allocation14 + $0x40] sm:$0xff]  }
 0x6cb   :  { %6740 = vmatprep.subr.bf16.mxu0 %v9709_v8  ;;  %6826 = vmatprep.subr.bf16.mxu1 %v9712_v26  ;;  %v9792_v25 = vld [vmem:[#allocation14 + $0xc0] sm:$0xff]  }
 0x6cc   :  { %v9793_v8 = vld [vmem:[#allocation14] sm:$0xff]  }
 0x6cd   :  { %v9794_v26 = vld [vmem:[#allocation14 + $0x80] sm:$0xff]  }
 0x6ce   :  { %6741 = vmatpush1.bf16.msra.mxu0 %v9707_v27  ;;  %6827 = vmatpush1.bf16.msra.mxu1 %v9710_v28  ;;  %v9795_v27 = vld [vmem:[#allocation14 + $0x48] sm:$0xff]  }
 0x6cf   :  { %6742 = vmatprep.subr.bf16.mxu0 %v9715_v29  ;;  %6828 = vmatprep.subr.bf16.mxu1 %v9718_v30  ;;  %v9796_v28 = vld [vmem:[#allocation14 + $0xc8] sm:$0xff]  }
 0x6d0   :  { %v9797_v29 = vld [vmem:[#allocation14 + $0x8] sm:$0xff]  }
 0x6d1   :  { %v9798_v30 = vld [vmem:[#allocation14 + $0x88] sm:$0xff]  }
 0x6d2   :  { %6743 = vmatpush1.bf16.msra.mxu0 %v9713_v13  ;;  %6829 = vmatpush1.bf16.msra.mxu1 %v9716_v31  ;;  %v9799_v13 = vld [vmem:[#allocation14 + $0x50] sm:$0xff]  }
 0x6d3   :  { %6744 = vmatprep.subr.bf16.mxu0 %v9721_v32  ;;  %6830 = vmatprep.subr.bf16.mxu1 %v9724_v33  ;;  %v9800_v31 = vld [vmem:[#allocation14 + $0xd0] sm:$0xff]  }
 0x6d4   :  { %v9801_v32 = vld [vmem:[#allocation14 + $0x10] sm:$0xff]  }
 0x6d5   :  { %v9802_v33 = vld [vmem:[#allocation14 + $0x90] sm:$0xff]  }
 0x6d6   :  { %6745 = vmatpush1.bf16.msra.mxu0 %v9719_v34  ;;  %6831 = vmatpush1.bf16.msra.mxu1 %v9722_v35  ;;  %v9803_v34 = vld [vmem:[#allocation14 + $0x58] sm:$0xff]  }
 0x6d7   :  { %6746 = vmatprep.subr.bf16.mxu0 %v9727_v36  ;;  %6832 = vmatprep.subr.bf16.mxu1 %v9730_v37  ;;  %v9804_v35 = vld [vmem:[#allocation14 + $0xd8] sm:$0xff]   ;;  %v9807_v37 = vld [vmem:[#allocation14 + $0x60] sm:$0xff]  }
 0x6d8   :  { %v9806_v36 = vld [vmem:[#allocation14 + $0x98] sm:$0xff]  }
 0x6da   :  { %6747 = vmatpush1.bf16.msra.mxu0 %v9725_v38  ;;  %6833 = vmatpush1.bf16.msra.mxu1 %v9728_v40  ;;  %v9808_v38 = vld [vmem:[#allocation14 + $0xe0] sm:$0xff]  }
 0x6db   :  { %6748 = vmatprep.subr.bf16.mxu0 %v9733_v41  ;;  %6834 = vmatprep.subr.bf16.mxu1 %v9736_v42  ;;  %v9809_v40 = vld [vmem:[#allocation14 + $0x20] sm:$0xff]   ;;  %v9811_v42 = vld [vmem:[#allocation14 + $0x68] sm:$0xff]  }
 0x6dc   :  { %v9810_v41 = vld [vmem:[#allocation14 + $0xa0] sm:$0xff]  }
 0x6de   :  { %6749 = vmatpush1.bf16.msra.mxu0 %v9731_v43  ;;  %6835 = vmatpush1.bf16.msra.mxu1 %v9734_v44  ;;  %v9812_v43 = vld [vmem:[#allocation14 + $0xe8] sm:$0xff]  }
 0x6df   :  { %6750 = vmatprep.subr.bf16.mxu0 %v9739_v50  ;;  %6836 = vmatprep.subr.bf16.mxu1 %v9742_v51  ;;  %v9813_v44 = vld [vmem:[#allocation14 + $0x28] sm:$0xff]   ;;  %v9815_v51 = vld [vmem:[#allocation14 + $0x70] sm:$0xff]  }
 0x6e0   :  { %v9814_v50 = vld [vmem:[#allocation14 + $0xa8] sm:$0xff]  }
 0x6e2   :  { %6751 = vmatpush1.bf16.msra.mxu0 %v9737_v52  ;;  %6837 = vmatpush1.bf16.msra.mxu1 %v9740_v53  ;;  %v9816_v52 = vld [vmem:[#allocation14 + $0xf0] sm:$0xff]  }
 0x6e3   :  { %6752 = vmatprep.subr.bf16.mxu0 %v9745_v54  ;;  %6838 = vmatprep.subr.bf16.mxu1 %v9748_v55  ;;  %v9817_v53 = vld [vmem:[#allocation14 + $0x30] sm:$0xff]   ;;  %v9819_v55 = vld [vmem:[#allocation14 + $0x78] sm:$0xff]  }
 0x6e4   :  { %v9818_v54 = vld [vmem:[#allocation14 + $0xb0] sm:$0xff]  }
 0x6e6   :  { %6753 = vmatpush1.bf16.msra.mxu0 %v9743_v56  ;;  %6839 = vmatpush1.bf16.msra.mxu1 %v9746_v57  ;;  %v9820_v56 = vld [vmem:[#allocation14 + $0xf8] sm:$0xff]  }
 0x6e7   :  { %6754 = vmatprep.subr.bf16.mxu0 %v9751_v58  ;;  %6840 = vmatprep.subr.bf16.mxu1 %v9754_v59  ;;  %v9821_v57 = vld [vmem:[#allocation14 + $0x38] sm:$0xff]   ;;  %v6031_v59 = vld [vmem:[%s10431_s13] sm:$0xf] }
 0x6e8   :  { %v9822_v58 = vld [vmem:[#allocation14 + $0xb8] sm:$0xff]  }
 0x6ea   :  { %6755 = vmatpush1.bf16.msra.mxu0 %v9749_v60  ;;  %6841 = vmatpush1.bf16.msra.mxu1 %v9752_v61  ;;  %v6036_v60 = vrot.slane %v6031_v59, %v10264_v45  ;;  %v6044_v61 = vrot.slane %v6031_v59, %v10266_v46 }
 0x6eb   :  { %6756 = vmatprep.subr.bf16.mxu0 %v9757_v39  ;;  %6842 = vmatprep.subr.bf16.mxu1 %v9760_v62  ;;  %v6040_v39 = vrot.slane %v6031_v59, %v10268_v47 }
 0x6ee   :  { %6757 = vmatpush1.bf16.msra.mxu0 %v9755_v63  ;;  %6843 = vmatpush1.bf16.msra.mxu1 %v9758_v0  ;;  %v6048_v0 = vrot.slane %v6031_v59, %v10270_v48 }
 0x6ef   :  { %6758 = vmatprep.subr.bf16.mxu0 %v9763_v1  ;;  %6844 = vmatprep.subr.bf16.mxu1 %v9766_v2 }
 0x6f2   :  { %6759 = vmatpush1.bf16.msra.mxu0 %v9761_v49  ;;  %6845 = vmatpush1.bf16.msra.mxu1 %v9764_v3 }
 0x6f3   :  { %6760 = vmatprep.subr.bf16.mxu0 %v9769_v4  ;;  %6846 = vmatprep.subr.bf16.mxu1 %v9772_v5 }
 0x6f6   :  { %6761 = vmatpush1.bf16.msra.mxu0 %v9767_v6  ;;  %6847 = vmatpush1.bf16.msra.mxu1 %v9770_v7 }
 0x6f7   :  { %6762 = vmatprep.subr.bf16.mxu0 %v9775_v9  ;;  %6848 = vmatprep.subr.bf16.mxu1 %v9778_v10 }
 0x6fa   :  { %6763 = vmatpush1.bf16.msra.mxu0 %v9773_v12  ;;  %6849 = vmatpush1.bf16.msra.mxu1 %v9776_v14 }
 0x6fb   :  { %6764 = vmatprep.subr.bf16.mxu0 %v9781_v15  ;;  %6850 = vmatprep.subr.bf16.mxu1 %v9784_v16  ;;  %v8266_v15 = vld [vmem:[%s10432_s14] ss:$0 sm:$0xff]  ;;  %s9999_s14 = scalar_lea.vmem %s7252_s4, 256 }
 0x6fc   :  { %p10000_p8 = scmp.ne.s32.totalorder %s7252_s4, %s9999_s14  ;;  %p10005_p10 = scmp.lt.s32.totalorder %s9999_s14, %s9999_s14 }
 0x6fe   :  { %6765 = vmatpush1.bf16.msra.mxu0 %v9779_v17  ;;  %6851 = vmatpush1.bf16.msra.mxu1 %v9782_v18  ;;  %p10006_p11 = por %p10005_p10, %p10004_p9 }
 0x6ff   :  { %6766 = vmatprep.subr.bf16.mxu0 %v9787_v20  ;;  %6852 = vmatprep.subr.bf16.mxu1 %v9790_v21 }
 0x700   :  { %p10007_p12 = pnand %p10006_p11, %p10000_p8 }
 0x702   :  { %6767 = vmatpush1.bf16.msra.mxu0 %v9785_v22  ;;  %6853 = vmatpush1.bf16.msra.mxu1 %v9788_v23 }
 0x703   :  { %8309 = vmatprep.subr.bf16.mxu0 %v9791_v24  ;;  %8331 = vmatprep.subr.bf16.mxu1 %v9792_v25 }
 0x705   :  { %8249 = vmatmul.mubr.msk.bf16.vlgmr.msra.gmra.mrb[20].mxu0 %vm10376_vm8, %v10048_v11  ;;  %8257 = vmatmul.mubr.msk.bf16.vlgmr.msra.gmra.mrb[20].mxu1 %vm10376_vm8, %v10048_v11 }
 0x706   :  { %8310 = vmatpush3.bf16.msra.mxu0 %v9793_v8  ;;  %8332 = vmatpush3.bf16.msra.mxu1 %v9794_v26 }
 0x707   :  { %8311 = vmatprep.subr.bf16.mxu0 %v9795_v27  ;;  %8333 = vmatprep.subr.bf16.mxu1 %v9796_v28 }
 0x70a   :  { %8312 = vmatpush3.bf16.msra.mxu0 %v9797_v29  ;;  %8334 = vmatpush3.bf16.msra.mxu1 %v9798_v30  ;;  %v10050_v29 = vmov 0.0  }
 0x70b   :  { %8313 = vmatprep.subr.bf16.mxu0 %v9799_v13  ;;  %8335 = vmatprep.subr.bf16.mxu1 %v9800_v31 }
 0x70e   :  { %8314 = vmatpush3.bf16.msra.mxu0 %v9801_v32  ;;  %8336 = vmatpush3.bf16.msra.mxu1 %v9802_v33 }
 0x70f   :  { %8315 = vmatprep.subr.bf16.mxu0 %v9803_v34  ;;  %8337 = vmatprep.subr.bf16.mxu1 %v9804_v35 }
 0x712   :  { %8316 = vmatpush3.bf16.msra.mxu0 %v9805_v19  ;;  %8338 = vmatpush3.bf16.msra.mxu1 %v9806_v36 }
 0x713   :  { %8317 = vmatprep.subr.bf16.mxu0 %v9807_v37  ;;  %8339 = vmatprep.subr.bf16.mxu1 %v9808_v38 }
 0x716   :  { %8318 = vmatpush3.bf16.msra.mxu0 %v9809_v40  ;;  %8340 = vmatpush3.bf16.msra.mxu1 %v9810_v41 }
 0x717   :  { %8319 = vmatprep.subr.bf16.mxu0 %v9811_v42  ;;  %8341 = vmatprep.subr.bf16.mxu1 %v9812_v43 }
 0x71a   :  { %8320 = vmatpush3.bf16.msra.mxu0 %v9813_v44  ;;  %8342 = vmatpush3.bf16.msra.mxu1 %v9814_v50 }
 0x71b   :  { %8321 = vmatprep.subr.bf16.mxu0 %v9815_v51  ;;  %8343 = vmatprep.subr.bf16.mxu1 %v9816_v52 }
 0x71e   :  { %8322 = vmatpush3.bf16.msra.mxu0 %v9817_v53  ;;  %8344 = vmatpush3.bf16.msra.mxu1 %v9818_v54 }
 0x71f   :  { %8323 = vmatprep.subr.bf16.mxu0 %v9819_v55  ;;  %8345 = vmatprep.subr.bf16.mxu1 %v9820_v56 }
 0x722   :  { %8324 = vmatpush3.bf16.msra.mxu0 %v9821_v57  ;;  %8346 = vmatpush3.bf16.msra.mxu1 %v9822_v58 }
 0x7d8   :  { %v6770_v62 = vpop.f32.mrb[20].mxu0  ;;  %v6856_v63 = vpop.f32.mrb[20].mxu1 }
 0x7d9   :  { %v8393_v1 = vadd.f32 %v6770_v62, %v6036_v60  ;;  %v6772_v2 = vpop.f32.mrb[21].mxu0  ;;  %v6858_v49 = vpop.f32.mrb[21].mxu1  ;;  %v8397_v3 = vadd.f32 %v6856_v63, %v6044_v61 }
 0x7da   :  { %v6774_v4 = vpop.f32.mrb[22].mxu0  ;;  %v6860_v5 = vpop.f32.mrb[22].mxu1  ;;  %v8394_v6 = vadd.f32 %v6772_v2, %v6040_v39  ;;  %v8398_v45 = vadd.f32 %v6858_v49, %v6048_v0 }
 0x7db   :  { %v8395_v7 = vadd.f32 %v6774_v4, %v6036_v60  ;;  %v8399_v9 = vadd.f32 %v6860_v5, %v6044_v61  ;;  %v6776_v10 = vpop.f32.mrb[23].mxu0  ;;  %v6862_v12 = vpop.f32.mrb[23].mxu1  ;;  %vm6865_vm12 = vcmp.ge.f32.partialorder %v8393_v1, 1.0  ;;  %vm6867_vm15 = vcmp.ge.f32.partialorder %v8397_v3, 1.0 }
 0x7dc   :  { %v8396_v14 = vadd.f32 %v6776_v10, %v6040_v39  ;;  %v8400_v46 = vadd.f32 %v6862_v12, %v6048_v0  ;;  %vm6866_vm3 = vcmp.ge.f32.partialorder %v8394_v6, 1.0  ;;  %vm6868_vm5 = vcmp.ge.f32.partialorder %v8398_v45, 1.0 }
 0x7dd   :  { %vm6869_vm13 = vcmp.ge.f32.partialorder %v8395_v7, 1.0  ;;  %vm6871_vm14 = vcmp.ge.f32.partialorder %v8399_v9, 1.0 }
 0x7de   :  { %vm8301_vm0 = vmpackc.low %vm6869_vm13, %vm6865_vm12  ;;  %vm6870_vm1 = vcmp.ge.f32.partialorder %v8396_v14, 1.0  ;;  %vm6872_vm2 = vcmp.ge.f32.partialorder %v8400_v46, 1.0 }
 0x7df   :  { %vm8305_vm4 = vmpackc.low %vm6871_vm14, %vm6867_vm15 }
 0x7e0   :  { %vm8299_vm6 = vmpackc.low %vm6870_vm1, %vm6866_vm3 }
 0x7e1   :  { %vm8303_vm7 = vmpackc.low %vm6872_vm2, %vm6868_vm5  ;;  %8300 = vmatprep.mubr.msk.bf16.mxu0 %vm8299_vm6, %v10048_v11 }
 0x7e2   :  { %8304 = vmatprep.mubr.msk.bf16.mxu1 %vm8303_vm7, %v10048_v11  ;;  %8302 = vmatmul.mubr.msk.bf16.vlgmr.msra.gmra.mrb[24].mxu0 %vm8301_vm0, %v10048_v11 }
 0x7e3   :  { %8306 = vmatmul.mubr.msk.bf16.vlgmr.msra.gmra.mrb[24].mxu1 %vm8305_vm4, %v10048_v11 }
 0x8b5   :  { %v8325_v47 = vpop.f32.mrb[24].mxu0 }
 0x8b6   :  { %v8347_v48 = vpop.f32.mrb[24].mxu1  ;;  %v8326_v16 = vpop.f32.mrb[25].mxu0 }
 0x8b7   :  { %v8327_v17 = vadd.f32 %v8326_v16, %v8325_v47  ;;  %v8348_v18 = vpop.f32.mrb[25].mxu1  ;;  %v8328_v20 = vpop.f32.mrb[26].mxu0 }
 0x8b8   :  { %v8349_v21 = vadd.f32 %v8348_v18, %v8347_v48  ;;  %v8350_v22 = vpop.f32.mrb[26].mxu1  ;;  %v8329_v23 = vpop.f32.mrb[27].mxu0 }
 0x8b9   :  { %v7191_v24 = vadd.f32 %v8327_v17, %v8266_v15  ;;  %v8330_v25 = vadd.f32 %v8329_v23, %v8328_v20  ;;  %v8351_v8 = vpop.f32.mrb[27].mxu1 }
 0x8ba   :  { %v8352_v26 = vadd.f32 %v8351_v8, %v8350_v22 }
 0x8bb   :  { %v7232_v27 = vadd.f32 %v8349_v21, %v7191_v24  ;;  %v7194_v28 = vadd.f32 %v8330_v25, %v8266_v15 }
 0x8bd   :  { %vm7238_vm8 = vcmp.ge.f32.partialorder %v7232_v27, 1.0  ;;  %v7235_v11 = vadd.f32 %v8352_v26, %v7194_v28 }
 0x8be   :  { %v8307_v30 = vsel %vm7238_vm8, 1.0, %v10050_v29 }
 0x8bf   :  { %7244 = vst [vmem:[#allocation16] sm:$0xff] %v8307_v30  ;;  %vm7239_vm9 = vcmp.ge.f32.partialorder %v7235_v11, 1.0 }
 0x8c0   :  { %v8308_v13 = vsel %vm7239_vm9, 1.0, %v10050_v29 }
 0x8c1   :  { %7245 = vst [vmem:[#allocation16 + $0x8] sm:$0xff] %v8308_v13 }
 0x8c2   :  { %10010 = shalt.err (!%p10007_p12)
}
 0x8c3   :  { %s10448_s25 = sld [smem:[#allocation23_spill]] }
 0x8c9   :  { %s10011_s18 = scalar_lea.hbm %s10448_s25, 256 }
 0x8ca   :  { %p10012_p13 = scmp.ne.s32.totalorder %s10448_s25, %s10011_s18  ;;  %p10015_p0 = scmp.lt.u32.totalorder %s10011_s18, %s10448_s25 }
 0x8cc   :  { %p10017_p1 = pnand %p10015_p0, %p10012_p13 }
 0x8ce   :  { %10020 = shalt.err (!%p10017_p1)
}
 0x8cf   :  { %s10051_s30 = smov 128   ;;  %s10052_s15 = smov 8  }
 0x8d0   :  { %7257 = dma.vmem_to_hbm [thread:$0]  %s7252_s4, 256, %s10448_s25, [#allocation4], %s10051_s30, %s10051_s30, %s10052_s15  }
 0x8d1   :  { %10031 = dma.done.wait [#allocation4], 256  }
 0x8d2   :  { %10032 = vsyncadd [#allocation4], 4294967040 }
 0x8d3   :  { %7261 = vsyncpa [#allocation3], 1 }
 0x8d4   :  { %7262 = vsyncpa [#allocation6], 1 }
 0x8d5   :  { %7263 = vsyncpa [#allocation9], 1 }
 0x8d6   :  { %7264 = vsyncpa [#allocation12], 1 }
 0x8d7   :  { %7265 = vsyncpa [#allocation15], 1 }
 0x8d8   :  { %7266 = vsyncpa [#allocation4], 1 }

</bundles_post_ra>
